<compile_context>
chip_gen: v7x
topology: tpu7x:2x2x1
jax: 0.10.0
libtpu: 0.0.40
codegen_flags: <defaults>
</compile_context>

<pallas_src>
import functools

import jax
import jax.numpy as jnp
from jax.experimental import pallas as pl
from jax.experimental.pallas import tpu as pltpu


def _round_up(x, m):
    return ((x + m - 1) // m) * m


def _ghmc_kernel(pred_ref, target_ref, lw_ref, out_ref, cnt_acc, bce_acc, *,
                 bins, loss_weight, total_rows, block_rows, chunk_rows, lanes,
                 mask_rows):
    """One grid step processes a (block_rows, lanes) tile of flattened elems."""
    i = pl.program_id(0)
    nt = pl.num_programs(0)
    binsf = float(bins)

    @pl.when(i == 0)
    def _init():
        cnt_acc[...] = jnp.zeros_like(cnt_acc)
        bce_acc[...] = jnp.zeros_like(bce_acc)

    def fold_lanes(a):
        # (chunk_rows, lanes) -> (chunk_rows, 128): tile-aligned vreg adds only.
        acc = a[:, 0:128]
        for k in range(1, lanes // 128):
            acc = acc + a[:, k * 128:(k + 1) * 128]
        return acc

    @pl.loop(0, block_rows // chunk_rows)
    def _chunk(c):
        r0 = pl.multiple_of(c * chunk_rows, chunk_rows)
        x = pred_ref[pl.ds(r0, chunk_rows), :].astype(jnp.float32)
        z = target_ref[pl.ds(r0, chunk_rows), :].astype(jnp.float32)
        lw = lw_ref[pl.ds(r0, chunk_rows), :].astype(jnp.float32)

        valid = lw > 0.0
        if mask_rows:
            # Last row-block may extend past the array: mask garbage rows.
            local = jax.lax.broadcasted_iota(jnp.int32, (chunk_rows, lanes), 0)
            grow = i * block_rows + c * chunk_rows + local
            valid = valid & (grow < total_rows)

        # Shared transcendental: t = exp(-|x|) feeds both sigmoid and BCE.
        t = jnp.exp(-jnp.abs(x))
        sig_pos = 1.0 / (1.0 + t)                       # sigmoid(|x|)
        sig = jnp.where(x >= 0.0, sig_pos, t * sig_pos)  # sigmoid(x)
        g = jnp.abs(sig - z)                             # gradient norm, in [0,1]
        # Numerically stable BCE-with-logits.
        bce = jnp.maximum(x, 0.0) - x * z + jnp.log(1.0 + t)

        # One compare per bin: bidx = min(floor(g*bins), bins-1); invalid -> bins.
        bidx = jnp.floor(g * binsf)
        bidx = jnp.minimum(bidx, binsf - 1.0)
        bidx = jnp.where(valid, bidx, binsf)

        for b in range(bins):
            m = bidx == float(b)
            cnt_acc[b] += fold_lanes(m.astype(jnp.float32))
            bce_acc[b] += fold_lanes(jnp.where(m, bce, 0.0))

    @pl.when(i == nt - 1)
    def _finalize():
        cnt_total = jnp.float32(0.0)
        n = jnp.float32(0.0)
        ratio_sum = jnp.float32(0.0)
        for b in range(bins):
            cb = jnp.sum(cnt_acc[b])
            sb = jnp.sum(bce_acc[b])
            cnt_total = cnt_total + cb
            nonempty = cb > 0.5
            n = n + jnp.where(nonempty, 1.0, 0.0)
            ratio_sum = ratio_sum + jnp.where(
                nonempty, sb / jnp.maximum(cb, 1.0), 0.0)
        # tot == number of valid elements (each valid element is in exactly one bin)
        tot = jnp.maximum(cnt_total, 1.0)
        inv_n = jnp.where(n > 0.5, 1.0 / jnp.maximum(n, 1.0), 0.0)
        # weight_b = (tot / count_b) / n ; loss = sum(weight * bce) / tot * lw
        loss = (tot * ratio_sum) * inv_n / tot * jnp.float32(loss_weight)
        out_ref[...] = jnp.reshape(loss, (1, 1)).astype(out_ref.dtype)


def ghmc_loss(pred, target, label_weight, *, bins=10, loss_weight=1.0,
              tile_lanes=1024, tile_rows=512):
    """Pallas equivalent of GHMC(bins, momentum=0).forward(pred, target, label_weight)."""
    pred = jnp.asarray(pred)
    target = jnp.asarray(target)
    label_weight = jnp.asarray(label_weight)
    assert pred.shape == target.shape == label_weight.shape
    M = int(pred.size)
    assert M > 0

    tile_lanes = max(128, (int(tile_lanes) // 128) * 128)

    # Pick a lane width (multiple of 128) that divides M so the flatten+reshape
    # is a free bitcast (no full-array pad copy in HBM).
    C = 0
    cand = 128
    while cand <= tile_lanes:
        if M % cand == 0:
            C = cand
        cand += 128
    if C == 0:
        # TODO(synk): fallback pads the flat tail (full-array copy); could be
        # avoided by masking the flat tail in-kernel instead.
        C = min(tile_lanes, _round_up(M, 128))
    Mp = _round_up(M, C)
    R = Mp // C

    # Chunk rows: keep slices aligned with the native sublane packing of the
    # narrowest input dtype (f32 -> 8, bf16 -> 16, int8/bool -> 32), scaled so a
    # chunk stays ~8 vregs wide when the lane width is small.
    min_item = min(jnp.dtype(a.dtype).itemsize for a in (pred, target, label_weight))
    base_chunk = max(8, 32 // max(1, min_item))
    scale = max(1, tile_lanes // C)
    chunk_rows = base_chunk * scale

    # Block rows: ~2 MiB of f32 per input per block (12 MiB double-buffered for
    # the 3 inputs -> fits default scoped VMEM on v5e/v6e/v7x), clamped for
    # small inputs. Always a multiple of chunk_rows.
    tr_target = max(chunk_rows, (int(tile_rows) * scale // chunk_rows) * chunk_rows)
    TR = max(chunk_rows, min(tr_target, _round_up(R, chunk_rows)))

    nt = pl.cdiv(R, TR)
    mask_rows = (nt * TR != R)

    def prep(a):
        a = a.reshape(-1)
        if Mp != M:
            # zero label_weight padding => padded elements are invalid/ignored
            a = jnp.pad(a, (0, Mp - M))
        return a.reshape(R, C)

    p2, t2, w2 = prep(pred), prep(target), prep(label_weight)

    kernel = functools.partial(
        _ghmc_kernel, bins=int(bins), loss_weight=float(loss_weight),
        total_rows=R, block_rows=TR, chunk_rows=chunk_rows, lanes=C,
        mask_rows=mask_rows)

    out = pl.pallas_call(
        kernel,
        out_shape=jax.ShapeDtypeStruct((1, 1), jnp.float32),
        grid_spec=pltpu.PrefetchScalarGridSpec(
            num_scalar_prefetch=0,
            grid=(nt,),
            in_specs=[
                pl.BlockSpec((TR, C), lambda i: (i, 0)),
                pl.BlockSpec((TR, C), lambda i: (i, 0)),
                pl.BlockSpec((TR, C), lambda i: (i, 0)),
            ],
            out_specs=pl.BlockSpec((1, 1), lambda i: (0, 0)),
            scratch_shapes=[
                pltpu.VMEM((bins, chunk_rows, 128), jnp.float32),  # per-bin counts
                pltpu.VMEM((bins, chunk_rows, 128), jnp.float32),  # per-bin bce sums
            ],
        ),
        compiler_params=pltpu.CompilerParams(
            dimension_semantics=("arbitrary",),
            vmem_limit_bytes=32 * 1024 * 1024,
        ),
    )(p2, t2, w2)
    return out[0, 0]


def _reference_ghmc(pred, target, label_weight, bins=10, loss_weight=1.0):
    """Pure-JAX reference mirroring the torch GHMC forward (momentum=0)."""
    pred = pred.astype(jnp.float32)
    target = target.astype(jnp.float32)
    lw = label_weight.astype(jnp.float32)

    edges = [float(b) / bins for b in range(bins + 1)]
    edges[-1] += 1e-6

    g = jnp.abs(1.0 / (1.0 + jnp.exp(-pred)) - target)
    valid = lw > 0
    tot = jnp.maximum(jnp.sum(valid.astype(jnp.float32)), 1.0)

    weights = jnp.zeros_like(pred)
    n = jnp.float32(0.0)
    for b in range(bins):
        inds = (g >= edges[b]) & (g < edges[b + 1]) & valid
        num = jnp.sum(inds.astype(jnp.float32))
        weights = jnp.where(inds, tot / jnp.maximum(num, 1.0), weights)
        n = n + jnp.where(num > 0, 1.0, 0.0)
    weights = weights / jnp.maximum(n, 1.0)

    bce = (jnp.maximum(pred, 0.0) - pred * target
           + jnp.log(1.0 + jnp.exp(-jnp.abs(pred))))
    return jnp.sum(weights * bce) / tot * loss_weight


if __name__ == "__main__":
    key = jax.random.PRNGKey(0)
    k1, k2, k3 = jax.random.split(key, 3)

    batch_num, class_num = 64, 32
    pred = jax.random.normal(k1, (batch_num, class_num), dtype=jnp.float32) * 3.0
    target = (jax.random.uniform(k2, (batch_num, class_num)) < 0.3).astype(jnp.float32)
    label_weight = (jax.random.uniform(k3, (batch_num, class_num)) < 0.9).astype(jnp.float32)

    loss = ghmc_loss(pred, target, label_weight)
    jax.block_until_ready(loss)

    ref = _reference_ghmc(pred, target, label_weight)
    # rtol is slightly relaxed: the kernel assigns bins via floor(g*bins) and a
    # shared exp(-|x|) sigmoid, which may differ from edge comparisons by ~1 ulp
    # for elements sitting exactly on a bin boundary.
    assert jnp.allclose(loss, ref, atol=1e-5, rtol=1e-3), (loss, ref)

    print("KERNEL_OK")
</pallas_src>

<mosaic_0001>
module attributes {stable_mosaic.version = 11 : i64} {
  func.func @_ghmc_kernel(%arg0: i32, %arg1: memref<8x1024xf32, #tpu.memory_space<vmem>>, %arg2: memref<8x1024xf32, #tpu.memory_space<vmem>>, %arg3: memref<8x1024xf32, #tpu.memory_space<vmem>>, %arg4: memref<1x1xf32, #tpu.memory_space<vmem>>, %arg5: memref<10x8x128xf32, #tpu.memory_space<vmem>>, %arg6: memref<10x8x128xf32, #tpu.memory_space<vmem>>) attributes {dimension_semantics = [#tpu.dimension_semantics<arbitrary>], iteration_bounds = array<i64: 1>, scalar_prefetch = 0 : i64, scratch_operands = 2 : i64, tpu.core_type = #tpu.core_type<tc>, window_params = [{transform_indices = @transform_0, window_bounds = array<i64: 8, 1024>}, {transform_indices = @transform_1, window_bounds = array<i64: 8, 1024>}, {transform_indices = @transform_2, window_bounds = array<i64: 8, 1024>}, {pipeline_mode = #tpu.pipeline_mode<synchronous>, transform_indices = @transform_3, window_bounds = array<i64: 1, 1>}]} {
    %c0_i32 = arith.constant 0 : i32
    %0 = arith.cmpi eq, %arg0, %c0_i32 : i32
    %1 = arith.extui %0 : i1 to i32
    %c0_i32_0 = arith.constant 0 : i32
    %2 = arith.cmpi ne, %1, %c0_i32_0 : i32
    scf.if %2 {
      %cst_150 = arith.constant 0.000000e+00 : f32
      %536 = vector.broadcast %cst_150 : f32 to vector<10x8x128xf32>
      %c0_151 = arith.constant 0 : index
      %c0_152 = arith.constant 0 : index
      %c0_153 = arith.constant 0 : index
      %537 = vector.load %arg5[%c0_151, %c0_152, %c0_153] : memref<10x8x128xf32, #tpu.memory_space<vmem>>, vector<10x8x128xf32>
      tpu.vector_store %arg5[%c0_151, %c0_152, %c0_153], %536 {strides = array<i32>} : memref<10x8x128xf32, #tpu.memory_space<vmem>>, vector<10x8x128xf32>,
      %cst_154 = arith.constant 0.000000e+00 : f32
      %538 = vector.broadcast %cst_154 : f32 to vector<10x8x128xf32>
      %c0_155 = arith.constant 0 : index
      %c0_156 = arith.constant 0 : index
      %c0_157 = arith.constant 0 : index
      %539 = vector.load %arg6[%c0_155, %c0_156, %c0_157] : memref<10x8x128xf32, #tpu.memory_space<vmem>>, vector<10x8x128xf32>
      tpu.vector_store %arg6[%c0_155, %c0_156, %c0_157], %538 {strides = array<i32>} : memref<10x8x128xf32, #tpu.memory_space<vmem>>, vector<10x8x128xf32>,
    } else {
    }
    %c0_i32_1 = arith.constant 0 : i32
    %c1_i32 = arith.constant 1 : i32
    %3 = arith.muli %c0_i32_1, %c1_i32 : i32
    %c0_i32_2 = arith.constant 0 : i32
    %4 = arith.addi %c0_i32_2, %3 : i32
    %c8_i32 = arith.constant 8 : i32
    %5 = arith.muli %4, %c8_i32 : i32
    %6 = tpu.assume_multiple %5, 8 : i32
    %7 = arith.index_cast %6 : i32 to index
    %c0 = arith.constant 0 : index
    %8 = vector.load %arg1[%7, %c0] : memref<8x1024xf32, #tpu.memory_space<vmem>>, vector<8x1024xf32>
    %9 = arith.index_cast %6 : i32 to index
    %c0_3 = arith.constant 0 : index
    %10 = vector.load %arg2[%9, %c0_3] : memref<8x1024xf32, #tpu.memory_space<vmem>>, vector<8x1024xf32>
    %11 = arith.index_cast %6 : i32 to index
    %c0_4 = arith.constant 0 : index
    %12 = vector.load %arg3[%11, %c0_4] : memref<8x1024xf32, #tpu.memory_space<vmem>>, vector<8x1024xf32>
    %cst = arith.constant 0.000000e+00 : f32
    %13 = vector.broadcast %cst : f32 to vector<8x1024xf32>
    %14 = arith.cmpf ogt, %12, %13 : vector<8x1024xf32>
    %15 = tpu.iota {dimensions = array<i32: 0>} : vector<8x1024xi32>
    %c8_i32_5 = arith.constant 8 : i32
    %16 = arith.muli %arg0, %c8_i32_5 : i32
    %c8_i32_6 = arith.constant 8 : i32
    %17 = arith.muli %4, %c8_i32_6 : i32
    %18 = arith.addi %16, %17 : i32
    %19 = vector.broadcast %18 : i32 to vector<8x1024xi32>
    %20 = arith.addi %19, %15 : vector<8x1024xi32>
    %c2_i32 = arith.constant 2 : i32
    %21 = vector.broadcast %c2_i32 : i32 to vector<8x1024xi32>
    %22 = arith.cmpi slt, %20, %21 : vector<8x1024xi32>
    %23 = arith.andi %14, %22 : vector<8x1024xi1>
    %24 = math.absf %8 : vector<8x1024xf32>
    %cst_7 = arith.constant 0.000000e+00 : f32
    %25 = vector.broadcast %cst_7 : f32 to vector<8x1024xf32>
    %26 = arith.subf %25, %24 : vector<8x1024xf32>
    %27 = math.exp %26 : vector<8x1024xf32>
    %cst_8 = arith.constant 1.000000e+00 : f32
    %28 = vector.broadcast %cst_8 : f32 to vector<8x1024xf32>
    %29 = arith.addf %28, %27 : vector<8x1024xf32>
    %cst_9 = arith.constant 1.000000e+00 : f32
    %30 = vector.broadcast %cst_9 : f32 to vector<8x1024xf32>
    %31 = arith.divf %30, %29 : vector<8x1024xf32>
    %cst_10 = arith.constant 0.000000e+00 : f32
    %32 = vector.broadcast %cst_10 : f32 to vector<8x1024xf32>
    %33 = arith.cmpf oge, %8, %32 : vector<8x1024xf32>
    %34 = arith.mulf %27, %31 : vector<8x1024xf32>
    %35 = arith.select %33, %31, %34 : vector<8x1024xi1>, vector<8x1024xf32>
    %36 = arith.subf %35, %10 : vector<8x1024xf32>
    %37 = math.absf %36 : vector<8x1024xf32>
    %cst_11 = arith.constant 0.000000e+00 : f32
    %38 = vector.broadcast %cst_11 : f32 to vector<8x1024xf32>
    %39 = arith.maximumf %8, %38 : vector<8x1024xf32>
    %40 = arith.mulf %8, %10 : vector<8x1024xf32>
    %41 = arith.subf %39, %40 : vector<8x1024xf32>
    %cst_12 = arith.constant 1.000000e+00 : f32
    %42 = vector.broadcast %cst_12 : f32 to vector<8x1024xf32>
    %43 = arith.addf %42, %27 : vector<8x1024xf32>
    %44 = math.log %43 : vector<8x1024xf32>
    %45 = arith.addf %41, %44 : vector<8x1024xf32>
    %cst_13 = arith.constant 1.000000e+01 : f32
    %46 = vector.broadcast %cst_13 : f32 to vector<8x1024xf32>
    %47 = arith.mulf %37, %46 : vector<8x1024xf32>
    %48 = math.floor %47 : vector<8x1024xf32>
    %cst_14 = arith.constant 9.000000e+00 : f32
    %49 = vector.broadcast %cst_14 : f32 to vector<8x1024xf32>
    %50 = arith.minimumf %48, %49 : vector<8x1024xf32>
    %cst_15 = arith.constant 1.000000e+01 : f32
    %51 = vector.broadcast %cst_15 : f32 to vector<8x1024xf32>
    %52 = arith.select %23, %50, %51 : vector<8x1024xi1>, vector<8x1024xf32>
    %cst_16 = arith.constant 0.000000e+00 : f32
    %53 = vector.broadcast %cst_16 : f32 to vector<8x1024xf32>
    %54 = arith.cmpf oeq, %52, %53 : vector<8x1024xf32>
    %c0_17 = arith.constant 0 : index
    %c0_18 = arith.constant 0 : index
    %c0_19 = arith.constant 0 : index
    %55 = vector.load %arg5[%c0_17, %c0_18, %c0_19] : memref<10x8x128xf32, #tpu.memory_space<vmem>>, vector<1x8x128xf32>
    %56 = vector.shape_cast %55 : vector<1x8x128xf32> to vector<8x128xf32>
    %57 = arith.extui %54 : vector<8x1024xi1> to vector<8x1024xi32>
    %58 = arith.sitofp %57 : vector<8x1024xi32> to vector<8x1024xf32>
    %59 = vector.extract_strided_slice %58 {offsets = [0, 0], sizes = [8, 128], strides = [1, 1]} : vector<8x1024xf32> to vector<8x128xf32>
    %60 = vector.extract_strided_slice %58 {offsets = [0, 128], sizes = [8, 128], strides = [1, 1]} : vector<8x1024xf32> to vector<8x128xf32>
    %61 = arith.addf %59, %60 : vector<8x128xf32>
    %62 = vector.extract_strided_slice %58 {offsets = [0, 256], sizes = [8, 128], strides = [1, 1]} : vector<8x1024xf32> to vector<8x128xf32>
    %63 = arith.addf %61, %62 : vector<8x128xf32>
    %64 = vector.extract_strided_slice %58 {offsets = [0, 384], sizes = [8, 128], strides = [1, 1]} : vector<8x1024xf32> to vector<8x128xf32>
    %65 = arith.addf %63, %64 : vector<8x128xf32>
    %66 = vector.extract_strided_slice %58 {offsets = [0, 512], sizes = [8, 128], strides = [1, 1]} : vector<8x1024xf32> to vector<8x128xf32>
    %67 = arith.addf %65, %66 : vector<8x128xf32>
    %68 = vector.extract_strided_slice %58 {offsets = [0, 640], sizes = [8, 128], strides = [1, 1]} : vector<8x1024xf32> to vector<8x128xf32>
    %69 = arith.addf %67, %68 : vector<8x128xf32>
    %70 = vector.extract_strided_slice %58 {offsets = [0, 768], sizes = [8, 128], strides = [1, 1]} : vector<8x1024xf32> to vector<8x128xf32>
    %71 = arith.addf %69, %70 : vector<8x128xf32>
    %72 = vector.extract_strided_slice %58 {offsets = [0, 896], sizes = [8, 128], strides = [1, 1]} : vector<8x1024xf32> to vector<8x128xf32>
    %73 = arith.addf %71, %72 : vector<8x128xf32>
    %74 = arith.addf %56, %73 : vector<8x128xf32>
    %c0_20 = arith.constant 0 : index
    %c0_21 = arith.constant 0 : index
    %c0_22 = arith.constant 0 : index
    %75 = vector.load %arg5[%c0_20, %c0_21, %c0_22] : memref<10x8x128xf32, #tpu.memory_space<vmem>>, vector<1x8x128xf32>
    %76 = vector.shape_cast %75 : vector<1x8x128xf32> to vector<8x128xf32>
    %77 = vector.shape_cast %74 : vector<8x128xf32> to vector<1x8x128xf32>
    tpu.vector_store %arg5[%c0_20, %c0_21, %c0_22], %77 {strides = array<i32>} : memref<10x8x128xf32, #tpu.memory_space<vmem>>, vector<1x8x128xf32>,
    %c0_23 = arith.constant 0 : index
    %c0_24 = arith.constant 0 : index
    %c0_25 = arith.constant 0 : index
    %78 = vector.load %arg6[%c0_23, %c0_24, %c0_25] : memref<10x8x128xf32, #tpu.memory_space<vmem>>, vector<1x8x128xf32>
    %79 = vector.shape_cast %78 : vector<1x8x128xf32> to vector<8x128xf32>
    %cst_26 = arith.constant 0.000000e+00 : f32
    %80 = vector.broadcast %cst_26 : f32 to vector<8x1024xf32>
    %81 = arith.select %54, %45, %80 : vector<8x1024xi1>, vector<8x1024xf32>
    %82 = vector.extract_strided_slice %81 {offsets = [0, 0], sizes = [8, 128], strides = [1, 1]} : vector<8x1024xf32> to vector<8x128xf32>
    %83 = vector.extract_strided_slice %81 {offsets = [0, 128], sizes = [8, 128], strides = [1, 1]} : vector<8x1024xf32> to vector<8x128xf32>
    %84 = arith.addf %82, %83 : vector<8x128xf32>
    %85 = vector.extract_strided_slice %81 {offsets = [0, 256], sizes = [8, 128], strides = [1, 1]} : vector<8x1024xf32> to vector<8x128xf32>
    %86 = arith.addf %84, %85 : vector<8x128xf32>
    %87 = vector.extract_strided_slice %81 {offsets = [0, 384], sizes = [8, 128], strides = [1, 1]} : vector<8x1024xf32> to vector<8x128xf32>
    %88 = arith.addf %86, %87 : vector<8x128xf32>
    %89 = vector.extract_strided_slice %81 {offsets = [0, 512], sizes = [8, 128], strides = [1, 1]} : vector<8x1024xf32> to vector<8x128xf32>
    %90 = arith.addf %88, %89 : vector<8x128xf32>
    %91 = vector.extract_strided_slice %81 {offsets = [0, 640], sizes = [8, 128], strides = [1, 1]} : vector<8x1024xf32> to vector<8x128xf32>
    %92 = arith.addf %90, %91 : vector<8x128xf32>
    %93 = vector.extract_strided_slice %81 {offsets = [0, 768], sizes = [8, 128], strides = [1, 1]} : vector<8x1024xf32> to vector<8x128xf32>
    %94 = arith.addf %92, %93 : vector<8x128xf32>
    %95 = vector.extract_strided_slice %81 {offsets = [0, 896], sizes = [8, 128], strides = [1, 1]} : vector<8x1024xf32> to vector<8x128xf32>
    %96 = arith.addf %94, %95 : vector<8x128xf32>
    %97 = arith.addf %79, %96 : vector<8x128xf32>
    %c0_27 = arith.constant 0 : index
    %c0_28 = arith.constant 0 : index
    %c0_29 = arith.constant 0 : index
    %98 = vector.load %arg6[%c0_27, %c0_28, %c0_29] : memref<10x8x128xf32, #tpu.memory_space<vmem>>, vector<1x8x128xf32>
    %99 = vector.shape_cast %98 : vector<1x8x128xf32> to vector<8x128xf32>
    %100 = vector.shape_cast %97 : vector<8x128xf32> to vector<1x8x128xf32>
    tpu.vector_store %arg6[%c0_27, %c0_28, %c0_29], %100 {strides = array<i32>} : memref<10x8x128xf32, #tpu.memory_space<vmem>>, vector<1x8x128xf32>,
    %cst_30 = arith.constant 1.000000e+00 : f32
    %101 = vector.broadcast %cst_30 : f32 to vector<8x1024xf32>
    %102 = arith.cmpf oeq, %52, %101 : vector<8x1024xf32>
    %c1 = arith.constant 1 : index
    %c0_31 = arith.constant 0 : index
    %c0_32 = arith.constant 0 : index
    %103 = vector.load %arg5[%c1, %c0_31, %c0_32] : memref<10x8x128xf32, #tpu.memory_space<vmem>>, vector<1x8x128xf32>
    %104 = vector.shape_cast %103 : vector<1x8x128xf32> to vector<8x128xf32>
    %105 = arith.extui %102 : vector<8x1024xi1> to vector<8x1024xi32>
    %106 = arith.sitofp %105 : vector<8x1024xi32> to vector<8x1024xf32>
    %107 = vector.extract_strided_slice %106 {offsets = [0, 0], sizes = [8, 128], strides = [1, 1]} : vector<8x1024xf32> to vector<8x128xf32>
    %108 = vector.extract_strided_slice %106 {offsets = [0, 128], sizes = [8, 128], strides = [1, 1]} : vector<8x1024xf32> to vector<8x128xf32>
    %109 = arith.addf %107, %108 : vector<8x128xf32>
    %110 = vector.extract_strided_slice %106 {offsets = [0, 256], sizes = [8, 128], strides = [1, 1]} : vector<8x1024xf32> to vector<8x128xf32>
    %111 = arith.addf %109, %110 : vector<8x128xf32>
    %112 = vector.extract_strided_slice %106 {offsets = [0, 384], sizes = [8, 128], strides = [1, 1]} : vector<8x1024xf32> to vector<8x128xf32>
    %113 = arith.addf %111, %112 : vector<8x128xf32>
    %114 = vector.extract_strided_slice %106 {offsets = [0, 512], sizes = [8, 128], strides = [1, 1]} : vector<8x1024xf32> to vector<8x128xf32>
    %115 = arith.addf %113, %114 : vector<8x128xf32>
    %116 = vector.extract_strided_slice %106 {offsets = [0, 640], sizes = [8, 128], strides = [1, 1]} : vector<8x1024xf32> to vector<8x128xf32>
    %117 = arith.addf %115, %116 : vector<8x128xf32>
    %118 = vector.extract_strided_slice %106 {offsets = [0, 768], sizes = [8, 128], strides = [1, 1]} : vector<8x1024xf32> to vector<8x128xf32>
    %119 = arith.addf %117, %118 : vector<8x128xf32>
    %120 = vector.extract_strided_slice %106 {offsets = [0, 896], sizes = [8, 128], strides = [1, 1]} : vector<8x1024xf32> to vector<8x128xf32>
    %121 = arith.addf %119, %120 : vector<8x128xf32>
    %122 = arith.addf %104, %121 : vector<8x128xf32>
    %c1_33 = arith.constant 1 : index
    %c0_34 = arith.constant 0 : index
    %c0_35 = arith.constant 0 : index
    %123 = vector.load %arg5[%c1_33, %c0_34, %c0_35] : memref<10x8x128xf32, #tpu.memory_space<vmem>>, vector<1x8x128xf32>
    %124 = vector.shape_cast %123 : vector<1x8x128xf32> to vector<8x128xf32>
    %125 = vector.shape_cast %122 : vector<8x128xf32> to vector<1x8x128xf32>
    tpu.vector_store %arg5[%c1_33, %c0_34, %c0_35], %125 {strides = array<i32>} : memref<10x8x128xf32, #tpu.memory_space<vmem>>, vector<1x8x128xf32>,
    %c1_36 = arith.constant 1 : index
    %c0_37 = arith.constant 0 : index
    %c0_38 = arith.constant 0 : index
    %126 = vector.load %arg6[%c1_36, %c0_37, %c0_38] : memref<10x8x128xf32, #tpu.memory_space<vmem>>, vector<1x8x128xf32>
    %127 = vector.shape_cast %126 : vector<1x8x128xf32> to vector<8x128xf32>
    %cst_39 = arith.constant 0.000000e+00 : f32
    %128 = vector.broadcast %cst_39 : f32 to vector<8x1024xf32>
    %129 = arith.select %102, %45, %128 : vector<8x1024xi1>, vector<8x1024xf32>
    %130 = vector.extract_strided_slice %129 {offsets = [0, 0], sizes = [8, 128], strides = [1, 1]} : vector<8x1024xf32> to vector<8x128xf32>
    %131 = vector.extract_strided_slice %129 {offsets = [0, 128], sizes = [8, 128], strides = [1, 1]} : vector<8x1024xf32> to vector<8x128xf32>
    %132 = arith.addf %130, %131 : vector<8x128xf32>
    %133 = vector.extract_strided_slice %129 {offsets = [0, 256], sizes = [8, 128], strides = [1, 1]} : vector<8x1024xf32> to vector<8x128xf32>
    %134 = arith.addf %132, %133 : vector<8x128xf32>
    %135 = vector.extract_strided_slice %129 {offsets = [0, 384], sizes = [8, 128], strides = [1, 1]} : vector<8x1024xf32> to vector<8x128xf32>
    %136 = arith.addf %134, %135 : vector<8x128xf32>
    %137 = vector.extract_strided_slice %129 {offsets = [0, 512], sizes = [8, 128], strides = [1, 1]} : vector<8x1024xf32> to vector<8x128xf32>
    %138 = arith.addf %136, %137 : vector<8x128xf32>
    %139 = vector.extract_strided_slice %129 {offsets = [0, 640], sizes = [8, 128], strides = [1, 1]} : vector<8x1024xf32> to vector<8x128xf32>
    %140 = arith.addf %138, %139 : vector<8x128xf32>
    %141 = vector.extract_strided_slice %129 {offsets = [0, 768], sizes = [8, 128], strides = [1, 1]} : vector<8x1024xf32> to vector<8x128xf32>
    %142 = arith.addf %140, %141 : vector<8x128xf32>
    %143 = vector.extract_strided_slice %129 {offsets = [0, 896], sizes = [8, 128], strides = [1, 1]} : vector<8x1024xf32> to vector<8x128xf32>
    %144 = arith.addf %142, %143 : vector<8x128xf32>
    %145 = arith.addf %127, %144 : vector<8x128xf32>
    %c1_40 = arith.constant 1 : index
    %c0_41 = arith.constant 0 : index
    %c0_42 = arith.constant 0 : index
    %146 = vector.load %arg6[%c1_40, %c0_41, %c0_42] : memref<10x8x128xf32, #tpu.memory_space<vmem>>, vector<1x8x128xf32>
    %147 = vector.shape_cast %146 : vector<1x8x128xf32> to vector<8x128xf32>
    %148 = vector.shape_cast %145 : vector<8x128xf32> to vector<1x8x128xf32>
    tpu.vector_store %arg6[%c1_40, %c0_41, %c0_42], %148 {strides = array<i32>} : memref<10x8x128xf32, #tpu.memory_space<vmem>>, vector<1x8x128xf32>,
    %cst_43 = arith.constant 2.000000e+00 : f32
    %149 = vector.broadcast %cst_43 : f32 to vector<8x1024xf32>
    %150 = arith.cmpf oeq, %52, %149 : vector<8x1024xf32>
    %c2 = arith.constant 2 : index
    %c0_44 = arith.constant 0 : index
    %c0_45 = arith.constant 0 : index
    %151 = vector.load %arg5[%c2, %c0_44, %c0_45] : memref<10x8x128xf32, #tpu.memory_space<vmem>>, vector<1x8x128xf32>
    %152 = vector.shape_cast %151 : vector<1x8x128xf32> to vector<8x128xf32>
    %153 = arith.extui %150 : vector<8x1024xi1> to vector<8x1024xi32>
    %154 = arith.sitofp %153 : vector<8x1024xi32> to vector<8x1024xf32>
    %155 = vector.extract_strided_slice %154 {offsets = [0, 0], sizes = [8, 128], strides = [1, 1]} : vector<8x1024xf32> to vector<8x128xf32>
    %156 = vector.extract_strided_slice %154 {offsets = [0, 128], sizes = [8, 128], strides = [1, 1]} : vector<8x1024xf32> to vector<8x128xf32>
    %157 = arith.addf %155, %156 : vector<8x128xf32>
    %158 = vector.extract_strided_slice %154 {offsets = [0, 256], sizes = [8, 128], strides = [1, 1]} : vector<8x1024xf32> to vector<8x128xf32>
    %159 = arith.addf %157, %158 : vector<8x128xf32>
    %160 = vector.extract_strided_slice %154 {offsets = [0, 384], sizes = [8, 128], strides = [1, 1]} : vector<8x1024xf32> to vector<8x128xf32>
    %161 = arith.addf %159, %160 : vector<8x128xf32>
    %162 = vector.extract_strided_slice %154 {offsets = [0, 512], sizes = [8, 128], strides = [1, 1]} : vector<8x1024xf32> to vector<8x128xf32>
    %163 = arith.addf %161, %162 : vector<8x128xf32>
    %164 = vector.extract_strided_slice %154 {offsets = [0, 640], sizes = [8, 128], strides = [1, 1]} : vector<8x1024xf32> to vector<8x128xf32>
    %165 = arith.addf %163, %164 : vector<8x128xf32>
    %166 = vector.extract_strided_slice %154 {offsets = [0, 768], sizes = [8, 128], strides = [1, 1]} : vector<8x1024xf32> to vector<8x128xf32>
    %167 = arith.addf %165, %166 : vector<8x128xf32>
    %168 = vector.extract_strided_slice %154 {offsets = [0, 896], sizes = [8, 128], strides = [1, 1]} : vector<8x1024xf32> to vector<8x128xf32>
    %169 = arith.addf %167, %168 : vector<8x128xf32>
    %170 = arith.addf %152, %169 : vector<8x128xf32>
    %c2_46 = arith.constant 2 : index
    %c0_47 = arith.constant 0 : index
    %c0_48 = arith.constant 0 : index
    %171 = vector.load %arg5[%c2_46, %c0_47, %c0_48] : memref<10x8x128xf32, #tpu.memory_space<vmem>>, vector<1x8x128xf32>
    %172 = vector.shape_cast %171 : vector<1x8x128xf32> to vector<8x128xf32>
    %173 = vector.shape_cast %170 : vector<8x128xf32> to vector<1x8x128xf32>
    tpu.vector_store %arg5[%c2_46, %c0_47, %c0_48], %173 {strides = array<i32>} : memref<10x8x128xf32, #tpu.memory_space<vmem>>, vector<1x8x128xf32>,
    %c2_49 = arith.constant 2 : index
    %c0_50 = arith.constant 0 : index
    %c0_51 = arith.constant 0 : index
    %174 = vector.load %arg6[%c2_49, %c0_50, %c0_51] : memref<10x8x128xf32, #tpu.memory_space<vmem>>, vector<1x8x128xf32>
    %175 = vector.shape_cast %174 : vector<1x8x128xf32> to vector<8x128xf32>
    %cst_52 = arith.constant 0.000000e+00 : f32
    %176 = vector.broadcast %cst_52 : f32 to vector<8x1024xf32>
    %177 = arith.select %150, %45, %176 : vector<8x1024xi1>, vector<8x1024xf32>
    %178 = vector.extract_strided_slice %177 {offsets = [0, 0], sizes = [8, 128], strides = [1, 1]} : vector<8x1024xf32> to vector<8x128xf32>
    %179 = vector.extract_strided_slice %177 {offsets = [0, 128], sizes = [8, 128], strides = [1, 1]} : vector<8x1024xf32> to vector<8x128xf32>
    %180 = arith.addf %178, %179 : vector<8x128xf32>
    %181 = vector.extract_strided_slice %177 {offsets = [0, 256], sizes = [8, 128], strides = [1, 1]} : vector<8x1024xf32> to vector<8x128xf32>
    %182 = arith.addf %180, %181 : vector<8x128xf32>
    %183 = vector.extract_strided_slice %177 {offsets = [0, 384], sizes = [8, 128], strides = [1, 1]} : vector<8x1024xf32> to vector<8x128xf32>
    %184 = arith.addf %182, %183 : vector<8x128xf32>
    %185 = vector.extract_strided_slice %177 {offsets = [0, 512], sizes = [8, 128], strides = [1, 1]} : vector<8x1024xf32> to vector<8x128xf32>
    %186 = arith.addf %184, %185 : vector<8x128xf32>
    %187 = vector.extract_strided_slice %177 {offsets = [0, 640], sizes = [8, 128], strides = [1, 1]} : vector<8x1024xf32> to vector<8x128xf32>
    %188 = arith.addf %186, %187 : vector<8x128xf32>
    %189 = vector.extract_strided_slice %177 {offsets = [0, 768], sizes = [8, 128], strides = [1, 1]} : vector<8x1024xf32> to vector<8x128xf32>
    %190 = arith.addf %188, %189 : vector<8x128xf32>
    %191 = vector.extract_strided_slice %177 {offsets = [0, 896], sizes = [8, 128], strides = [1, 1]} : vector<8x1024xf32> to vector<8x128xf32>
    %192 = arith.addf %190, %191 : vector<8x128xf32>
    %193 = arith.addf %175, %192 : vector<8x128xf32>
    %c2_53 = arith.constant 2 : index
    %c0_54 = arith.constant 0 : index
    %c0_55 = arith.constant 0 : index
    %194 = vector.load %arg6[%c2_53, %c0_54, %c0_55] : memref<10x8x128xf32, #tpu.memory_space<vmem>>, vector<1x8x128xf32>
    %195 = vector.shape_cast %194 : vector<1x8x128xf32> to vector<8x128xf32>
    %196 = vector.shape_cast %193 : vector<8x128xf32> to vector<1x8x128xf32>
    tpu.vector_store %arg6[%c2_53, %c0_54, %c0_55], %196 {strides = array<i32>} : memref<10x8x128xf32, #tpu.memory_space<vmem>>, vector<1x8x128xf32>,
    %cst_56 = arith.constant 3.000000e+00 : f32
    %197 = vector.broadcast %cst_56 : f32 to vector<8x1024xf32>
    %198 = arith.cmpf oeq, %52, %197 : vector<8x1024xf32>
    %c3 = arith.constant 3 : index
    %c0_57 = arith.constant 0 : index
    %c0_58 = arith.constant 0 : index
    %199 = vector.load %arg5[%c3, %c0_57, %c0_58] : memref<10x8x128xf32, #tpu.memory_space<vmem>>, vector<1x8x128xf32>
    %200 = vector.shape_cast %199 : vector<1x8x128xf32> to vector<8x128xf32>
    %201 = arith.extui %198 : vector<8x1024xi1> to vector<8x1024xi32>
    %202 = arith.sitofp %201 : vector<8x1024xi32> to vector<8x1024xf32>
    %203 = vector.extract_strided_slice %202 {offsets = [0, 0], sizes = [8, 128], strides = [1, 1]} : vector<8x1024xf32> to vector<8x128xf32>
    %204 = vector.extract_strided_slice %202 {offsets = [0, 128], sizes = [8, 128], strides = [1, 1]} : vector<8x1024xf32> to vector<8x128xf32>
    %205 = arith.addf %203, %204 : vector<8x128xf32>
    %206 = vector.extract_strided_slice %202 {offsets = [0, 256], sizes = [8, 128], strides = [1, 1]} : vector<8x1024xf32> to vector<8x128xf32>
    %207 = arith.addf %205, %206 : vector<8x128xf32>
    %208 = vector.extract_strided_slice %202 {offsets = [0, 384], sizes = [8, 128], strides = [1, 1]} : vector<8x1024xf32> to vector<8x128xf32>
    %209 = arith.addf %207, %208 : vector<8x128xf32>
    %210 = vector.extract_strided_slice %202 {offsets = [0, 512], sizes = [8, 128], strides = [1, 1]} : vector<8x1024xf32> to vector<8x128xf32>
    %211 = arith.addf %209, %210 : vector<8x128xf32>
    %212 = vector.extract_strided_slice %202 {offsets = [0, 640], sizes = [8, 128], strides = [1, 1]} : vector<8x1024xf32> to vector<8x128xf32>
    %213 = arith.addf %211, %212 : vector<8x128xf32>
    %214 = vector.extract_strided_slice %202 {offsets = [0, 768], sizes = [8, 128], strides = [1, 1]} : vector<8x1024xf32> to vector<8x128xf32>
    %215 = arith.addf %213, %214 : vector<8x128xf32>
    %216 = vector.extract_strided_slice %202 {offsets = [0, 896], sizes = [8, 128], strides = [1, 1]} : vector<8x1024xf32> to vector<8x128xf32>
    %217 = arith.addf %215, %216 : vector<8x128xf32>
    %218 = arith.addf %200, %217 : vector<8x128xf32>
    %c3_59 = arith.constant 3 : index
    %c0_60 = arith.constant 0 : index
    %c0_61 = arith.constant 0 : index
    %219 = vector.load %arg5[%c3_59, %c0_60, %c0_61] : memref<10x8x128xf32, #tpu.memory_space<vmem>>, vector<1x8x128xf32>
    %220 = vector.shape_cast %219 : vector<1x8x128xf32> to vector<8x128xf32>
    %221 = vector.shape_cast %218 : vector<8x128xf32> to vector<1x8x128xf32>
    tpu.vector_store %arg5[%c3_59, %c0_60, %c0_61], %221 {strides = array<i32>} : memref<10x8x128xf32, #tpu.memory_space<vmem>>, vector<1x8x128xf32>,
    %c3_62 = arith.constant 3 : index
    %c0_63 = arith.constant 0 : index
    %c0_64 = arith.constant 0 : index
    %222 = vector.load %arg6[%c3_62, %c0_63, %c0_64] : memref<10x8x128xf32, #tpu.memory_space<vmem>>, vector<1x8x128xf32>
    %223 = vector.shape_cast %222 : vector<1x8x128xf32> to vector<8x128xf32>
    %cst_65 = arith.constant 0.000000e+00 : f32
    %224 = vector.broadcast %cst_65 : f32 to vector<8x1024xf32>
    %225 = arith.select %198, %45, %224 : vector<8x1024xi1>, vector<8x1024xf32>
    %226 = vector.extract_strided_slice %225 {offsets = [0, 0], sizes = [8, 128], strides = [1, 1]} : vector<8x1024xf32> to vector<8x128xf32>
    %227 = vector.extract_strided_slice %225 {offsets = [0, 128], sizes = [8, 128], strides = [1, 1]} : vector<8x1024xf32> to vector<8x128xf32>
    %228 = arith.addf %226, %227 : vector<8x128xf32>
    %229 = vector.extract_strided_slice %225 {offsets = [0, 256], sizes = [8, 128], strides = [1, 1]} : vector<8x1024xf32> to vector<8x128xf32>
    %230 = arith.addf %228, %229 : vector<8x128xf32>
    %231 = vector.extract_strided_slice %225 {offsets = [0, 384], sizes = [8, 128], strides = [1, 1]} : vector<8x1024xf32> to vector<8x128xf32>
    %232 = arith.addf %230, %231 : vector<8x128xf32>
    %233 = vector.extract_strided_slice %225 {offsets = [0, 512], sizes = [8, 128], strides = [1, 1]} : vector<8x1024xf32> to vector<8x128xf32>
    %234 = arith.addf %232, %233 : vector<8x128xf32>
    %235 = vector.extract_strided_slice %225 {offsets = [0, 640], sizes = [8, 128], strides = [1, 1]} : vector<8x1024xf32> to vector<8x128xf32>
    %236 = arith.addf %234, %235 : vector<8x128xf32>
    %237 = vector.extract_strided_slice %225 {offsets = [0, 768], sizes = [8, 128], strides = [1, 1]} : vector<8x1024xf32> to vector<8x128xf32>
    %238 = arith.addf %236, %237 : vector<8x128xf32>
    %239 = vector.extract_strided_slice %225 {offsets = [0, 896], sizes = [8, 128], strides = [1, 1]} : vector<8x1024xf32> to vector<8x128xf32>
    %240 = arith.addf %238, %239 : vector<8x128xf32>
    %241 = arith.addf %223, %240 : vector<8x128xf32>
    %c3_66 = arith.constant 3 : index
    %c0_67 = arith.constant 0 : index
    %c0_68 = arith.constant 0 : index
    %242 = vector.load %arg6[%c3_66, %c0_67, %c0_68] : memref<10x8x128xf32, #tpu.memory_space<vmem>>, vector<1x8x128xf32>
    %243 = vector.shape_cast %242 : vector<1x8x128xf32> to vector<8x128xf32>
    %244 = vector.shape_cast %241 : vector<8x128xf32> to vector<1x8x128xf32>
    tpu.vector_store %arg6[%c3_66, %c0_67, %c0_68], %244 {strides = array<i32>} : memref<10x8x128xf32, #tpu.memory_space<vmem>>, vector<1x8x128xf32>,
    %cst_69 = arith.constant 4.000000e+00 : f32
    %245 = vector.broadcast %cst_69 : f32 to vector<8x1024xf32>
    %246 = arith.cmpf oeq, %52, %245 : vector<8x1024xf32>
    %c4 = arith.constant 4 : index
    %c0_70 = arith.constant 0 : index
    %c0_71 = arith.constant 0 : index
    %247 = vector.load %arg5[%c4, %c0_70, %c0_71] : memref<10x8x128xf32, #tpu.memory_space<vmem>>, vector<1x8x128xf32>
    %248 = vector.shape_cast %247 : vector<1x8x128xf32> to vector<8x128xf32>
    %249 = arith.extui %246 : vector<8x1024xi1> to vector<8x1024xi32>
    %250 = arith.sitofp %249 : vector<8x1024xi32> to vector<8x1024xf32>
    %251 = vector.extract_strided_slice %250 {offsets = [0, 0], sizes = [8, 128], strides = [1, 1]} : vector<8x1024xf32> to vector<8x128xf32>
    %252 = vector.extract_strided_slice %250 {offsets = [0, 128], sizes = [8, 128], strides = [1, 1]} : vector<8x1024xf32> to vector<8x128xf32>
    %253 = arith.addf %251, %252 : vector<8x128xf32>
    %254 = vector.extract_strided_slice %250 {offsets = [0, 256], sizes = [8, 128], strides = [1, 1]} : vector<8x1024xf32> to vector<8x128xf32>
    %255 = arith.addf %253, %254 : vector<8x128xf32>
    %256 = vector.extract_strided_slice %250 {offsets = [0, 384], sizes = [8, 128], strides = [1, 1]} : vector<8x1024xf32> to vector<8x128xf32>
    %257 = arith.addf %255, %256 : vector<8x128xf32>
    %258 = vector.extract_strided_slice %250 {offsets = [0, 512], sizes = [8, 128], strides = [1, 1]} : vector<8x1024xf32> to vector<8x128xf32>
    %259 = arith.addf %257, %258 : vector<8x128xf32>
    %260 = vector.extract_strided_slice %250 {offsets = [0, 640], sizes = [8, 128], strides = [1, 1]} : vector<8x1024xf32> to vector<8x128xf32>
    %261 = arith.addf %259, %260 : vector<8x128xf32>
    %262 = vector.extract_strided_slice %250 {offsets = [0, 768], sizes = [8, 128], strides = [1, 1]} : vector<8x1024xf32> to vector<8x128xf32>
    %263 = arith.addf %261, %262 : vector<8x128xf32>
    %264 = vector.extract_strided_slice %250 {offsets = [0, 896], sizes = [8, 128], strides = [1, 1]} : vector<8x1024xf32> to vector<8x128xf32>
    %265 = arith.addf %263, %264 : vector<8x128xf32>
    %266 = arith.addf %248, %265 : vector<8x128xf32>
    %c4_72 = arith.constant 4 : index
    %c0_73 = arith.constant 0 : index
    %c0_74 = arith.constant 0 : index
    %267 = vector.load %arg5[%c4_72, %c0_73, %c0_74] : memref<10x8x128xf32, #tpu.memory_space<vmem>>, vector<1x8x128xf32>
    %268 = vector.shape_cast %267 : vector<1x8x128xf32> to vector<8x128xf32>
    %269 = vector.shape_cast %266 : vector<8x128xf32> to vector<1x8x128xf32>
    tpu.vector_store %arg5[%c4_72, %c0_73, %c0_74], %269 {strides = array<i32>} : memref<10x8x128xf32, #tpu.memory_space<vmem>>, vector<1x8x128xf32>,
    %c4_75 = arith.constant 4 : index
    %c0_76 = arith.constant 0 : index
    %c0_77 = arith.constant 0 : index
    %270 = vector.load %arg6[%c4_75, %c0_76, %c0_77] : memref<10x8x128xf32, #tpu.memory_space<vmem>>, vector<1x8x128xf32>
    %271 = vector.shape_cast %270 : vector<1x8x128xf32> to vector<8x128xf32>
    %cst_78 = arith.constant 0.000000e+00 : f32
    %272 = vector.broadcast %cst_78 : f32 to vector<8x1024xf32>
    %273 = arith.select %246, %45, %272 : vector<8x1024xi1>, vector<8x1024xf32>
    %274 = vector.extract_strided_slice %273 {offsets = [0, 0], sizes = [8, 128], strides = [1, 1]} : vector<8x1024xf32> to vector<8x128xf32>
    %275 = vector.extract_strided_slice %273 {offsets = [0, 128], sizes = [8, 128], strides = [1, 1]} : vector<8x1024xf32> to vector<8x128xf32>
    %276 = arith.addf %274, %275 : vector<8x128xf32>
    %277 = vector.extract_strided_slice %273 {offsets = [0, 256], sizes = [8, 128], strides = [1, 1]} : vector<8x1024xf32> to vector<8x128xf32>
    %278 = arith.addf %276, %277 : vector<8x128xf32>
    %279 = vector.extract_strided_slice %273 {offsets = [0, 384], sizes = [8, 128], strides = [1, 1]} : vector<8x1024xf32> to vector<8x128xf32>
    %280 = arith.addf %278, %279 : vector<8x128xf32>
    %281 = vector.extract_strided_slice %273 {offsets = [0, 512], sizes = [8, 128], strides = [1, 1]} : vector<8x1024xf32> to vector<8x128xf32>
    %282 = arith.addf %280, %281 : vector<8x128xf32>
    %283 = vector.extract_strided_slice %273 {offsets = [0, 640], sizes = [8, 128], strides = [1, 1]} : vector<8x1024xf32> to vector<8x128xf32>
    %284 = arith.addf %282, %283 : vector<8x128xf32>
    %285 = vector.extract_strided_slice %273 {offsets = [0, 768], sizes = [8, 128], strides = [1, 1]} : vector<8x1024xf32> to vector<8x128xf32>
    %286 = arith.addf %284, %285 : vector<8x128xf32>
    %287 = vector.extract_strided_slice %273 {offsets = [0, 896], sizes = [8, 128], strides = [1, 1]} : vector<8x1024xf32> to vector<8x128xf32>
    %288 = arith.addf %286, %287 : vector<8x128xf32>
    %289 = arith.addf %271, %288 : vector<8x128xf32>
    %c4_79 = arith.constant 4 : index
    %c0_80 = arith.constant 0 : index
    %c0_81 = arith.constant 0 : index
    %290 = vector.load %arg6[%c4_79, %c0_80, %c0_81] : memref<10x8x128xf32, #tpu.memory_space<vmem>>, vector<1x8x128xf32>
    %291 = vector.shape_cast %290 : vector<1x8x128xf32> to vector<8x128xf32>
    %292 = vector.shape_cast %289 : vector<8x128xf32> to vector<1x8x128xf32>
    tpu.vector_store %arg6[%c4_79, %c0_80, %c0_81], %292 {strides = array<i32>} : memref<10x8x128xf32, #tpu.memory_space<vmem>>, vector<1x8x128xf32>,
    %cst_82 = arith.constant 5.000000e+00 : f32
    %293 = vector.broadcast %cst_82 : f32 to vector<8x1024xf32>
    %294 = arith.cmpf oeq, %52, %293 : vector<8x1024xf32>
    %c5 = arith.constant 5 : index
    %c0_83 = arith.constant 0 : index
    %c0_84 = arith.constant 0 : index
    %295 = vector.load %arg5[%c5, %c0_83, %c0_84] : memref<10x8x128xf32, #tpu.memory_space<vmem>>, vector<1x8x128xf32>
    %296 = vector.shape_cast %295 : vector<1x8x128xf32> to vector<8x128xf32>
    %297 = arith.extui %294 : vector<8x1024xi1> to vector<8x1024xi32>
    %298 = arith.sitofp %297 : vector<8x1024xi32> to vector<8x1024xf32>
    %299 = vector.extract_strided_slice %298 {offsets = [0, 0], sizes = [8, 128], strides = [1, 1]} : vector<8x1024xf32> to vector<8x128xf32>
    %300 = vector.extract_strided_slice %298 {offsets = [0, 128], sizes = [8, 128], strides = [1, 1]} : vector<8x1024xf32> to vector<8x128xf32>
    %301 = arith.addf %299, %300 : vector<8x128xf32>
    %302 = vector.extract_strided_slice %298 {offsets = [0, 256], sizes = [8, 128], strides = [1, 1]} : vector<8x1024xf32> to vector<8x128xf32>
    %303 = arith.addf %301, %302 : vector<8x128xf32>
    %304 = vector.extract_strided_slice %298 {offsets = [0, 384], sizes = [8, 128], strides = [1, 1]} : vector<8x1024xf32> to vector<8x128xf32>
    %305 = arith.addf %303, %304 : vector<8x128xf32>
    %306 = vector.extract_strided_slice %298 {offsets = [0, 512], sizes = [8, 128], strides = [1, 1]} : vector<8x1024xf32> to vector<8x128xf32>
    %307 = arith.addf %305, %306 : vector<8x128xf32>
    %308 = vector.extract_strided_slice %298 {offsets = [0, 640], sizes = [8, 128], strides = [1, 1]} : vector<8x1024xf32> to vector<8x128xf32>
    %309 = arith.addf %307, %308 : vector<8x128xf32>
    %310 = vector.extract_strided_slice %298 {offsets = [0, 768], sizes = [8, 128], strides = [1, 1]} : vector<8x1024xf32> to vector<8x128xf32>
    %311 = arith.addf %309, %310 : vector<8x128xf32>
    %312 = vector.extract_strided_slice %298 {offsets = [0, 896], sizes = [8, 128], strides = [1, 1]} : vector<8x1024xf32> to vector<8x128xf32>
    %313 = arith.addf %311, %312 : vector<8x128xf32>
    %314 = arith.addf %296, %313 : vector<8x128xf32>
    %c5_85 = arith.constant 5 : index
    %c0_86 = arith.constant 0 : index
    %c0_87 = arith.constant 0 : index
    %315 = vector.load %arg5[%c5_85, %c0_86, %c0_87] : memref<10x8x128xf32, #tpu.memory_space<vmem>>, vector<1x8x128xf32>
    %316 = vector.shape_cast %315 : vector<1x8x128xf32> to vector<8x128xf32>
    %317 = vector.shape_cast %314 : vector<8x128xf32> to vector<1x8x128xf32>
    tpu.vector_store %arg5[%c5_85, %c0_86, %c0_87], %317 {strides = array<i32>} : memref<10x8x128xf32, #tpu.memory_space<vmem>>, vector<1x8x128xf32>,
    %c5_88 = arith.constant 5 : index
    %c0_89 = arith.constant 0 : index
    %c0_90 = arith.constant 0 : index
    %318 = vector.load %arg6[%c5_88, %c0_89, %c0_90] : memref<10x8x128xf32, #tpu.memory_space<vmem>>, vector<1x8x128xf32>
    %319 = vector.shape_cast %318 : vector<1x8x128xf32> to vector<8x128xf32>
    %cst_91 = arith.constant 0.000000e+00 : f32
    %320 = vector.broadcast %cst_91 : f32 to vector<8x1024xf32>
    %321 = arith.select %294, %45, %320 : vector<8x1024xi1>, vector<8x1024xf32>
    %322 = vector.extract_strided_slice %321 {offsets = [0, 0], sizes = [8, 128], strides = [1, 1]} : vector<8x1024xf32> to vector<8x128xf32>
    %323 = vector.extract_strided_slice %321 {offsets = [0, 128], sizes = [8, 128], strides = [1, 1]} : vector<8x1024xf32> to vector<8x128xf32>
    %324 = arith.addf %322, %323 : vector<8x128xf32>
    %325 = vector.extract_strided_slice %321 {offsets = [0, 256], sizes = [8, 128], strides = [1, 1]} : vector<8x1024xf32> to vector<8x128xf32>
    %326 = arith.addf %324, %325 : vector<8x128xf32>
    %327 = vector.extract_strided_slice %321 {offsets = [0, 384], sizes = [8, 128], strides = [1, 1]} : vector<8x1024xf32> to vector<8x128xf32>
    %328 = arith.addf %326, %327 : vector<8x128xf32>
    %329 = vector.extract_strided_slice %321 {offsets = [0, 512], sizes = [8, 128], strides = [1, 1]} : vector<8x1024xf32> to vector<8x128xf32>
    %330 = arith.addf %328, %329 : vector<8x128xf32>
    %331 = vector.extract_strided_slice %321 {offsets = [0, 640], sizes = [8, 128], strides = [1, 1]} : vector<8x1024xf32> to vector<8x128xf32>
    %332 = arith.addf %330, %331 : vector<8x128xf32>
    %333 = vector.extract_strided_slice %321 {offsets = [0, 768], sizes = [8, 128], strides = [1, 1]} : vector<8x1024xf32> to vector<8x128xf32>
    %334 = arith.addf %332, %333 : vector<8x128xf32>
    %335 = vector.extract_strided_slice %321 {offsets = [0, 896], sizes = [8, 128], strides = [1, 1]} : vector<8x1024xf32> to vector<8x128xf32>
    %336 = arith.addf %334, %335 : vector<8x128xf32>
    %337 = arith.addf %319, %336 : vector<8x128xf32>
    %c5_92 = arith.constant 5 : index
    %c0_93 = arith.constant 0 : index
    %c0_94 = arith.constant 0 : index
    %338 = vector.load %arg6[%c5_92, %c0_93, %c0_94] : memref<10x8x128xf32, #tpu.memory_space<vmem>>, vector<1x8x128xf32>
    %339 = vector.shape_cast %338 : vector<1x8x128xf32> to vector<8x128xf32>
    %340 = vector.shape_cast %337 : vector<8x128xf32> to vector<1x8x128xf32>
    tpu.vector_store %arg6[%c5_92, %c0_93, %c0_94], %340 {strides = array<i32>} : memref<10x8x128xf32, #tpu.memory_space<vmem>>, vector<1x8x128xf32>,
    %cst_95 = arith.constant 6.000000e+00 : f32
    %341 = vector.broadcast %cst_95 : f32 to vector<8x1024xf32>
    %342 = arith.cmpf oeq, %52, %341 : vector<8x1024xf32>
    %c6 = arith.constant 6 : index
    %c0_96 = arith.constant 0 : index
    %c0_97 = arith.constant 0 : index
    %343 = vector.load %arg5[%c6, %c0_96, %c0_97] : memref<10x8x128xf32, #tpu.memory_space<vmem>>, vector<1x8x128xf32>
    %344 = vector.shape_cast %343 : vector<1x8x128xf32> to vector<8x128xf32>
    %345 = arith.extui %342 : vector<8x1024xi1> to vector<8x1024xi32>
    %346 = arith.sitofp %345 : vector<8x1024xi32> to vector<8x1024xf32>
    %347 = vector.extract_strided_slice %346 {offsets = [0, 0], sizes = [8, 128], strides = [1, 1]} : vector<8x1024xf32> to vector<8x128xf32>
    %348 = vector.extract_strided_slice %346 {offsets = [0, 128], sizes = [8, 128], strides = [1, 1]} : vector<8x1024xf32> to vector<8x128xf32>
    %349 = arith.addf %347, %348 : vector<8x128xf32>
    %350 = vector.extract_strided_slice %346 {offsets = [0, 256], sizes = [8, 128], strides = [1, 1]} : vector<8x1024xf32> to vector<8x128xf32>
    %351 = arith.addf %349, %350 : vector<8x128xf32>
    %352 = vector.extract_strided_slice %346 {offsets = [0, 384], sizes = [8, 128], strides = [1, 1]} : vector<8x1024xf32> to vector<8x128xf32>
    %353 = arith.addf %351, %352 : vector<8x128xf32>
    %354 = vector.extract_strided_slice %346 {offsets = [0, 512], sizes = [8, 128], strides = [1, 1]} : vector<8x1024xf32> to vector<8x128xf32>
    %355 = arith.addf %353, %354 : vector<8x128xf32>
    %356 = vector.extract_strided_slice %346 {offsets = [0, 640], sizes = [8, 128], strides = [1, 1]} : vector<8x1024xf32> to vector<8x128xf32>
    %357 = arith.addf %355, %356 : vector<8x128xf32>
    %358 = vector.extract_strided_slice %346 {offsets = [0, 768], sizes = [8, 128], strides = [1, 1]} : vector<8x1024xf32> to vector<8x128xf32>
    %359 = arith.addf %357, %358 : vector<8x128xf32>
    %360 = vector.extract_strided_slice %346 {offsets = [0, 896], sizes = [8, 128], strides = [1, 1]} : vector<8x1024xf32> to vector<8x128xf32>
    %361 = arith.addf %359, %360 : vector<8x128xf32>
    %362 = arith.addf %344, %361 : vector<8x128xf32>
    %c6_98 = arith.constant 6 : index
    %c0_99 = arith.constant 0 : index
    %c0_100 = arith.constant 0 : index
    %363 = vector.load %arg5[%c6_98, %c0_99, %c0_100] : memref<10x8x128xf32, #tpu.memory_space<vmem>>, vector<1x8x128xf32>
    %364 = vector.shape_cast %363 : vector<1x8x128xf32> to vector<8x128xf32>
    %365 = vector.shape_cast %362 : vector<8x128xf32> to vector<1x8x128xf32>
    tpu.vector_store %arg5[%c6_98, %c0_99, %c0_100], %365 {strides = array<i32>} : memref<10x8x128xf32, #tpu.memory_space<vmem>>, vector<1x8x128xf32>,
    %c6_101 = arith.constant 6 : index
    %c0_102 = arith.constant 0 : index
    %c0_103 = arith.constant 0 : index
    %366 = vector.load %arg6[%c6_101, %c0_102, %c0_103] : memref<10x8x128xf32, #tpu.memory_space<vmem>>, vector<1x8x128xf32>
    %367 = vector.shape_cast %366 : vector<1x8x128xf32> to vector<8x128xf32>
    %cst_104 = arith.constant 0.000000e+00 : f32
    %368 = vector.broadcast %cst_104 : f32 to vector<8x1024xf32>
    %369 = arith.select %342, %45, %368 : vector<8x1024xi1>, vector<8x1024xf32>
    %370 = vector.extract_strided_slice %369 {offsets = [0, 0], sizes = [8, 128], strides = [1, 1]} : vector<8x1024xf32> to vector<8x128xf32>
    %371 = vector.extract_strided_slice %369 {offsets = [0, 128], sizes = [8, 128], strides = [1, 1]} : vector<8x1024xf32> to vector<8x128xf32>
    %372 = arith.addf %370, %371 : vector<8x128xf32>
    %373 = vector.extract_strided_slice %369 {offsets = [0, 256], sizes = [8, 128], strides = [1, 1]} : vector<8x1024xf32> to vector<8x128xf32>
    %374 = arith.addf %372, %373 : vector<8x128xf32>
    %375 = vector.extract_strided_slice %369 {offsets = [0, 384], sizes = [8, 128], strides = [1, 1]} : vector<8x1024xf32> to vector<8x128xf32>
    %376 = arith.addf %374, %375 : vector<8x128xf32>
    %377 = vector.extract_strided_slice %369 {offsets = [0, 512], sizes = [8, 128], strides = [1, 1]} : vector<8x1024xf32> to vector<8x128xf32>
    %378 = arith.addf %376, %377 : vector<8x128xf32>
    %379 = vector.extract_strided_slice %369 {offsets = [0, 640], sizes = [8, 128], strides = [1, 1]} : vector<8x1024xf32> to vector<8x128xf32>
    %380 = arith.addf %378, %379 : vector<8x128xf32>
    %381 = vector.extract_strided_slice %369 {offsets = [0, 768], sizes = [8, 128], strides = [1, 1]} : vector<8x1024xf32> to vector<8x128xf32>
    %382 = arith.addf %380, %381 : vector<8x128xf32>
    %383 = vector.extract_strided_slice %369 {offsets = [0, 896], sizes = [8, 128], strides = [1, 1]} : vector<8x1024xf32> to vector<8x128xf32>
    %384 = arith.addf %382, %383 : vector<8x128xf32>
    %385 = arith.addf %367, %384 : vector<8x128xf32>
    %c6_105 = arith.constant 6 : index
    %c0_106 = arith.constant 0 : index
    %c0_107 = arith.constant 0 : index
    %386 = vector.load %arg6[%c6_105, %c0_106, %c0_107] : memref<10x8x128xf32, #tpu.memory_space<vmem>>, vector<1x8x128xf32>
    %387 = vector.shape_cast %386 : vector<1x8x128xf32> to vector<8x128xf32>
    %388 = vector.shape_cast %385 : vector<8x128xf32> to vector<1x8x128xf32>
    tpu.vector_store %arg6[%c6_105, %c0_106, %c0_107], %388 {strides = array<i32>} : memref<10x8x128xf32, #tpu.memory_space<vmem>>, vector<1x8x128xf32>,
    %cst_108 = arith.constant 7.000000e+00 : f32
    %389 = vector.broadcast %cst_108 : f32 to vector<8x1024xf32>
    %390 = arith.cmpf oeq, %52, %389 : vector<8x1024xf32>
    %c7 = arith.constant 7 : index
    %c0_109 = arith.constant 0 : index
    %c0_110 = arith.constant 0 : index
    %391 = vector.load %arg5[%c7, %c0_109, %c0_110] : memref<10x8x128xf32, #tpu.memory_space<vmem>>, vector<1x8x128xf32>
    %392 = vector.shape_cast %391 : vector<1x8x128xf32> to vector<8x128xf32>
    %393 = arith.extui %390 : vector<8x1024xi1> to vector<8x1024xi32>
    %394 = arith.sitofp %393 : vector<8x1024xi32> to vector<8x1024xf32>
    %395 = vector.extract_strided_slice %394 {offsets = [0, 0], sizes = [8, 128], strides = [1, 1]} : vector<8x1024xf32> to vector<8x128xf32>
    %396 = vector.extract_strided_slice %394 {offsets = [0, 128], sizes = [8, 128], strides = [1, 1]} : vector<8x1024xf32> to vector<8x128xf32>
    %397 = arith.addf %395, %396 : vector<8x128xf32>
    %398 = vector.extract_strided_slice %394 {offsets = [0, 256], sizes = [8, 128], strides = [1, 1]} : vector<8x1024xf32> to vector<8x128xf32>
    %399 = arith.addf %397, %398 : vector<8x128xf32>
    %400 = vector.extract_strided_slice %394 {offsets = [0, 384], sizes = [8, 128], strides = [1, 1]} : vector<8x1024xf32> to vector<8x128xf32>
    %401 = arith.addf %399, %400 : vector<8x128xf32>
    %402 = vector.extract_strided_slice %394 {offsets = [0, 512], sizes = [8, 128], strides = [1, 1]} : vector<8x1024xf32> to vector<8x128xf32>
    %403 = arith.addf %401, %402 : vector<8x128xf32>
    %404 = vector.extract_strided_slice %394 {offsets = [0, 640], sizes = [8, 128], strides = [1, 1]} : vector<8x1024xf32> to vector<8x128xf32>
    %405 = arith.addf %403, %404 : vector<8x128xf32>
    %406 = vector.extract_strided_slice %394 {offsets = [0, 768], sizes = [8, 128], strides = [1, 1]} : vector<8x1024xf32> to vector<8x128xf32>
    %407 = arith.addf %405, %406 : vector<8x128xf32>
    %408 = vector.extract_strided_slice %394 {offsets = [0, 896], sizes = [8, 128], strides = [1, 1]} : vector<8x1024xf32> to vector<8x128xf32>
    %409 = arith.addf %407, %408 : vector<8x128xf32>
    %410 = arith.addf %392, %409 : vector<8x128xf32>
    %c7_111 = arith.constant 7 : index
    %c0_112 = arith.constant 0 : index
    %c0_113 = arith.constant 0 : index
    %411 = vector.load %arg5[%c7_111, %c0_112, %c0_113] : memref<10x8x128xf32, #tpu.memory_space<vmem>>, vector<1x8x128xf32>
    %412 = vector.shape_cast %411 : vector<1x8x128xf32> to vector<8x128xf32>
    %413 = vector.shape_cast %410 : vector<8x128xf32> to vector<1x8x128xf32>
    tpu.vector_store %arg5[%c7_111, %c0_112, %c0_113], %413 {strides = array<i32>} : memref<10x8x128xf32, #tpu.memory_space<vmem>>, vector<1x8x128xf32>,
    %c7_114 = arith.constant 7 : index
    %c0_115 = arith.constant 0 : index
    %c0_116 = arith.constant 0 : index
    %414 = vector.load %arg6[%c7_114, %c0_115, %c0_116] : memref<10x8x128xf32, #tpu.memory_space<vmem>>, vector<1x8x128xf32>
    %415 = vector.shape_cast %414 : vector<1x8x128xf32> to vector<8x128xf32>
    %cst_117 = arith.constant 0.000000e+00 : f32
    %416 = vector.broadcast %cst_117 : f32 to vector<8x1024xf32>
    %417 = arith.select %390, %45, %416 : vector<8x1024xi1>, vector<8x1024xf32>
    %418 = vector.extract_strided_slice %417 {offsets = [0, 0], sizes = [8, 128], strides = [1, 1]} : vector<8x1024xf32> to vector<8x128xf32>
    %419 = vector.extract_strided_slice %417 {offsets = [0, 128], sizes = [8, 128], strides = [1, 1]} : vector<8x1024xf32> to vector<8x128xf32>
    %420 = arith.addf %418, %419 : vector<8x128xf32>
    %421 = vector.extract_strided_slice %417 {offsets = [0, 256], sizes = [8, 128], strides = [1, 1]} : vector<8x1024xf32> to vector<8x128xf32>
    %422 = arith.addf %420, %421 : vector<8x128xf32>
    %423 = vector.extract_strided_slice %417 {offsets = [0, 384], sizes = [8, 128], strides = [1, 1]} : vector<8x1024xf32> to vector<8x128xf32>
    %424 = arith.addf %422, %423 : vector<8x128xf32>
    %425 = vector.extract_strided_slice %417 {offsets = [0, 512], sizes = [8, 128], strides = [1, 1]} : vector<8x1024xf32> to vector<8x128xf32>
    %426 = arith.addf %424, %425 : vector<8x128xf32>
    %427 = vector.extract_strided_slice %417 {offsets = [0, 640], sizes = [8, 128], strides = [1, 1]} : vector<8x1024xf32> to vector<8x128xf32>
    %428 = arith.addf %426, %427 : vector<8x128xf32>
    %429 = vector.extract_strided_slice %417 {offsets = [0, 768], sizes = [8, 128], strides = [1, 1]} : vector<8x1024xf32> to vector<8x128xf32>
    %430 = arith.addf %428, %429 : vector<8x128xf32>
    %431 = vector.extract_strided_slice %417 {offsets = [0, 896], sizes = [8, 128], strides = [1, 1]} : vector<8x1024xf32> to vector<8x128xf32>
    %432 = arith.addf %430, %431 : vector<8x128xf32>
    %433 = arith.addf %415, %432 : vector<8x128xf32>
    %c7_118 = arith.constant 7 : index
    %c0_119 = arith.constant 0 : index
    %c0_120 = arith.constant 0 : index
    %434 = vector.load %arg6[%c7_118, %c0_119, %c0_120] : memref<10x8x128xf32, #tpu.memory_space<vmem>>, vector<1x8x128xf32>
    %435 = vector.shape_cast %434 : vector<1x8x128xf32> to vector<8x128xf32>
    %436 = vector.shape_cast %433 : vector<8x128xf32> to vector<1x8x128xf32>
    tpu.vector_store %arg6[%c7_118, %c0_119, %c0_120], %436 {strides = array<i32>} : memref<10x8x128xf32, #tpu.memory_space<vmem>>, vector<1x8x128xf32>,
    %cst_121 = arith.constant 8.000000e+00 : f32
    %437 = vector.broadcast %cst_121 : f32 to vector<8x1024xf32>
    %438 = arith.cmpf oeq, %52, %437 : vector<8x1024xf32>
    %c8 = arith.constant 8 : index
    %c0_122 = arith.constant 0 : index
    %c0_123 = arith.constant 0 : index
    %439 = vector.load %arg5[%c8, %c0_122, %c0_123] : memref<10x8x128xf32, #tpu.memory_space<vmem>>, vector<1x8x128xf32>
    %440 = vector.shape_cast %439 : vector<1x8x128xf32> to vector<8x128xf32>
    %441 = arith.extui %438 : vector<8x1024xi1> to vector<8x1024xi32>
    %442 = arith.sitofp %441 : vector<8x1024xi32> to vector<8x1024xf32>
    %443 = vector.extract_strided_slice %442 {offsets = [0, 0], sizes = [8, 128], strides = [1, 1]} : vector<8x1024xf32> to vector<8x128xf32>
    %444 = vector.extract_strided_slice %442 {offsets = [0, 128], sizes = [8, 128], strides = [1, 1]} : vector<8x1024xf32> to vector<8x128xf32>
    %445 = arith.addf %443, %444 : vector<8x128xf32>
    %446 = vector.extract_strided_slice %442 {offsets = [0, 256], sizes = [8, 128], strides = [1, 1]} : vector<8x1024xf32> to vector<8x128xf32>
    %447 = arith.addf %445, %446 : vector<8x128xf32>
    %448 = vector.extract_strided_slice %442 {offsets = [0, 384], sizes = [8, 128], strides = [1, 1]} : vector<8x1024xf32> to vector<8x128xf32>
    %449 = arith.addf %447, %448 : vector<8x128xf32>
    %450 = vector.extract_strided_slice %442 {offsets = [0, 512], sizes = [8, 128], strides = [1, 1]} : vector<8x1024xf32> to vector<8x128xf32>
    %451 = arith.addf %449, %450 : vector<8x128xf32>
    %452 = vector.extract_strided_slice %442 {offsets = [0, 640], sizes = [8, 128], strides = [1, 1]} : vector<8x1024xf32> to vector<8x128xf32>
    %453 = arith.addf %451, %452 : vector<8x128xf32>
    %454 = vector.extract_strided_slice %442 {offsets = [0, 768], sizes = [8, 128], strides = [1, 1]} : vector<8x1024xf32> to vector<8x128xf32>
    %455 = arith.addf %453, %454 : vector<8x128xf32>
    %456 = vector.extract_strided_slice %442 {offsets = [0, 896], sizes = [8, 128], strides = [1, 1]} : vector<8x1024xf32> to vector<8x128xf32>
    %457 = arith.addf %455, %456 : vector<8x128xf32>
    %458 = arith.addf %440, %457 : vector<8x128xf32>
    %c8_124 = arith.constant 8 : index
    %c0_125 = arith.constant 0 : index
    %c0_126 = arith.constant 0 : index
    %459 = vector.load %arg5[%c8_124, %c0_125, %c0_126] : memref<10x8x128xf32, #tpu.memory_space<vmem>>, vector<1x8x128xf32>
    %460 = vector.shape_cast %459 : vector<1x8x128xf32> to vector<8x128xf32>
    %461 = vector.shape_cast %458 : vector<8x128xf32> to vector<1x8x128xf32>
    tpu.vector_store %arg5[%c8_124, %c0_125, %c0_126], %461 {strides = array<i32>} : memref<10x8x128xf32, #tpu.memory_space<vmem>>, vector<1x8x128xf32>,
    %c8_127 = arith.constant 8 : index
    %c0_128 = arith.constant 0 : index
    %c0_129 = arith.constant 0 : index
    %462 = vector.load %arg6[%c8_127, %c0_128, %c0_129] : memref<10x8x128xf32, #tpu.memory_space<vmem>>, vector<1x8x128xf32>
    %463 = vector.shape_cast %462 : vector<1x8x128xf32> to vector<8x128xf32>
    %cst_130 = arith.constant 0.000000e+00 : f32
    %464 = vector.broadcast %cst_130 : f32 to vector<8x1024xf32>
    %465 = arith.select %438, %45, %464 : vector<8x1024xi1>, vector<8x1024xf32>
    %466 = vector.extract_strided_slice %465 {offsets = [0, 0], sizes = [8, 128], strides = [1, 1]} : vector<8x1024xf32> to vector<8x128xf32>
    %467 = vector.extract_strided_slice %465 {offsets = [0, 128], sizes = [8, 128], strides = [1, 1]} : vector<8x1024xf32> to vector<8x128xf32>
    %468 = arith.addf %466, %467 : vector<8x128xf32>
    %469 = vector.extract_strided_slice %465 {offsets = [0, 256], sizes = [8, 128], strides = [1, 1]} : vector<8x1024xf32> to vector<8x128xf32>
    %470 = arith.addf %468, %469 : vector<8x128xf32>
    %471 = vector.extract_strided_slice %465 {offsets = [0, 384], sizes = [8, 128], strides = [1, 1]} : vector<8x1024xf32> to vector<8x128xf32>
    %472 = arith.addf %470, %471 : vector<8x128xf32>
    %473 = vector.extract_strided_slice %465 {offsets = [0, 512], sizes = [8, 128], strides = [1, 1]} : vector<8x1024xf32> to vector<8x128xf32>
    %474 = arith.addf %472, %473 : vector<8x128xf32>
    %475 = vector.extract_strided_slice %465 {offsets = [0, 640], sizes = [8, 128], strides = [1, 1]} : vector<8x1024xf32> to vector<8x128xf32>
    %476 = arith.addf %474, %475 : vector<8x128xf32>
    %477 = vector.extract_strided_slice %465 {offsets = [0, 768], sizes = [8, 128], strides = [1, 1]} : vector<8x1024xf32> to vector<8x128xf32>
    %478 = arith.addf %476, %477 : vector<8x128xf32>
    %479 = vector.extract_strided_slice %465 {offsets = [0, 896], sizes = [8, 128], strides = [1, 1]} : vector<8x1024xf32> to vector<8x128xf32>
    %480 = arith.addf %478, %479 : vector<8x128xf32>
    %481 = arith.addf %463, %480 : vector<8x128xf32>
    %c8_131 = arith.constant 8 : index
    %c0_132 = arith.constant 0 : index
    %c0_133 = arith.constant 0 : index
    %482 = vector.load %arg6[%c8_131, %c0_132, %c0_133] : memref<10x8x128xf32, #tpu.memory_space<vmem>>, vector<1x8x128xf32>
    %483 = vector.shape_cast %482 : vector<1x8x128xf32> to vector<8x128xf32>
    %484 = vector.shape_cast %481 : vector<8x128xf32> to vector<1x8x128xf32>
    tpu.vector_store %arg6[%c8_131, %c0_132, %c0_133], %484 {strides = array<i32>} : memref<10x8x128xf32, #tpu.memory_space<vmem>>, vector<1x8x128xf32>,
    %cst_134 = arith.constant 9.000000e+00 : f32
    %485 = vector.broadcast %cst_134 : f32 to vector<8x1024xf32>
    %486 = arith.cmpf oeq, %52, %485 : vector<8x1024xf32>
    %c9 = arith.constant 9 : index
    %c0_135 = arith.constant 0 : index
    %c0_136 = arith.constant 0 : index
    %487 = vector.load %arg5[%c9, %c0_135, %c0_136] : memref<10x8x128xf32, #tpu.memory_space<vmem>>, vector<1x8x128xf32>
    %488 = vector.shape_cast %487 : vector<1x8x128xf32> to vector<8x128xf32>
    %489 = arith.extui %486 : vector<8x1024xi1> to vector<8x1024xi32>
    %490 = arith.sitofp %489 : vector<8x1024xi32> to vector<8x1024xf32>
    %491 = vector.extract_strided_slice %490 {offsets = [0, 0], sizes = [8, 128], strides = [1, 1]} : vector<8x1024xf32> to vector<8x128xf32>
    %492 = vector.extract_strided_slice %490 {offsets = [0, 128], sizes = [8, 128], strides = [1, 1]} : vector<8x1024xf32> to vector<8x128xf32>
    %493 = arith.addf %491, %492 : vector<8x128xf32>
    %494 = vector.extract_strided_slice %490 {offsets = [0, 256], sizes = [8, 128], strides = [1, 1]} : vector<8x1024xf32> to vector<8x128xf32>
    %495 = arith.addf %493, %494 : vector<8x128xf32>
    %496 = vector.extract_strided_slice %490 {offsets = [0, 384], sizes = [8, 128], strides = [1, 1]} : vector<8x1024xf32> to vector<8x128xf32>
    %497 = arith.addf %495, %496 : vector<8x128xf32>
    %498 = vector.extract_strided_slice %490 {offsets = [0, 512], sizes = [8, 128], strides = [1, 1]} : vector<8x1024xf32> to vector<8x128xf32>
    %499 = arith.addf %497, %498 : vector<8x128xf32>
    %500 = vector.extract_strided_slice %490 {offsets = [0, 640], sizes = [8, 128], strides = [1, 1]} : vector<8x1024xf32> to vector<8x128xf32>
    %501 = arith.addf %499, %500 : vector<8x128xf32>
    %502 = vector.extract_strided_slice %490 {offsets = [0, 768], sizes = [8, 128], strides = [1, 1]} : vector<8x1024xf32> to vector<8x128xf32>
    %503 = arith.addf %501, %502 : vector<8x128xf32>
    %504 = vector.extract_strided_slice %490 {offsets = [0, 896], sizes = [8, 128], strides = [1, 1]} : vector<8x1024xf32> to vector<8x128xf32>
    %505 = arith.addf %503, %504 : vector<8x128xf32>
    %506 = arith.addf %488, %505 : vector<8x128xf32>
    %c9_137 = arith.constant 9 : index
    %c0_138 = arith.constant 0 : index
    %c0_139 = arith.constant 0 : index
    %507 = vector.load %arg5[%c9_137, %c0_138, %c0_139] : memref<10x8x128xf32, #tpu.memory_space<vmem>>, vector<1x8x128xf32>
    %508 = vector.shape_cast %507 : vector<1x8x128xf32> to vector<8x128xf32>
    %509 = vector.shape_cast %506 : vector<8x128xf32> to vector<1x8x128xf32>
    tpu.vector_store %arg5[%c9_137, %c0_138, %c0_139], %509 {strides = array<i32>} : memref<10x8x128xf32, #tpu.memory_space<vmem>>, vector<1x8x128xf32>,
    %c9_140 = arith.constant 9 : index
    %c0_141 = arith.constant 0 : index
    %c0_142 = arith.constant 0 : index
    %510 = vector.load %arg6[%c9_140, %c0_141, %c0_142] : memref<10x8x128xf32, #tpu.memory_space<vmem>>, vector<1x8x128xf32>
    %511 = vector.shape_cast %510 : vector<1x8x128xf32> to vector<8x128xf32>
    %cst_143 = arith.constant 0.000000e+00 : f32
    %512 = vector.broadcast %cst_143 : f32 to vector<8x1024xf32>
    %513 = arith.select %486, %45, %512 : vector<8x1024xi1>, vector<8x1024xf32>
    %514 = vector.extract_strided_slice %513 {offsets = [0, 0], sizes = [8, 128], strides = [1, 1]} : vector<8x1024xf32> to vector<8x128xf32>
    %515 = vector.extract_strided_slice %513 {offsets = [0, 128], sizes = [8, 128], strides = [1, 1]} : vector<8x1024xf32> to vector<8x128xf32>
    %516 = arith.addf %514, %515 : vector<8x128xf32>
    %517 = vector.extract_strided_slice %513 {offsets = [0, 256], sizes = [8, 128], strides = [1, 1]} : vector<8x1024xf32> to vector<8x128xf32>
    %518 = arith.addf %516, %517 : vector<8x128xf32>
    %519 = vector.extract_strided_slice %513 {offsets = [0, 384], sizes = [8, 128], strides = [1, 1]} : vector<8x1024xf32> to vector<8x128xf32>
    %520 = arith.addf %518, %519 : vector<8x128xf32>
    %521 = vector.extract_strided_slice %513 {offsets = [0, 512], sizes = [8, 128], strides = [1, 1]} : vector<8x1024xf32> to vector<8x128xf32>
    %522 = arith.addf %520, %521 : vector<8x128xf32>
    %523 = vector.extract_strided_slice %513 {offsets = [0, 640], sizes = [8, 128], strides = [1, 1]} : vector<8x1024xf32> to vector<8x128xf32>
    %524 = arith.addf %522, %523 : vector<8x128xf32>
    %525 = vector.extract_strided_slice %513 {offsets = [0, 768], sizes = [8, 128], strides = [1, 1]} : vector<8x1024xf32> to vector<8x128xf32>
    %526 = arith.addf %524, %525 : vector<8x128xf32>
    %527 = vector.extract_strided_slice %513 {offsets = [0, 896], sizes = [8, 128], strides = [1, 1]} : vector<8x1024xf32> to vector<8x128xf32>
    %528 = arith.addf %526, %527 : vector<8x128xf32>
    %529 = arith.addf %511, %528 : vector<8x128xf32>
    %c9_144 = arith.constant 9 : index
    %c0_145 = arith.constant 0 : index
    %c0_146 = arith.constant 0 : index
    %530 = vector.load %arg6[%c9_144, %c0_145, %c0_146] : memref<10x8x128xf32, #tpu.memory_space<vmem>>, vector<1x8x128xf32>
    %531 = vector.shape_cast %530 : vector<1x8x128xf32> to vector<8x128xf32>
    %532 = vector.shape_cast %529 : vector<8x128xf32> to vector<1x8x128xf32>
    tpu.vector_store %arg6[%c9_144, %c0_145, %c0_146], %532 {strides = array<i32>} : memref<10x8x128xf32, #tpu.memory_space<vmem>>, vector<1x8x128xf32>,
    %c1_i32_147 = arith.constant 1 : i32
    %c0_i32_148 = arith.constant 0 : i32
    %533 = arith.cmpi eq, %arg0, %c0_i32_148 : i32
    %534 = arith.extui %533 : i1 to i32
    %c0_i32_149 = arith.constant 0 : i32
    %535 = arith.cmpi ne, %534, %c0_i32_149 : i32
    scf.if %535 {
      %c0_150 = arith.constant 0 : index
      %c0_151 = arith.constant 0 : index
      %c0_152 = arith.constant 0 : index
      %536 = vector.load %arg5[%c0_150, %c0_151, %c0_152] : memref<10x8x128xf32, #tpu.memory_space<vmem>>, vector<1x8x128xf32>
      %537 = vector.shape_cast %536 : vector<1x8x128xf32> to vector<8x128xf32>
      %538 = vector.shape_cast %537 : vector<8x128xf32> to vector<1x8x128xf32>
      %cst_153 = arith.constant dense<0.000000e+00> : vector<1xf32>
      %539 = vector.multi_reduction <add>, %538, %cst_153 [1, 2] : vector<1x8x128xf32> to vector<1xf32>
      %540 = vector.shape_cast %539 : vector<1xf32> to vector<1x1x1xf32>
      %541 = vector.extract %540[0, 0, 0] : f32 from vector<1x1x1xf32>
      %c0_154 = arith.constant 0 : index
      %c0_155 = arith.constant 0 : index
      %c0_156 = arith.constant 0 : index
      %542 = vector.load %arg6[%c0_154, %c0_155, %c0_156] : memref<10x8x128xf32, #tpu.memory_space<vmem>>, vector<1x8x128xf32>
      %543 = vector.shape_cast %542 : vector<1x8x128xf32> to vector<8x128xf32>
      %544 = vector.shape_cast %543 : vector<8x128xf32> to vector<1x8x128xf32>
      %cst_157 = arith.constant dense<0.000000e+00> : vector<1xf32>
      %545 = vector.multi_reduction <add>, %544, %cst_157 [1, 2] : vector<1x8x128xf32> to vector<1xf32>
      %546 = vector.shape_cast %545 : vector<1xf32> to vector<1x1x1xf32>
      %547 = vector.extract %546[0, 0, 0] : f32 from vector<1x1x1xf32>
      %cst_158 = arith.constant 0.000000e+00 : f32
      %548 = arith.addf %cst_158, %541 : f32
      %cst_159 = arith.constant 5.000000e-01 : f32
      %549 = arith.cmpf ogt, %541, %cst_159 : f32
      %cst_160 = arith.constant 1.000000e+00 : f32
      %cst_161 = arith.constant 0.000000e+00 : f32
      %550 = arith.select %549, %cst_160, %cst_161 : f32
      %cst_162 = arith.constant 0.000000e+00 : f32
      %551 = arith.addf %cst_162, %550 : f32
      %cst_163 = arith.constant 1.000000e+00 : f32
      %552 = arith.maximumf %541, %cst_163 : f32
      %553 = arith.divf %547, %552 : f32
      %cst_164 = arith.constant 0.000000e+00 : f32
      %554 = arith.select %549, %553, %cst_164 : f32
      %cst_165 = arith.constant 0.000000e+00 : f32
      %555 = arith.addf %cst_165, %554 : f32
      %c1_166 = arith.constant 1 : index
      %c0_167 = arith.constant 0 : index
      %c0_168 = arith.constant 0 : index
      %556 = vector.load %arg5[%c1_166, %c0_167, %c0_168] : memref<10x8x128xf32, #tpu.memory_space<vmem>>, vector<1x8x128xf32>
      %557 = vector.shape_cast %556 : vector<1x8x128xf32> to vector<8x128xf32>
      %558 = vector.shape_cast %557 : vector<8x128xf32> to vector<1x8x128xf32>
      %cst_169 = arith.constant dense<0.000000e+00> : vector<1xf32>
      %559 = vector.multi_reduction <add>, %558, %cst_169 [1, 2] : vector<1x8x128xf32> to vector<1xf32>
      %560 = vector.shape_cast %559 : vector<1xf32> to vector<1x1x1xf32>
      %561 = vector.extract %560[0, 0, 0] : f32 from vector<1x1x1xf32>
      %c1_170 = arith.constant 1 : index
      %c0_171 = arith.constant 0 : index
      %c0_172 = arith.constant 0 : index
      %562 = vector.load %arg6[%c1_170, %c0_171, %c0_172] : memref<10x8x128xf32, #tpu.memory_space<vmem>>, vector<1x8x128xf32>
      %563 = vector.shape_cast %562 : vector<1x8x128xf32> to vector<8x128xf32>
      %564 = vector.shape_cast %563 : vector<8x128xf32> to vector<1x8x128xf32>
      %cst_173 = arith.constant dense<0.000000e+00> : vector<1xf32>
      %565 = vector.multi_reduction <add>, %564, %cst_173 [1, 2] : vector<1x8x128xf32> to vector<1xf32>
      %566 = vector.shape_cast %565 : vector<1xf32> to vector<1x1x1xf32>
      %567 = vector.extract %566[0, 0, 0] : f32 from vector<1x1x1xf32>
      %568 = arith.addf %548, %561 : f32
      %cst_174 = arith.constant 5.000000e-01 : f32
      %569 = arith.cmpf ogt, %561, %cst_174 : f32
      %cst_175 = arith.constant 1.000000e+00 : f32
      %cst_176 = arith.constant 0.000000e+00 : f32
      %570 = arith.select %569, %cst_175, %cst_176 : f32
      %571 = arith.addf %551, %570 : f32
      %cst_177 = arith.constant 1.000000e+00 : f32
      %572 = arith.maximumf %561, %cst_177 : f32
      %573 = arith.divf %567, %572 : f32
      %cst_178 = arith.constant 0.000000e+00 : f32
      %574 = arith.select %569, %573, %cst_178 : f32
      %575 = arith.addf %555, %574 : f32
      %c2_179 = arith.constant 2 : index
      %c0_180 = arith.constant 0 : index
      %c0_181 = arith.constant 0 : index
      %576 = vector.load %arg5[%c2_179, %c0_180, %c0_181] : memref<10x8x128xf32, #tpu.memory_space<vmem>>, vector<1x8x128xf32>
      %577 = vector.shape_cast %576 : vector<1x8x128xf32> to vector<8x128xf32>
      %578 = vector.shape_cast %577 : vector<8x128xf32> to vector<1x8x128xf32>
      %cst_182 = arith.constant dense<0.000000e+00> : vector<1xf32>
      %579 = vector.multi_reduction <add>, %578, %cst_182 [1, 2] : vector<1x8x128xf32> to vector<1xf32>
      %580 = vector.shape_cast %579 : vector<1xf32> to vector<1x1x1xf32>
      %581 = vector.extract %580[0, 0, 0] : f32 from vector<1x1x1xf32>
      %c2_183 = arith.constant 2 : index
      %c0_184 = arith.constant 0 : index
      %c0_185 = arith.constant 0 : index
      %582 = vector.load %arg6[%c2_183, %c0_184, %c0_185] : memref<10x8x128xf32, #tpu.memory_space<vmem>>, vector<1x8x128xf32>
      %583 = vector.shape_cast %582 : vector<1x8x128xf32> to vector<8x128xf32>
      %584 = vector.shape_cast %583 : vector<8x128xf32> to vector<1x8x128xf32>
      %cst_186 = arith.constant dense<0.000000e+00> : vector<1xf32>
      %585 = vector.multi_reduction <add>, %584, %cst_186 [1, 2] : vector<1x8x128xf32> to vector<1xf32>
      %586 = vector.shape_cast %585 : vector<1xf32> to vector<1x1x1xf32>
      %587 = vector.extract %586[0, 0, 0] : f32 from vector<1x1x1xf32>
      %588 = arith.addf %568, %581 : f32
      %cst_187 = arith.constant 5.000000e-01 : f32
      %589 = arith.cmpf ogt, %581, %cst_187 : f32
      %cst_188 = arith.constant 1.000000e+00 : f32
      %cst_189 = arith.constant 0.000000e+00 : f32
      %590 = arith.select %589, %cst_188, %cst_189 : f32
      %591 = arith.addf %571, %590 : f32
      %cst_190 = arith.constant 1.000000e+00 : f32
      %592 = arith.maximumf %581, %cst_190 : f32
      %593 = arith.divf %587, %592 : f32
      %cst_191 = arith.constant 0.000000e+00 : f32
      %594 = arith.select %589, %593, %cst_191 : f32
      %595 = arith.addf %575, %594 : f32
      %c3_192 = arith.constant 3 : index
      %c0_193 = arith.constant 0 : index
      %c0_194 = arith.constant 0 : index
      %596 = vector.load %arg5[%c3_192, %c0_193, %c0_194] : memref<10x8x128xf32, #tpu.memory_space<vmem>>, vector<1x8x128xf32>
      %597 = vector.shape_cast %596 : vector<1x8x128xf32> to vector<8x128xf32>
      %598 = vector.shape_cast %597 : vector<8x128xf32> to vector<1x8x128xf32>
      %cst_195 = arith.constant dense<0.000000e+00> : vector<1xf32>
      %599 = vector.multi_reduction <add>, %598, %cst_195 [1, 2] : vector<1x8x128xf32> to vector<1xf32>
      %600 = vector.shape_cast %599 : vector<1xf32> to vector<1x1x1xf32>
      %601 = vector.extract %600[0, 0, 0] : f32 from vector<1x1x1xf32>
      %c3_196 = arith.constant 3 : index
      %c0_197 = arith.constant 0 : index
      %c0_198 = arith.constant 0 : index
      %602 = vector.load %arg6[%c3_196, %c0_197, %c0_198] : memref<10x8x128xf32, #tpu.memory_space<vmem>>, vector<1x8x128xf32>
      %603 = vector.shape_cast %602 : vector<1x8x128xf32> to vector<8x128xf32>
      %604 = vector.shape_cast %603 : vector<8x128xf32> to vector<1x8x128xf32>
      %cst_199 = arith.constant dense<0.000000e+00> : vector<1xf32>
      %605 = vector.multi_reduction <add>, %604, %cst_199 [1, 2] : vector<1x8x128xf32> to vector<1xf32>
      %606 = vector.shape_cast %605 : vector<1xf32> to vector<1x1x1xf32>
      %607 = vector.extract %606[0, 0, 0] : f32 from vector<1x1x1xf32>
      %608 = arith.addf %588, %601 : f32
      %cst_200 = arith.constant 5.000000e-01 : f32
      %609 = arith.cmpf ogt, %601, %cst_200 : f32
      %cst_201 = arith.constant 1.000000e+00 : f32
      %cst_202 = arith.constant 0.000000e+00 : f32
      %610 = arith.select %609, %cst_201, %cst_202 : f32
      %611 = arith.addf %591, %610 : f32
      %cst_203 = arith.constant 1.000000e+00 : f32
      %612 = arith.maximumf %601, %cst_203 : f32
      %613 = arith.divf %607, %612 : f32
      %cst_204 = arith.constant 0.000000e+00 : f32
      %614 = arith.select %609, %613, %cst_204 : f32
      %615 = arith.addf %595, %614 : f32
      %c4_205 = arith.constant 4 : index
      %c0_206 = arith.constant 0 : index
      %c0_207 = arith.constant 0 : index
      %616 = vector.load %arg5[%c4_205, %c0_206, %c0_207] : memref<10x8x128xf32, #tpu.memory_space<vmem>>, vector<1x8x128xf32>
      %617 = vector.shape_cast %616 : vector<1x8x128xf32> to vector<8x128xf32>
      %618 = vector.shape_cast %617 : vector<8x128xf32> to vector<1x8x128xf32>
      %cst_208 = arith.constant dense<0.000000e+00> : vector<1xf32>
      %619 = vector.multi_reduction <add>, %618, %cst_208 [1, 2] : vector<1x8x128xf32> to vector<1xf32>
      %620 = vector.shape_cast %619 : vector<1xf32> to vector<1x1x1xf32>
      %621 = vector.extract %620[0, 0, 0] : f32 from vector<1x1x1xf32>
      %c4_209 = arith.constant 4 : index
      %c0_210 = arith.constant 0 : index
      %c0_211 = arith.constant 0 : index
      %622 = vector.load %arg6[%c4_209, %c0_210, %c0_211] : memref<10x8x128xf32, #tpu.memory_space<vmem>>, vector<1x8x128xf32>
      %623 = vector.shape_cast %622 : vector<1x8x128xf32> to vector<8x128xf32>
      %624 = vector.shape_cast %623 : vector<8x128xf32> to vector<1x8x128xf32>
      %cst_212 = arith.constant dense<0.000000e+00> : vector<1xf32>
      %625 = vector.multi_reduction <add>, %624, %cst_212 [1, 2] : vector<1x8x128xf32> to vector<1xf32>
      %626 = vector.shape_cast %625 : vector<1xf32> to vector<1x1x1xf32>
      %627 = vector.extract %626[0, 0, 0] : f32 from vector<1x1x1xf32>
      %628 = arith.addf %608, %621 : f32
      %cst_213 = arith.constant 5.000000e-01 : f32
      %629 = arith.cmpf ogt, %621, %cst_213 : f32
      %cst_214 = arith.constant 1.000000e+00 : f32
      %cst_215 = arith.constant 0.000000e+00 : f32
      %630 = arith.select %629, %cst_214, %cst_215 : f32
      %631 = arith.addf %611, %630 : f32
      %cst_216 = arith.constant 1.000000e+00 : f32
      %632 = arith.maximumf %621, %cst_216 : f32
      %633 = arith.divf %627, %632 : f32
      %cst_217 = arith.constant 0.000000e+00 : f32
      %634 = arith.select %629, %633, %cst_217 : f32
      %635 = arith.addf %615, %634 : f32
      %c5_218 = arith.constant 5 : index
      %c0_219 = arith.constant 0 : index
      %c0_220 = arith.constant 0 : index
      %636 = vector.load %arg5[%c5_218, %c0_219, %c0_220] : memref<10x8x128xf32, #tpu.memory_space<vmem>>, vector<1x8x128xf32>
      %637 = vector.shape_cast %636 : vector<1x8x128xf32> to vector<8x128xf32>
      %638 = vector.shape_cast %637 : vector<8x128xf32> to vector<1x8x128xf32>
      %cst_221 = arith.constant dense<0.000000e+00> : vector<1xf32>
      %639 = vector.multi_reduction <add>, %638, %cst_221 [1, 2] : vector<1x8x128xf32> to vector<1xf32>
      %640 = vector.shape_cast %639 : vector<1xf32> to vector<1x1x1xf32>
      %641 = vector.extract %640[0, 0, 0] : f32 from vector<1x1x1xf32>
      %c5_222 = arith.constant 5 : index
      %c0_223 = arith.constant 0 : index
      %c0_224 = arith.constant 0 : index
      %642 = vector.load %arg6[%c5_222, %c0_223, %c0_224] : memref<10x8x128xf32, #tpu.memory_space<vmem>>, vector<1x8x128xf32>
      %643 = vector.shape_cast %642 : vector<1x8x128xf32> to vector<8x128xf32>
      %644 = vector.shape_cast %643 : vector<8x128xf32> to vector<1x8x128xf32>
      %cst_225 = arith.constant dense<0.000000e+00> : vector<1xf32>
      %645 = vector.multi_reduction <add>, %644, %cst_225 [1, 2] : vector<1x8x128xf32> to vector<1xf32>
      %646 = vector.shape_cast %645 : vector<1xf32> to vector<1x1x1xf32>
      %647 = vector.extract %646[0, 0, 0] : f32 from vector<1x1x1xf32>
      %648 = arith.addf %628, %641 : f32
      %cst_226 = arith.constant 5.000000e-01 : f32
      %649 = arith.cmpf ogt, %641, %cst_226 : f32
      %cst_227 = arith.constant 1.000000e+00 : f32
      %cst_228 = arith.constant 0.000000e+00 : f32
      %650 = arith.select %649, %cst_227, %cst_228 : f32
      %651 = arith.addf %631, %650 : f32
      %cst_229 = arith.constant 1.000000e+00 : f32
      %652 = arith.maximumf %641, %cst_229 : f32
      %653 = arith.divf %647, %652 : f32
      %cst_230 = arith.constant 0.000000e+00 : f32
      %654 = arith.select %649, %653, %cst_230 : f32
      %655 = arith.addf %635, %654 : f32
      %c6_231 = arith.constant 6 : index
      %c0_232 = arith.constant 0 : index
      %c0_233 = arith.constant 0 : index
      %656 = vector.load %arg5[%c6_231, %c0_232, %c0_233] : memref<10x8x128xf32, #tpu.memory_space<vmem>>, vector<1x8x128xf32>
      %657 = vector.shape_cast %656 : vector<1x8x128xf32> to vector<8x128xf32>
      %658 = vector.shape_cast %657 : vector<8x128xf32> to vector<1x8x128xf32>
      %cst_234 = arith.constant dense<0.000000e+00> : vector<1xf32>
      %659 = vector.multi_reduction <add>, %658, %cst_234 [1, 2] : vector<1x8x128xf32> to vector<1xf32>
      %660 = vector.shape_cast %659 : vector<1xf32> to vector<1x1x1xf32>
      %661 = vector.extract %660[0, 0, 0] : f32 from vector<1x1x1xf32>
      %c6_235 = arith.constant 6 : index
      %c0_236 = arith.constant 0 : index
      %c0_237 = arith.constant 0 : index
      %662 = vector.load %arg6[%c6_235, %c0_236, %c0_237] : memref<10x8x128xf32, #tpu.memory_space<vmem>>, vector<1x8x128xf32>
      %663 = vector.shape_cast %662 : vector<1x8x128xf32> to vector<8x128xf32>
      %664 = vector.shape_cast %663 : vector<8x128xf32> to vector<1x8x128xf32>
      %cst_238 = arith.constant dense<0.000000e+00> : vector<1xf32>
      %665 = vector.multi_reduction <add>, %664, %cst_238 [1, 2] : vector<1x8x128xf32> to vector<1xf32>
      %666 = vector.shape_cast %665 : vector<1xf32> to vector<1x1x1xf32>
      %667 = vector.extract %666[0, 0, 0] : f32 from vector<1x1x1xf32>
      %668 = arith.addf %648, %661 : f32
      %cst_239 = arith.constant 5.000000e-01 : f32
      %669 = arith.cmpf ogt, %661, %cst_239 : f32
      %cst_240 = arith.constant 1.000000e+00 : f32
      %cst_241 = arith.constant 0.000000e+00 : f32
      %670 = arith.select %669, %cst_240, %cst_241 : f32
      %671 = arith.addf %651, %670 : f32
      %cst_242 = arith.constant 1.000000e+00 : f32
      %672 = arith.maximumf %661, %cst_242 : f32
      %673 = arith.divf %667, %672 : f32
      %cst_243 = arith.constant 0.000000e+00 : f32
      %674 = arith.select %669, %673, %cst_243 : f32
      %675 = arith.addf %655, %674 : f32
      %c7_244 = arith.constant 7 : index
      %c0_245 = arith.constant 0 : index
      %c0_246 = arith.constant 0 : index
      %676 = vector.load %arg5[%c7_244, %c0_245, %c0_246] : memref<10x8x128xf32, #tpu.memory_space<vmem>>, vector<1x8x128xf32>
      %677 = vector.shape_cast %676 : vector<1x8x128xf32> to vector<8x128xf32>
      %678 = vector.shape_cast %677 : vector<8x128xf32> to vector<1x8x128xf32>
      %cst_247 = arith.constant dense<0.000000e+00> : vector<1xf32>
      %679 = vector.multi_reduction <add>, %678, %cst_247 [1, 2] : vector<1x8x128xf32> to vector<1xf32>
      %680 = vector.shape_cast %679 : vector<1xf32> to vector<1x1x1xf32>
      %681 = vector.extract %680[0, 0, 0] : f32 from vector<1x1x1xf32>
      %c7_248 = arith.constant 7 : index
      %c0_249 = arith.constant 0 : index
      %c0_250 = arith.constant 0 : index
      %682 = vector.load %arg6[%c7_248, %c0_249, %c0_250] : memref<10x8x128xf32, #tpu.memory_space<vmem>>, vector<1x8x128xf32>
      %683 = vector.shape_cast %682 : vector<1x8x128xf32> to vector<8x128xf32>
      %684 = vector.shape_cast %683 : vector<8x128xf32> to vector<1x8x128xf32>
      %cst_251 = arith.constant dense<0.000000e+00> : vector<1xf32>
      %685 = vector.multi_reduction <add>, %684, %cst_251 [1, 2] : vector<1x8x128xf32> to vector<1xf32>
      %686 = vector.shape_cast %685 : vector<1xf32> to vector<1x1x1xf32>
      %687 = vector.extract %686[0, 0, 0] : f32 from vector<1x1x1xf32>
      %688 = arith.addf %668, %681 : f32
      %cst_252 = arith.constant 5.000000e-01 : f32
      %689 = arith.cmpf ogt, %681, %cst_252 : f32
      %cst_253 = arith.constant 1.000000e+00 : f32
      %cst_254 = arith.constant 0.000000e+00 : f32
      %690 = arith.select %689, %cst_253, %cst_254 : f32
      %691 = arith.addf %671, %690 : f32
      %cst_255 = arith.constant 1.000000e+00 : f32
      %692 = arith.maximumf %681, %cst_255 : f32
      %693 = arith.divf %687, %692 : f32
      %cst_256 = arith.constant 0.000000e+00 : f32
      %694 = arith.select %689, %693, %cst_256 : f32
      %695 = arith.addf %675, %694 : f32
      %c8_257 = arith.constant 8 : index
      %c0_258 = arith.constant 0 : index
      %c0_259 = arith.constant 0 : index
      %696 = vector.load %arg5[%c8_257, %c0_258, %c0_259] : memref<10x8x128xf32, #tpu.memory_space<vmem>>, vector<1x8x128xf32>
      %697 = vector.shape_cast %696 : vector<1x8x128xf32> to vector<8x128xf32>
      %698 = vector.shape_cast %697 : vector<8x128xf32> to vector<1x8x128xf32>
      %cst_260 = arith.constant dense<0.000000e+00> : vector<1xf32>
      %699 = vector.multi_reduction <add>, %698, %cst_260 [1, 2] : vector<1x8x128xf32> to vector<1xf32>
      %700 = vector.shape_cast %699 : vector<1xf32> to vector<1x1x1xf32>
      %701 = vector.extract %700[0, 0, 0] : f32 from vector<1x1x1xf32>
      %c8_261 = arith.constant 8 : index
      %c0_262 = arith.constant 0 : index
      %c0_263 = arith.constant 0 : index
      %702 = vector.load %arg6[%c8_261, %c0_262, %c0_263] : memref<10x8x128xf32, #tpu.memory_space<vmem>>, vector<1x8x128xf32>
      %703 = vector.shape_cast %702 : vector<1x8x128xf32> to vector<8x128xf32>
      %704 = vector.shape_cast %703 : vector<8x128xf32> to vector<1x8x128xf32>
      %cst_264 = arith.constant dense<0.000000e+00> : vector<1xf32>
      %705 = vector.multi_reduction <add>, %704, %cst_264 [1, 2] : vector<1x8x128xf32> to vector<1xf32>
      %706 = vector.shape_cast %705 : vector<1xf32> to vector<1x1x1xf32>
      %707 = vector.extract %706[0, 0, 0] : f32 from vector<1x1x1xf32>
      %708 = arith.addf %688, %701 : f32
      %cst_265 = arith.constant 5.000000e-01 : f32
      %709 = arith.cmpf ogt, %701, %cst_265 : f32
      %cst_266 = arith.constant 1.000000e+00 : f32
      %cst_267 = arith.constant 0.000000e+00 : f32
      %710 = arith.select %709, %cst_266, %cst_267 : f32
      %711 = arith.addf %691, %710 : f32
      %cst_268 = arith.constant 1.000000e+00 : f32
      %712 = arith.maximumf %701, %cst_268 : f32
      %713 = arith.divf %707, %712 : f32
      %cst_269 = arith.constant 0.000000e+00 : f32
      %714 = arith.select %709, %713, %cst_269 : f32
      %715 = arith.addf %695, %714 : f32
      %c9_270 = arith.constant 9 : index
      %c0_271 = arith.constant 0 : index
      %c0_272 = arith.constant 0 : index
      %716 = vector.load %arg5[%c9_270, %c0_271, %c0_272] : memref<10x8x128xf32, #tpu.memory_space<vmem>>, vector<1x8x128xf32>
      %717 = vector.shape_cast %716 : vector<1x8x128xf32> to vector<8x128xf32>
      %718 = vector.shape_cast %717 : vector<8x128xf32> to vector<1x8x128xf32>
      %cst_273 = arith.constant dense<0.000000e+00> : vector<1xf32>
      %719 = vector.multi_reduction <add>, %718, %cst_273 [1, 2] : vector<1x8x128xf32> to vector<1xf32>
      %720 = vector.shape_cast %719 : vector<1xf32> to vector<1x1x1xf32>
      %721 = vector.extract %720[0, 0, 0] : f32 from vector<1x1x1xf32>
      %c9_274 = arith.constant 9 : index
      %c0_275 = arith.constant 0 : index
      %c0_276 = arith.constant 0 : index
      %722 = vector.load %arg6[%c9_274, %c0_275, %c0_276] : memref<10x8x128xf32, #tpu.memory_space<vmem>>, vector<1x8x128xf32>
      %723 = vector.shape_cast %722 : vector<1x8x128xf32> to vector<8x128xf32>
      %724 = vector.shape_cast %723 : vector<8x128xf32> to vector<1x8x128xf32>
      %cst_277 = arith.constant dense<0.000000e+00> : vector<1xf32>
      %725 = vector.multi_reduction <add>, %724, %cst_277 [1, 2] : vector<1x8x128xf32> to vector<1xf32>
      %726 = vector.shape_cast %725 : vector<1xf32> to vector<1x1x1xf32>
      %727 = vector.extract %726[0, 0, 0] : f32 from vector<1x1x1xf32>
      %728 = arith.addf %708, %721 : f32
      %cst_278 = arith.constant 5.000000e-01 : f32
      %729 = arith.cmpf ogt, %721, %cst_278 : f32
      %cst_279 = arith.constant 1.000000e+00 : f32
      %cst_280 = arith.constant 0.000000e+00 : f32
      %730 = arith.select %729, %cst_279, %cst_280 : f32
      %731 = arith.addf %711, %730 : f32
      %cst_281 = arith.constant 1.000000e+00 : f32
      %732 = arith.maximumf %721, %cst_281 : f32
      %733 = arith.divf %727, %732 : f32
      %cst_282 = arith.constant 0.000000e+00 : f32
      %734 = arith.select %729, %733, %cst_282 : f32
      %735 = arith.addf %715, %734 : f32
      %cst_283 = arith.constant 1.000000e+00 : f32
      %736 = arith.maximumf %728, %cst_283 : f32
      %cst_284 = arith.constant 5.000000e-01 : f32
      %737 = arith.cmpf ogt, %731, %cst_284 : f32
      %cst_285 = arith.constant 1.000000e+00 : f32
      %738 = arith.maximumf %731, %cst_285 : f32
      %cst_286 = arith.constant 1.000000e+00 : f32
      %739 = arith.divf %cst_286, %738 : f32
      %cst_287 = arith.constant 0.000000e+00 : f32
      %740 = arith.select %737, %739, %cst_287 : f32
      %741 = arith.mulf %736, %735 : f32
      %742 = arith.mulf %741, %740 : f32
      %743 = arith.divf %742, %736 : f32
      %cst_288 = arith.constant 1.000000e+00 : f32
      %744 = arith.mulf %743, %cst_288 : f32
      %745 = vector.broadcast %744 : f32 to vector<1x1xf32>
      %c0_289 = arith.constant 0 : index
      %c0_290 = arith.constant 0 : index
      %746 = vector.load %arg4[%c0_289, %c0_290] : memref<1x1xf32, #tpu.memory_space<vmem>>, vector<1x1xf32>
      tpu.vector_store %arg4[%c0_289, %c0_290], %745 {strides = array<i32>} : memref<1x1xf32, #tpu.memory_space<vmem>>, vector<1x1xf32>,
    } else {
    }
    return
  }
  func.func @transform_0(%arg0: i32) -> (i32, i32) {
    %c0_i32 = arith.constant 0 : i32
    %c0_i32_0 = arith.constant 0 : i32
    return %arg0, %c0_i32 : i32, i32
  }
  func.func @transform_1(%arg0: i32) -> (i32, i32) {
    %c0_i32 = arith.constant 0 : i32
    %c0_i32_0 = arith.constant 0 : i32
    return %arg0, %c0_i32 : i32, i32
  }
  func.func @transform_2(%arg0: i32) -> (i32, i32) {
    %c0_i32 = arith.constant 0 : i32
    %c0_i32_0 = arith.constant 0 : i32
    return %arg0, %c0_i32 : i32, i32
  }
  func.func @transform_3(%arg0: i32) -> (i32, i32) {
    %c0_i32 = arith.constant 0 : i32
    %c0_i32_0 = arith.constant 0 : i32
    %c0_i32_1 = arith.constant 0 : i32
    return %c0_i32, %c0_i32_0 : i32, i32
  }
}

</mosaic_0001>

<bundles_post_ra>
// kernel: tpu_custom_call.1
= control target key start
LH: loop header
LB: loop body
LE: loop exit
PB: predicated region body
PF: predicated region fallthrough
CT: control target
= control target key end

     0   :  { %8 = vsyncpa [#allocation5], 0  ;;  %s4917_s0 = inlined_call_operand.hbm [shape: f32[2,1024], index: 0, kind: input, shape index: {}]   ;;  %s4918_s1 = inlined_call_operand.hbm [shape: f32[2,1024], index: 1, kind: input, shape index: {}]   ;;  %s4919_s2 = inlined_call_operand.hbm [shape: f32[2,1024], index: 2, kind: input, shape index: {}]   ;;  %s4920_s3 = inlined_call_operand.hbm [shape: f32[1,1], index: 3, kind: output, shape index: {}]  }
   0x1   :  { %9 = vsyncpa [#allocation8], 0 }
   0x2   :  { %10 = vsyncpa [#allocation6], 0 }
   0x3   :  { %15 = vsyncadd [#allocation5], 768  ;;  %s3529_s12 = smov [#allocation4]   ;;  %s3435_s16 = scalar_lea.hbm %s4917_s0, 256 }
   0x4   :  { %s16_s13 = sshll.u32 %s3529_s12, 4  ;;  %p3436_p0 = scmp.ne.s32.totalorder %s4917_s0, %s3435_s16  ;;  %s17_s13 = int_to_ptr.vmem [resolvable:$true] %s16_s13 }
   0x5   :  { %p3439_p1 = scmp.lt.u32.totalorder %s3435_s16, %s4917_s0 }
   0x7   :  { %p3441_p2 = pnand %p3439_p1, %p3436_p0 }
   0x9   :  { %3444 = shalt.err (!%p3441_p2)
}
   0xa   :  { %s3445_s21 = scalar_lea.vmem %s17_s13, 256  ;;  %s3449_s22 = scalar_lea.vmem %s17_s13, 1024 }
   0xb   :  { %p3446_p3 = scmp.ne.s32.totalorder %s17_s13, %s3445_s21  ;;  %p3450_p4 = scmp.lt.s32.totalorder %s17_s13, %s17_s13 }
   0xc   :  { %p3451_p5 = scmp.lt.s32.totalorder %s3449_s22, %s3445_s21 }
   0xe   :  { %p3452_p6 = por %p3451_p5, %p3450_p4 }
  0x10   :  { %p3453_p7 = pnand %p3452_p6, %p3446_p3 }
  0x12   :  { %3456 = shalt.err (!%p3453_p7)
}
  0x13   :  { %s3530_s23 = smov 256   ;;  %s3531_s24 = smov 16  }
  0x14   :  { %22 = dma.hbm_to_vmem [thread:$0]  %s4917_s0, 256, %s17_s13, [#allocation5], %s3530_s23, %s3530_s23, %s3531_s24  }
  0x15   :  { %27 = vsyncadd [#allocation8], 768  ;;  %s3532_s27 = smov [#allocation7]   ;;  %s3457_s4 = scalar_lea.hbm %s4918_s1, 256 }
  0x16   :  { %s28_s28 = sshll.u32 %s3532_s27, 4  ;;  %p3458_p8 = scmp.ne.s32.totalorder %s4918_s1, %s3457_s4  ;;  %s29_s28 = int_to_ptr.vmem [resolvable:$true] %s28_s28 }
  0x17   :  { %p3461_p9 = scmp.lt.u32.totalorder %s3457_s4, %s4918_s1 }
  0x19   :  { %p3463_p10 = pnand %p3461_p9, %p3458_p8 }
  0x1b   :  { %3466 = shalt.err (!%p3463_p10)
}
  0x1c   :  { %s3467_s9 = scalar_lea.vmem %s29_s28, 256  ;;  %s3471_s0 = scalar_lea.vmem %s29_s28, 1024 }
  0x1d   :  { %p3468_p11 = scmp.ne.s32.totalorder %s29_s28, %s3467_s9  ;;  %p3472_p12 = scmp.lt.s32.totalorder %s29_s28, %s29_s28 }
  0x1e   :  { %p3473_p13 = scmp.lt.s32.totalorder %s3471_s0, %s3467_s9 }
  0x20   :  { %p3474_p0 = por %p3473_p13, %p3472_p12 }
  0x22   :  { %p3475_p1 = pnand %p3474_p0, %p3468_p11 }
  0x24   :  { %3478 = shalt.err (!%p3475_p1)
}
  0x25   :  { %34 = dma.hbm_to_vmem [thread:$0]  %s4918_s1, 256, %s29_s28, [#allocation8], %s3530_s23, %s3530_s23, %s3531_s24  }
  0x26   :  { %39 = vsyncadd [#allocation8], 768  ;;  %s3533_s12 = smov [#allocation9]   ;;  %s3479_s16 = scalar_lea.hbm %s4919_s2, 256 }
  0x27   :  { %s40_s13 = sshll.u32 %s3533_s12, 4  ;;  %p3480_p2 = scmp.ne.s32.totalorder %s4919_s2, %s3479_s16  ;;  %s41_s13 = int_to_ptr.vmem [resolvable:$true] %s40_s13 }
  0x28   :  { %p3483_p3 = scmp.lt.u32.totalorder %s3479_s16, %s4919_s2 }
  0x2a   :  { %p3485_p4 = pnand %p3483_p3, %p3480_p2 }
  0x2c   :  { %3488 = shalt.err (!%p3485_p4)
}
  0x2d   :  { %s3489_s21 = scalar_lea.vmem %s41_s13, 256  ;;  %s3493_s1 = scalar_lea.vmem %s41_s13, 1024 }
  0x2e   :  { %p3490_p5 = scmp.ne.s32.totalorder %s41_s13, %s3489_s21  ;;  %p3494_p6 = scmp.lt.s32.totalorder %s41_s13, %s41_s13 }
  0x2f   :  { %p3495_p7 = scmp.lt.s32.totalorder %s3493_s1, %s3489_s21 }
  0x31   :  { %p3496_p8 = por %p3495_p7, %p3494_p6 }
  0x33   :  { %p3497_p9 = pnand %p3496_p8, %p3490_p5 }
  0x35   :  { %3500 = shalt.err (!%p3497_p9)
}
  0x36   :  { %46 = dma.hbm_to_vmem [thread:$0]  %s4919_s2, 256, %s41_s13, [#allocation8], %s3530_s23, %s3530_s23, %s3531_s24  }
  0x37   :  { %3523 = dma.done.wait [#allocation5], 1024  }
  0x38   :  { %3524 = vsyncadd [#allocation5], 4294966272 }
  0x39   :  { %3525 = dma.done.wait [#allocation8], 2048  }
  0x3a   :  { %3526 = vsyncadd [#allocation8], 4294965248  ;;  %v3608_v0 = vld [vmem:[#allocation4] sm:$0xff]  ;;  %v3610_v1 = vld [vmem:[#allocation4 + $0x8] sm:$0xff]  ;;  %v119_v14 = vlaneseq  ;;  %v3534_v16 = vmov 269488144  }
  0x3b   :  { %v3612_v2 = vld [vmem:[#allocation4 + $0x10] sm:$0xff]  ;;  %v166_v3 = vand.u32 2147483647, %v3608_v0  ;;  %v167_v4 = vand.u32 2147483647, %v3610_v1  ;;  %v3616_v5 = vld [vmem:[#allocation4 + $0x18] sm:$0xff]  ;;  %v127_v17 = vunpack.c.l.s4 %v3534_v16 }
  0x3c   :  { %v168_v6 = vand.u32 2147483647, %v3612_v2  ;;  %v3619_v7 = vld [vmem:[#allocation4 + $0x20] sm:$0xff]  ;;  %v3621_v8 = vld [vmem:[#allocation4 + $0x28] sm:$0xff]  ;;  %v3623_v9 = vld [vmem:[#allocation4 + $0x30] sm:$0xff]  ;;  %v120_v38 = vshrl.u32 %v119_v14, 7 }
  0x3d   :  { %v3625_v10 = vld [vmem:[#allocation4 + $0x38] sm:$0xff]  ;;  %v169_v11 = vand.u32 2147483647, %v3616_v5  ;;  %v174_v12 = vsub.f32 0.0, %v166_v3  ;;  %v175_v13 = vsub.f32 0.0, %v167_v4  ;;  %v128_v41 = vunpack.c.0.s8 %v127_v17  ;;  %v3653_v61 = vld [vmem:[#allocation7] sm:$0xff] }
  0x3e   :  { %v176_v15 = vsub.f32 0.0, %v168_v6  ;;  %v3535_v18 = vmov 842150450   ;;  %v170_v20 = vand.u32 2147483647, %v3619_v7  ;;  %vm124_vm0 = vcmp.lt.s32.totalorder %v120_v38, 2 }
  0x3f   :  { %v134_v19 = vunpack.c.l.s4 %v3535_v18  ;;  %v3536_v21 = vmov 1414812756   ;;  %v171_v23 = vand.u32 2147483647, %v3621_v8  ;;  %v172_v24 = vand.u32 2147483647, %v3623_v9 }
  0x40   :  { %v141_v22 = vunpack.c.l.s4 %v3536_v21  ;;  %v173_v25 = vand.u32 2147483647, %v3625_v10  ;;  %v177_v26 = vsub.f32 0.0, %v169_v11  ;;  %v178_v27 = vsub.f32 0.0, %v170_v20  ;;  %v3655_v62 = vld [vmem:[#allocation7 + $0x8] sm:$0xff]  ;;  %v3677_v18 = vld [vmem:[#allocation7 + $0x20] sm:$0xff] }
  0x41   :  { %v182_v28 = vmul.f32 1.442695, %v174_v12  ;;  %v184_v29 = vmul.f32 1.442695, %v175_v13  ;;  %v179_v30 = vsub.f32 0.0, %v171_v23  ;;  %v180_v31 = vsub.f32 0.0, %v172_v24 }
  0x42   :  { %v181_v32 = vsub.f32 0.0, %v173_v25  ;;  %v186_v33 = vmul.f32 1.442695, %v176_v15  ;;  %v3537_v34 = vmov 1987475062   ;;  %v135_v42 = vunpack.c.0.s8 %v134_v19  ;;  %v3666_v12 = vld [vmem:[#allocation7 + $0x10] sm:$0xff] }
  0x43   :  { %v148_v35 = vunpack.c.l.s4 %v3537_v34  ;;  %3363 = vpow2.f32 %v182_v28  ;;  %v188_v36 = vmul.f32 1.442695, %v177_v26  ;;  %v190_v37 = vmul.f32 1.442695, %v178_v27  ;;  %v3668_v13 = vld [vmem:[#allocation7 + $0x18] sm:$0xff]  ;;  %v3679_v19 = vld [vmem:[#allocation7 + $0x28] sm:$0xff] }
  0x44   :  { %3365 = vpow2.f32 %v184_v29  ;;  %v192_v39 = vmul.f32 1.442695, %v179_v30  ;;  %v194_v40 = vmul.f32 1.442695, %v180_v31  ;;  %v196_v43 = vmul.f32 1.442695, %v181_v32 }
  0x45   :  { %3367 = vpow2.f32 %v186_v33  ;;  %v142_v44 = vunpack.c.0.s8 %v141_v22  ;;  %v149_v45 = vunpack.c.0.s8 %v148_v35  ;;  %v3538_v46 = vmov 1983009808   ;;  %v3688_v24 = vld [vmem:[#allocation7 + $0x30] sm:$0xff]  ;;  %v3690_v25 = vld [vmem:[#allocation7 + $0x38] sm:$0xff]  ;;  %s3541_s23 = smov 1.0  }
  0x46   :  { %3369 = vpow2.f32 %v188_v36  ;;  %v458_v47 = vunpack.c.l.s4 %v3538_v46  ;;  %v3632_v48 = vsub.s32 %v128_v41, %v120_v38  ;;  %v3634_v49 = vsub.s32 %v135_v42, %v120_v38  ;;  %v3726_v46 = vld [vmem:[#allocation9 + $0x8] sm:$0xff]  ;;  %v3734_v3 = vld [vmem:[#allocation9 + $0x10] sm:$0xff] }
  0x47   :  { %3371 = vpow2.f32 %v190_v37  ;;  %v3539_v50 = vmov 0   ;;  %v3638_v52 = vsub.s32 %v142_v44, %v120_v38  ;;  %v3640_v53 = vsub.s32 %v149_v45, %v120_v38 }
  0x48   :  { %3373 = vpow2.f32 %v192_v39  ;;  %v3636_v51 = vsel %vm124_vm0, 1, %v3539_v50  ;;  %v459_v54 = vunpack.c.0.s8 %v458_v47  ;;  %v270_v15 = vmul.f32 %v3653_v61, %v3608_v0 }
  0x49   :  { %3375 = vpow2.f32 %v194_v40  ;;  %v271_v16 = vmul.f32 %v3655_v62, %v3610_v1  ;;  %v272_v21 = vmul.f32 %v3666_v12, %v3612_v2  ;;  %v273_v22 = vmul.f32 %v3668_v13, %v3616_v5 }
  0x4a   :  { %3377 = vpow2.f32 %v196_v43  ;;  %v3662_v6 = vsub.s32 %v459_v54, %v120_v38  ;;  %v274_v27 = vmul.f32 %v3677_v18, %v3619_v7  ;;  %v275_v28 = vmul.f32 %v3679_v19, %v3621_v8  ;;  %v3721_v43 = vld [vmem:[#allocation9] sm:$0xff] }
  0x4b   :  { %v276_v31 = vmul.f32 %v3688_v24, %v3623_v9  ;;  %v277_v32 = vmul.f32 %v3690_v25, %v3625_v10  ;;  %vm222_vm1 = vcmp.ge.f32.partialorder %v3608_v0, 0.0  ;;  %vm223_vm2 = vcmp.ge.f32.partialorder %v3610_v1, 0.0 }
  0x4c   :  { %4922 = vst [vmem:[#allocation14_spill] sm:$0xff] %v3662_v6  ;;  %vm224_vm3 = vcmp.ge.f32.partialorder %v3612_v2, 0.0  ;;  %vm225_vm4 = vcmp.ge.f32.partialorder %v3616_v5, 0.0  ;;  %v262_v36 = vmax.f32 %v3608_v0, 0.0  ;;  %v263_v37 = vmax.f32 %v3610_v1, 0.0  ;;  %v3741_v6 = vld [vmem:[#allocation9 + $0x18] sm:$0xff] }
  0x4d   :  { %v3642_v55 = vpop.eup %3363  ;;  %v264_v38 = vmax.f32 %v3612_v2, 0.0  ;;  %vm226_vm5 = vcmp.ge.f32.partialorder %v3619_v7, 0.0  ;;  %v265_v39 = vmax.f32 %v3616_v5, 0.0  ;;  %v266_v40 = vmax.f32 %v3619_v7, 0.0 }
  0x4e   :  { %v3644_v56 = vpop.eup %3365  ;;  %v198_v59 = vadd.f32 1.0, %v3642_v55  ;;  %vm227_vm6 = vcmp.ge.f32.partialorder %v3621_v8, 0.0  ;;  %v267_v41 = vmax.f32 %v3621_v8, 0.0  ;;  %v268_v42 = vmax.f32 %v3623_v9, 0.0 }
  0x4f   :  { %v3651_v60 = vpop.eup %3367  ;;  %v199_v4 = vadd.f32 1.0, %v3644_v56  ;;  %vm228_vm7 = vcmp.ge.f32.partialorder %v3623_v9, 0.0  ;;  %vm229_vm8 = vcmp.ge.f32.partialorder %v3625_v10, 0.0  ;;  %v269_v44 = vmax.f32 %v3625_v10, 0.0 }
  0x50   :  { %v3664_v11 = vpop.eup %3369  ;;  %v200_v14 = vadd.f32 1.0, %v3651_v60  ;;  %3379 = vrcp.f32 %v198_v59  ;;  %v3728_v47 = vsub.f32 %v262_v36, %v270_v15  ;;  %v3730_v50 = vsub.f32 %v263_v37, %v271_v16 }
  0x51   :  { %v3675_v17 = vpop.eup %3371  ;;  %v201_v20 = vadd.f32 1.0, %v3664_v11  ;;  %3381 = vrcp.f32 %v199_v4  ;;  %v3732_v54 = vsub.f32 %v264_v38, %v272_v21  ;;  %v3737_v58 = vsub.f32 %v265_v39, %v273_v22  ;;  %v3756_v22 = vld [vmem:[#allocation9 + $0x20] sm:$0xff]  ;;  %v3785_v39 = vld [vmem:[#allocation9 + $0x38] sm:$0xff] }
  0x52   :  { %v3686_v23 = vpop.eup %3373  ;;  %v202_v26 = vadd.f32 1.0, %v3675_v17  ;;  %3383 = vrcp.f32 %v200_v14  ;;  %v3739_v57 = vsub.f32 %v266_v40, %v274_v27  ;;  %vm111_vm9 = vcmp.gt.f32.partialorder %v3721_v43, 0.0 }
  0x53   :  { %v3697_v29 = vpop.eup %3375  ;;  %v203_v30 = vadd.f32 1.0, %v3686_v23  ;;  %3385 = vrcp.f32 %v201_v20  ;;  %v4923_v15 = vrot.slane %v3636_v51, %v3632_v48  ;;  %v3754_v21 = vsub.f32 %v268_v42, %v276_v31  ;;  %v3778_v31 = vld [vmem:[#allocation9 + $0x30] sm:$0xff] }
  0x54   :  { %v3704_v33 = vpop.eup %3377  ;;  %v204_v34 = vadd.f32 1.0, %v3697_v29  ;;  %3387 = vrcp.f32 %v202_v26  ;;  %vm112_vm11 = vcmp.gt.f32.partialorder %v3726_v46, 0.0  ;;  %v3762_v36 = vsub.f32 %v269_v44, %v277_v32 }
  0x55   :  { %v205_v35 = vadd.f32 1.0, %v3704_v33  ;;  %3389 = vrcp.f32 %v203_v30  ;;  %vm3747_vm10 = vcmp.ne.s32.totalorder %v4923_v15, 0  ;;  %vm113_vm12 = vcmp.gt.f32.partialorder %v3734_v3, 0.0 }
  0x56   :  { %3391 = vrcp.f32 %v204_v34  ;;  %vm114_vm14 = vcmp.gt.f32.partialorder %v3741_v6, 0.0  ;;  %vm115_vm15 = vcmp.gt.f32.partialorder %v3756_v22, 0.0  ;;  %v4929_v1 = vrot.slane %v3636_v51, %v3638_v52 }
  0x57   :  { %3393 = vrcp.f32 %v205_v35  ;;  %v4932_v5 = vrot.slane %v3636_v51, %v3640_v53 }
  0x58   :  { %3395 = vlog2.f32 %v198_v59  ;;  %vm3791_vm0 = vcmp.ne.s32.totalorder %v4929_v1, 0 }
  0x59   :  { %3397 = vlog2.f32 %v199_v4 }
  0x5a   :  { %v3380_v45 = vpop.eup %3379  ;;  %3399 = vlog2.f32 %v200_v14 }
  0x5b   :  { %v3382_v59 = vpop.eup %3381  ;;  %v230_v63 = vmul.f32 %v3380_v45, %v3642_v55  ;;  %3401 = vlog2.f32 %v201_v20  ;;  %v3752_v55 = vsub.f32 %v267_v41, %v275_v28 }
  0x5c   :  { %v3384_v4 = vpop.eup %3383  ;;  %v231_v16 = vmul.f32 %v3382_v59, %v3644_v56  ;;  %3403 = vlog2.f32 %v202_v26  ;;  %v3764_v56 = vld [vmem:[#allocation9 + $0x28] sm:$0xff]  ;;  %v4926_v26 = vrot.slane %v3636_v51, %v3634_v49 }
  0x5d   :  { %v3386_v20 = vpop.eup %3385  ;;  %v232_v27 = vmul.f32 %v3384_v4, %v3651_v60  ;;  %v238_v48 = vsel %vm222_vm1, %v3380_v45, %v230_v63  ;;  %3405 = vlog2.f32 %v203_v30  ;;  %vm116_vm1 = vcmp.gt.f32.partialorder %v3764_v56, 0.0 }
  0x5e   :  { %v3388_v37 = vpop.eup %3387  ;;  %vm3770_vm13 = vcmp.ne.s32.totalorder %v4926_v26, 0  ;;  %v233_v60 = vmul.f32 %v3386_v20, %v3664_v11  ;;  %v239_v0 = vsel %vm223_vm2, %v3382_v59, %v231_v16  ;;  %v246_v63 = vsub.f32 %v238_v48, %v3653_v61 }
  0x5f   :  { %3407 = vlog2.f32 %v204_v34  ;;  %v3390_v30 = vpop.eup %3389  ;;  %v234_v32 = vmul.f32 %v3388_v37, %v3675_v17  ;;  %v240_v49 = vsel %vm224_vm3, %v3384_v4, %v232_v27  ;;  %v247_v38 = vsub.f32 %v239_v0, %v3655_v62 }
  0x60   :  { %3409 = vlog2.f32 %v205_v35  ;;  %v3392_v11 = vpop.eup %3391  ;;  %v235_v17 = vmul.f32 %v3390_v30, %v3686_v23  ;;  %v241_v2 = vsel %vm225_vm4, %v3386_v20, %v233_v60  ;;  %v248_v62 = vsub.f32 %v240_v49, %v3666_v12 }
  0x61   :  { %v254_v34 = vand.u32 2147483647, %v246_v63  ;;  %v3394_v35 = vpop.eup %3393  ;;  %v236_v40 = vmul.f32 %v3392_v11, %v3697_v29  ;;  %v242_v52 = vsel %vm226_vm5, %v3388_v37, %v234_v32  ;;  %v249_v41 = vsub.f32 %v241_v2, %v3668_v13  ;;  %vm3834_vm5 = vmand %vm111_vm9, %vm3747_vm10 }
  0x62   :  { %v255_v42 = vand.u32 2147483647, %v247_v38  ;;  %v3396_v44 = vpop.eup %3395  ;;  %vm117_vm2 = vcmp.gt.f32.partialorder %v3778_v31, 0.0  ;;  %vm3808_vm3 = vcmp.ne.s32.totalorder %v4932_v5, 0  ;;  %v237_v23 = vmul.f32 %v3394_v35, %v3704_v33  ;;  %vm3878_vm9 = vmand %vm115_vm15, %vm3791_vm0 }
  0x63   :  { %v243_v29 = vsel %vm227_vm6, %v3390_v30, %v235_v17  ;;  %v250_v7 = vsub.f32 %v242_v52, %v3677_v18  ;;  %v256_v45 = vand.u32 2147483647, %v248_v62  ;;  %v3398_v13 = vpop.eup %3397  ;;  %vm118_vm4 = vcmp.gt.f32.partialorder %v3785_v39, 0.0  ;;  %vm3845_vm6 = vmand %vm112_vm11, %vm3747_vm10 }
  0x64   :  { %v244_v59 = vsel %vm228_vm7, %v3392_v11, %v236_v40  ;;  %v251_v51 = vsub.f32 %v243_v29, %v3679_v19  ;;  %v257_v53 = vand.u32 2147483647, %v249_v41  ;;  %v287_v4 = vmul.f32 0.6931472, %v3396_v44  ;;  %v3400_v15 = vpop.eup %3399  ;;  %vm3856_vm7 = vmand %vm113_vm12, %vm3770_vm13 }
  0x65   :  { %v245_v33 = vsel %vm229_vm8, %v3394_v35, %v237_v23  ;;  %v252_v8 = vsub.f32 %v244_v59, %v3688_v24  ;;  %v258_v16 = vand.u32 2147483647, %v250_v7  ;;  %v289_v20 = vmul.f32 0.6931472, %v3398_v13  ;;  %v3402_v18 = vpop.eup %3401  ;;  %vm3867_vm8 = vmand %vm114_vm14, %vm3770_vm13 }
  0x66   :  { %v253_v27 = vsub.f32 %v245_v33, %v3690_v25  ;;  %v259_v48 = vand.u32 2147483647, %v251_v51  ;;  %v291_v37 = vmul.f32 0.6931472, %v3400_v15  ;;  %v3825_v9 = vadd.f32 %v287_v4, %v3728_v47  ;;  %v3404_v26 = vpop.eup %3403  ;;  %vm3889_vm10 = vmand %vm116_vm1, %vm3791_vm0 }
  0x67   :  { %v260_v19 = vand.u32 2147483647, %v252_v8  ;;  %v293_v60 = vmul.f32 0.6931472, %v3402_v18  ;;  %v3828_v0 = vadd.f32 %v289_v20, %v3730_v50  ;;  %v310_v10 = vmul.f32 10.0, %v254_v34  ;;  %v3406_v63 = vpop.eup %3405  ;;  %vm3900_vm11 = vmand %vm117_vm2, %vm3808_vm3 }
  0x68   :  { %v261_v25 = vand.u32 2147483647, %v253_v27  ;;  %v295_v30 = vmul.f32 0.6931472, %v3404_v26  ;;  %v3839_v47 = vadd.f32 %v291_v37, %v3732_v54  ;;  %v311_v32 = vmul.f32 10.0, %v255_v42  ;;  %vm165_vm12 = vmand %vm118_vm4, %vm3808_vm3 }
  0x69   :  { %v3408_v49 = vpop.eup %3407  ;;  %v297_v43 = vmul.f32 0.6931472, %v3406_v63  ;;  %v3850_v38 = vadd.f32 %v293_v60, %v3737_v58  ;;  %v312_v11 = vmul.f32 10.0, %v256_v45  ;;  %v313_v1 = vmul.f32 10.0, %v257_v53 }
  0x6a   :  { %v3410_v17 = vpop.eup %3409  ;;  %v299_v46 = vmul.f32 0.6931472, %v3408_v49  ;;  %v3861_v14 = vadd.f32 %v295_v30, %v3739_v57  ;;  %v314_v2 = vmul.f32 10.0, %v258_v16  ;;  %v315_v62 = vmul.f32 10.0, %v259_v48 }
  0x6b   :  { %v301_v34 = vmul.f32 0.6931472, %v3410_v17  ;;  %v3872_v3 = vadd.f32 %v297_v43, %v3752_v55  ;;  %v316_v35 = vmul.f32 10.0, %v260_v19  ;;  %v317_v40 = vmul.f32 10.0, %v261_v25 }
  0x6c   :  { %v3883_v6 = vadd.f32 %v299_v46, %v3754_v21  ;;  %v318_v28 = vfloor.f32 %v310_v10  ;;  %v319_v52 = vfloor.f32 %v311_v32  ;;  %v320_v41 = vfloor.f32 %v312_v11 }
  0x6d   :  { %v3894_v22 = vadd.f32 %v301_v34, %v3762_v36  ;;  %v321_v42 = vfloor.f32 %v313_v1  ;;  %v322_v44 = vfloor.f32 %v314_v2  ;;  %v323_v5 = vfloor.f32 %v315_v62 }
  0x6e   :  { %v324_v61 = vfloor.f32 %v316_v35  ;;  %v325_v56 = vfloor.f32 %v317_v40  ;;  %v326_v23 = vmin.f32 %v318_v28, 9.0  ;;  %v327_v29 = vmin.f32 %v319_v52, 9.0 }
  0x6f   :  { %v328_v36 = vmin.f32 %v320_v41, 9.0  ;;  %v329_v7 = vmin.f32 %v321_v42, 9.0  ;;  %v330_v45 = vmin.f32 %v322_v44, 9.0  ;;  %v331_v13 = vmin.f32 %v323_v5, 9.0 }
  0x70   :  { %v332_v59 = vmin.f32 %v324_v61, 9.0  ;;  %v333_v51 = vmin.f32 %v325_v56, 9.0  ;;  %v3910_v31 = vsel %vm3834_vm5, %v326_v23, 10.0  ;;  %v3914_v53 = vsel %vm3845_vm6, %v327_v29, 10.0 }
  0x71   :  { %v3918_v12 = vsel %vm3856_vm7, %v328_v36, 10.0  ;;  %v3922_v39 = vsel %vm3867_vm8, %v329_v7, 10.0  ;;  %v3926_v4 = vsel %vm3878_vm9, %v330_v45, 10.0  ;;  %v3930_v15 = vsel %vm3889_vm10, %v331_v13, 10.0 }
  0x72   :  { %v3934_v33 = vsel %vm3900_vm11, %v332_v59, 10.0  ;;  %v3936_v8 = vsel %vm165_vm12, %v333_v51, 10.0  ;;  %vm342_vm13 = vcmp.eq.f32.partialorder %v3910_v31, 0.0  ;;  %vm343_vm14 = vcmp.eq.f32.partialorder %v3914_v53, 0.0 }
  0x73   :  { %vm344_vm15 = vcmp.eq.f32.partialorder %v3918_v12, 0.0  ;;  %vm345_vm0 = vcmp.eq.f32.partialorder %v3922_v39, 0.0  ;;  %vm346_vm1 = vcmp.eq.f32.partialorder %v3926_v4, 0.0  ;;  %vm347_vm2 = vcmp.eq.f32.partialorder %v3930_v15, 0.0 }
  0x74   :  { %vm348_vm3 = vcmp.eq.f32.partialorder %v3934_v33, 0.0  ;;  %vm349_vm4 = vcmp.eq.f32.partialorder %v3936_v8, 0.0  ;;  %v3540_v16 = vmov 0.0   ;;  %vm592_vm5 = vcmp.eq.f32.partialorder %v3910_v31, 1.0 }
  0x75   :  { %v3205_v20 = vsel %vm342_vm13, 1.0, %v3540_v16  ;;  %v3206_v18 = vsel %vm343_vm14, 1.0, %v3540_v16  ;;  %v3207_v27 = vsel %vm344_vm15, 1.0, %v3540_v16  ;;  %v3208_v48 = vsel %vm345_vm0, 1.0, %v3540_v16 }
  0x76   :  { %v3209_v37 = vsel %vm346_vm1, 1.0, %v3540_v16  ;;  %v3210_v26 = vsel %vm347_vm2, 1.0, %v3540_v16  ;;  %v3211_v19 = vsel %vm348_vm3, 1.0, %v3540_v16  ;;  %v3212_v60 = vsel %vm349_vm4, 1.0, %v3540_v16 }
  0x77   :  { %v371_v10 = vrot.slane %v3205_v20, 2  ;;  %v372_v63 = vrot.slane %v3207_v27, 2  ;;  %v373_v24 = vrot.slane %v3209_v37, 2  ;;  %v374_v25 = vrot.slane %v3211_v19, 2 }
  0x78   :  { %v383_v30 = vrot.slane %v3205_v20, 4  ;;  %v384_v32 = vrot.slane %v3207_v27, 4  ;;  %v385_v43 = vrot.slane %v3209_v37, 4  ;;  %v386_v11 = vrot.slane %v3211_v19, 4 }
  0x79   :  { %v379_v49 = vadd.f32 %v3205_v20, %v371_v10  ;;  %v380_v50 = vadd.f32 %v3207_v27, %v372_v63  ;;  %v381_v1 = vadd.f32 %v3209_v37, %v373_v24  ;;  %v382_v17 = vadd.f32 %v3211_v19, %v374_v25 }
  0x7a   :  { %v395_v54 = vrot.slane %v3205_v20, 6  ;;  %v396_v46 = vrot.slane %v3207_v27, 6  ;;  %v397_v58 = vrot.slane %v3209_v37, 6  ;;  %v398_v34 = vrot.slane %v3211_v19, 6 }
  0x7b   :  { %v391_v2 = vadd.f32 %v383_v30, %v379_v49  ;;  %v392_v62 = vadd.f32 %v384_v32, %v380_v50  ;;  %v393_v35 = vadd.f32 %v385_v43, %v381_v1  ;;  %v394_v40 = vadd.f32 %v386_v11, %v382_v17 }
  0x7c   :  { %v415_v57 = vrot.slane %v3206_v18, 2  ;;  %v416_v28 = vrot.slane %v3208_v48, 2  ;;  %v417_v55 = vrot.slane %v3210_v26, 2  ;;  %v418_v42 = vrot.slane %v3212_v60, 2 }
  0x7d   :  { %v403_v52 = vadd.f32 %v395_v54, %v391_v2  ;;  %v404_v41 = vadd.f32 %v396_v46, %v392_v62  ;;  %v405_v44 = vadd.f32 %v397_v58, %v393_v35  ;;  %v406_v5 = vadd.f32 %v398_v34, %v394_v40  ;;  %v4949_v62 = vld [vmem:[#allocation14_spill] sm:$0xff] }
  0x7e   :  { %v427_v21 = vrot.slane %v3206_v18, 4  ;;  %v428_v61 = vrot.slane %v3208_v48, 4  ;;  %v429_v29 = vrot.slane %v3210_v26, 4  ;;  %v430_v36 = vrot.slane %v3212_v60, 4 }
  0x7f   :  { %v407_v56 = vadd.f32 %v3206_v18, %v403_v52  ;;  %v408_v23 = vadd.f32 %v3208_v48, %v404_v41  ;;  %v409_v7 = vadd.f32 %v3210_v26, %v405_v44  ;;  %v410_v45 = vadd.f32 %v3212_v60, %v406_v5 }
  0x80   :  { %v439_v13 = vrot.slane %v3206_v18, 6  ;;  %v440_v59 = vrot.slane %v3208_v48, 6  ;;  %v441_v27 = vrot.slane %v3210_v26, 6  ;;  %v442_v37 = vrot.slane %v3212_v60, 6 }
  0x81   :  { %v423_v51 = vadd.f32 %v415_v57, %v407_v56  ;;  %v424_v20 = vadd.f32 %v416_v28, %v408_v23  ;;  %v425_v19 = vadd.f32 %v417_v55, %v409_v7  ;;  %v426_v10 = vadd.f32 %v418_v42, %v410_v45 }
  0x82   :  { %vm593_vm6 = vcmp.eq.f32.partialorder %v3914_v53, 1.0  ;;  %vm594_vm7 = vcmp.eq.f32.partialorder %v3918_v12, 1.0  ;;  %vm595_vm8 = vcmp.eq.f32.partialorder %v3922_v39, 1.0  ;;  %vm596_vm9 = vcmp.eq.f32.partialorder %v3926_v4, 1.0 }
  0x83   :  { %v435_v63 = vadd.f32 %v427_v21, %v423_v51  ;;  %v436_v24 = vadd.f32 %v428_v61, %v424_v20  ;;  %v437_v25 = vadd.f32 %v429_v29, %v425_v19  ;;  %v438_v30 = vadd.f32 %v430_v36, %v426_v10 }
  0x84   :  { %vm597_vm10 = vcmp.eq.f32.partialorder %v3930_v15, 1.0  ;;  %vm598_vm11 = vcmp.eq.f32.partialorder %v3934_v33, 1.0  ;;  %vm599_vm12 = vcmp.eq.f32.partialorder %v3936_v8, 1.0  ;;  %v3213_v32 = vsel %vm592_vm5, 1.0, %v3540_v16 }
  0x85   :  { %v447_v18 = vadd.f32 %v439_v13, %v435_v63  ;;  %v448_v48 = vadd.f32 %v440_v59, %v436_v24  ;;  %v449_v26 = vadd.f32 %v441_v27, %v437_v25  ;;  %v450_v60 = vadd.f32 %v442_v37, %v438_v30 }
  0x86   :  { %v3984_v49 = vsel %vm593_vm6, 1.0, %v3540_v16  ;;  %v3215_v43 = vsel %vm594_vm7, 1.0, %v3540_v16  ;;  %v3992_v11 = vsel %vm595_vm8, 1.0, %v3540_v16  ;;  %v3217_v1 = vsel %vm596_vm9, 1.0, %v3540_v16 }
  0x87   :  { %v455_v50 = vcombine.low %v447_v18, %v448_v48  ;;  %v456_v17 = vcombine.low %v449_v26, %v450_v60  ;;  %v4000_v54 = vsel %vm597_vm10, 1.0, %v3540_v16  ;;  %v3219_v46 = vsel %vm598_vm11, 1.0, %v3540_v16 }
  0x88   :  { %v4008_v2 = vsel %vm599_vm12, 1.0, %v3540_v16  ;;  %v622_v34 = vrot.slane %v3213_v32, 2  ;;  %v623_v35 = vrot.slane %v3215_v43, 2  ;;  %v624_v40 = vrot.slane %v3217_v1, 2 }
  0x89   :  { %v463_v58 = vrot.slane %v455_v50, %v4949_v62  ;;  %v470_v57 = vrot.slane %v456_v17, %v4949_v62  ;;  %v625_v28 = vrot.slane %v3219_v46, 2  ;;  %v634_v52 = vrot.slane %v3213_v32, 4 }
  0x8a   :  { %v635_v41 = vrot.slane %v3215_v43, 4  ;;  %v630_v55 = vadd.f32 %v3213_v32, %v622_v34  ;;  %v631_v42 = vadd.f32 %v3215_v43, %v623_v35  ;;  %v632_v44 = vadd.f32 %v3217_v1, %v624_v40 }
  0x8b   :  { %v636_v5 = vrot.slane %v3217_v1, 4  ;;  %v471_v21 = vcombine.low %v463_v58, %v470_v57  ;;  %v633_v61 = vadd.f32 %v3219_v46, %v625_v28  ;;  %v637_v56 = vrot.slane %v3219_v46, 4 }
  0x8c   :  { %v646_v23 = vrot.slane %v3213_v32, 6  ;;  %v642_v29 = vadd.f32 %v634_v52, %v630_v55  ;;  %v643_v36 = vadd.f32 %v635_v41, %v631_v42  ;;  %v647_v45 = vrot.slane %v3215_v43, 6 }
  0x8d   :  { %v644_v7 = vadd.f32 %v636_v5, %v632_v44  ;;  %2864 = vadd.xlane.f32.xlu0 %v471_v21  ;;  %v645_v13 = vadd.f32 %v637_v56, %v633_v61  ;;  %v648_v59 = vrot.slane %v3217_v1, 6  ;;  %v649_v51 = vrot.slane %v3219_v46, 6 }
  0x8e   :  { %v666_v20 = vrot.slane %v3984_v49, 2  ;;  %v654_v27 = vadd.f32 %v646_v23, %v642_v29  ;;  %v655_v37 = vadd.f32 %v647_v45, %v643_v36  ;;  %v667_v19 = vrot.slane %v3992_v11, 2 }
  0x8f   :  { %v668_v10 = vrot.slane %v4000_v54, 2  ;;  %v656_v63 = vadd.f32 %v648_v59, %v644_v7  ;;  %v657_v24 = vadd.f32 %v649_v51, %v645_v13  ;;  %v669_v25 = vrot.slane %v4008_v2, 2 }
  0x90   :  { %v678_v30 = vrot.slane %v3984_v49, 4  ;;  %v658_v18 = vadd.f32 %v3984_v49, %v654_v27  ;;  %v659_v48 = vadd.f32 %v3992_v11, %v655_v37  ;;  %v679_v26 = vrot.slane %v3992_v11, 4 }
  0x91   :  { %v680_v60 = vrot.slane %v4000_v54, 4  ;;  %v660_v32 = vadd.f32 %v4000_v54, %v656_v63  ;;  %v661_v50 = vadd.f32 %v4008_v2, %v657_v24  ;;  %v681_v43 = vrot.slane %v4008_v2, 4 }
  0x92   :  { %v690_v1 = vrot.slane %v3984_v49, 6  ;;  %v674_v17 = vadd.f32 %v666_v20, %v658_v18  ;;  %v675_v46 = vadd.f32 %v667_v19, %v659_v48  ;;  %v691_v58 = vrot.slane %v3992_v11, 6 }
  0x93   :  { %v692_v34 = vrot.slane %v4000_v54, 6  ;;  %v676_v35 = vadd.f32 %v668_v10, %v660_v32  ;;  %v677_v40 = vadd.f32 %v669_v25, %v661_v50  ;;  %v693_v57 = vrot.slane %v4008_v2, 6 }
  0x94   :  { %v476_v28 = vsel %vm342_vm13, %v3825_v9, 0.0  ;;  %v686_v52 = vadd.f32 %v678_v30, %v674_v17  ;;  %v687_v41 = vadd.f32 %v679_v26, %v675_v46  ;;  %v4034_v49 = vsel %vm343_vm14, %v3828_v0, 0.0 }
  0x95   :  { %v478_v11 = vsel %vm344_vm15, %v3839_v47, 0.0  ;;  %v688_v54 = vadd.f32 %v680_v60, %v676_v35  ;;  %v689_v55 = vadd.f32 %v681_v43, %v677_v40  ;;  %v4042_v2 = vsel %vm345_vm0, %v3850_v38, 0.0 }
  0x96   :  { %v480_v42 = vsel %vm346_vm1, %v3861_v14, 0.0  ;;  %v698_v44 = vadd.f32 %v690_v1, %v686_v52  ;;  %v699_v5 = vadd.f32 %v691_v58, %v687_v41  ;;  %v4050_v21 = vsel %vm347_vm2, %v3872_v3, 0.0 }
  0x97   :  { %v482_v61 = vsel %vm348_vm3, %v3883_v6, 0.0  ;;  %v700_v56 = vadd.f32 %v692_v34, %v688_v54  ;;  %v701_v23 = vadd.f32 %v693_v57, %v689_v55  ;;  %v4058_v29 = vsel %vm349_vm4, %v3894_v22, 0.0 }
  0x98   :  { %v488_v36 = vrot.slane %v476_v28, 2  ;;  %v706_v7 = vcombine.low %v698_v44, %v699_v5  ;;  %v489_v45 = vrot.slane %v478_v11, 2  ;;  %v490_v13 = vrot.slane %v480_v42, 2 }
  0x99   :  { %v491_v59 = vrot.slane %v482_v61, 2  ;;  %v707_v51 = vcombine.low %v700_v56, %v701_v23  ;;  %v500_v27 = vrot.slane %v476_v28, 4  ;;  %v501_v37 = vrot.slane %v478_v11, 4 }
  0x9a   :  { %v496_v20 = vadd.f32 %v488_v36, %v476_v28  ;;  %v714_v19 = vrot.slane %v706_v7, %v4949_v62  ;;  %v497_v10 = vadd.f32 %v489_v45, %v478_v11  ;;  %v498_v63 = vadd.f32 %v490_v13, %v480_v42 }
  0x9b   :  { %v499_v24 = vadd.f32 %v491_v59, %v482_v61  ;;  %v721_v25 = vrot.slane %v707_v51, %v4949_v62  ;;  %v502_v30 = vrot.slane %v480_v42, 4  ;;  %v503_v18 = vrot.slane %v482_v61, 4 }
  0x9c   :  { %v508_v48 = vadd.f32 %v500_v27, %v496_v20  ;;  %v509_v26 = vadd.f32 %v501_v37, %v497_v10  ;;  %v512_v60 = vrot.slane %v476_v28, 6  ;;  %v513_v32 = vrot.slane %v478_v11, 6 }
  0x9d   :  { %v514_v50 = vrot.slane %v480_v42, 6  ;;  %v722_v43 = vcombine.low %v714_v19, %v721_v25  ;;  %v510_v1 = vadd.f32 %v502_v30, %v498_v63  ;;  %v511_v17 = vadd.f32 %v503_v18, %v499_v24 }
  0x9e   :  { %v515_v46 = vrot.slane %v482_v61, 6  ;;  %v520_v58 = vadd.f32 %v512_v60, %v508_v48  ;;  %v521_v34 = vadd.f32 %v513_v32, %v509_v26  ;;  %v532_v35 = vrot.slane %v4034_v49, 2 }
  0x9f   :  { %v533_v40 = vrot.slane %v4042_v2, 2  ;;  %2895 = vadd.xlane.f32.xlu1 %v722_v43  ;;  %v522_v57 = vadd.f32 %v514_v50, %v510_v1  ;;  %v534_v41 = vrot.slane %v4050_v21, 2  ;;  %v535_v54 = vrot.slane %v4058_v29, 2 }
  0xa0   :  { %v523_v52 = vadd.f32 %v515_v46, %v511_v17  ;;  %v524_v28 = vadd.f32 %v520_v58, %v4034_v49  ;;  %v525_v11 = vadd.f32 %v521_v34, %v4042_v2  ;;  %v544_v55 = vrot.slane %v4034_v49, 4 }
  0xa1   :  { %v545_v42 = vrot.slane %v4042_v2, 4  ;;  %v526_v44 = vadd.f32 %v522_v57, %v4050_v21  ;;  %v546_v61 = vrot.slane %v4050_v21, 4  ;;  %v547_v56 = vrot.slane %v4058_v29, 4 }
  0xa2   :  { %v527_v5 = vadd.f32 %v523_v52, %v4058_v29  ;;  %v540_v23 = vadd.f32 %v532_v35, %v524_v28  ;;  %v541_v36 = vadd.f32 %v533_v40, %v525_v11  ;;  %v556_v7 = vrot.slane %v4034_v49, 6 }
  0xa3   :  { %v557_v45 = vrot.slane %v4042_v2, 6  ;;  %v542_v13 = vadd.f32 %v534_v41, %v526_v44  ;;  %v558_v51 = vrot.slane %v4050_v21, 6  ;;  %v559_v20 = vrot.slane %v4058_v29, 6 }
  0xa4   :  { %v543_v59 = vadd.f32 %v535_v54, %v527_v5  ;;  %v552_v27 = vadd.f32 %v544_v55, %v540_v23  ;;  %v553_v37 = vadd.f32 %v545_v42, %v541_v36  ;;  %v728_v19 = vsel %vm592_vm5, %v3825_v9, 0.0 }
  0xa5   :  { %v4084_v10 = vsel %vm593_vm6, %v3828_v0, 0.0  ;;  %v554_v49 = vadd.f32 %v546_v61, %v542_v13  ;;  %v730_v2 = vsel %vm594_vm7, %v3839_v47, 0.0  ;;  %v4092_v21 = vsel %vm595_vm8, %v3850_v38, 0.0 }
  0xa6   :  { %v555_v63 = vadd.f32 %v547_v56, %v543_v59  ;;  %v564_v29 = vadd.f32 %v556_v7, %v552_v27  ;;  %v565_v24 = vadd.f32 %v557_v45, %v553_v37  ;;  %v732_v25 = vsel %vm596_vm9, %v3861_v14, 0.0 }
  0xa7   :  { %v4100_v30 = vsel %vm597_vm10, %v3872_v3, 0.0  ;;  %v566_v18 = vadd.f32 %v558_v51, %v554_v49  ;;  %v734_v26 = vsel %vm598_vm11, %v3883_v6, 0.0  ;;  %v4108_v60 = vsel %vm599_vm12, %v3894_v22, 0.0 }
  0xa8   :  { %v567_v48 = vadd.f32 %v559_v20, %v555_v63  ;;  %v572_v32 = vcombine.low %v564_v29, %v565_v24  ;;  %v740_v50 = vrot.slane %v728_v19, 2  ;;  %v741_v43 = vrot.slane %v730_v2, 2 }
  0xa9   :  { %v742_v1 = vrot.slane %v732_v25, 2  ;;  %v743_v46 = vrot.slane %v734_v26, 2  ;;  %v752_v58 = vrot.slane %v728_v19, 4  ;;  %v753_v34 = vrot.slane %v730_v2, 4 }
  0xaa   :  { %v573_v17 = vcombine.low %v566_v18, %v567_v48  ;;  %v580_v35 = vrot.slane %v572_v32, %v4949_v62  ;;  %v748_v40 = vadd.f32 %v740_v50, %v728_v19  ;;  %v749_v57 = vadd.f32 %v741_v43, %v730_v2 }
  0xab   :  { %v750_v52 = vadd.f32 %v742_v1, %v732_v25  ;;  %v751_v54 = vadd.f32 %v743_v46, %v734_v26  ;;  %v754_v28 = vrot.slane %v732_v25, 4  ;;  %v755_v11 = vrot.slane %v734_v26, 4 }
  0xac   :  { %v587_v41 = vrot.slane %v573_v17, %v4949_v62  ;;  %v760_v55 = vadd.f32 %v752_v58, %v748_v40  ;;  %v761_v42 = vadd.f32 %v753_v34, %v749_v57  ;;  %v764_v44 = vrot.slane %v728_v19, 6 }
  0xad   :  { %v765_v5 = vrot.slane %v730_v2, 6  ;;  %v762_v56 = vadd.f32 %v754_v28, %v750_v52  ;;  %v763_v23 = vadd.f32 %v755_v11, %v751_v54  ;;  %v766_v36 = vrot.slane %v732_v25, 6 }
  0xae   :  { %v588_v61 = vcombine.low %v580_v35, %v587_v41  ;;  %v767_v7 = vrot.slane %v734_v26, 6  ;;  %v772_v45 = vadd.f32 %v764_v44, %v760_v55  ;;  %v784_v59 = vrot.slane %v4084_v10, 2 }
  0xaf   :  { %v773_v13 = vadd.f32 %v765_v5, %v761_v42  ;;  %v774_v51 = vadd.f32 %v766_v36, %v762_v56  ;;  %v785_v20 = vrot.slane %v4092_v21, 2  ;;  %v786_v27 = vrot.slane %v4100_v30, 2 }
  0xb0   :  { %2874 = vadd.xlane.f32.xlu0 %v588_v61  ;;  %v787_v37 = vrot.slane %v4108_v60, 2  ;;  %v775_v49 = vadd.f32 %v767_v7, %v763_v23  ;;  %v776_v19 = vadd.f32 %v772_v45, %v4084_v10  ;;  %v796_v2 = vrot.slane %v4084_v10, 4 }
  0xb1   :  { %v777_v63 = vadd.f32 %v773_v13, %v4092_v21  ;;  %v778_v29 = vadd.f32 %v774_v51, %v4100_v30  ;;  %v797_v24 = vrot.slane %v4092_v21, 4  ;;  %v798_v25 = vrot.slane %v4100_v30, 4 }
  0xb2   :  { %v799_v18 = vrot.slane %v4108_v60, 4  ;;  %v779_v48 = vadd.f32 %v775_v49, %v4108_v60  ;;  %v792_v26 = vadd.f32 %v784_v59, %v776_v19  ;;  %v808_v50 = vrot.slane %v4084_v10, 6 }
  0xb3   :  { %v793_v32 = vadd.f32 %v785_v20, %v777_v63  ;;  %v794_v43 = vadd.f32 %v786_v27, %v778_v29  ;;  %v809_v1 = vrot.slane %v4092_v21, 6  ;;  %v810_v17 = vrot.slane %v4100_v30, 6 }
  0xb4   :  { %v811_v46 = vrot.slane %v4108_v60, 6  ;;  %v795_v58 = vadd.f32 %v787_v37, %v779_v48  ;;  %v804_v34 = vadd.f32 %v796_v2, %v792_v26  ;;  %vm844_vm13 = vcmp.eq.f32.partialorder %v3910_v31, 2.0 }
  0xb5   :  { %v805_v35 = vadd.f32 %v797_v24, %v793_v32  ;;  %v806_v40 = vadd.f32 %v798_v25, %v794_v43  ;;  %vm845_vm14 = vcmp.eq.f32.partialorder %v3914_v53, 2.0  ;;  %vm846_vm15 = vcmp.eq.f32.partialorder %v3918_v12, 2.0 }
  0xb6   :  { %vm847_vm0 = vcmp.eq.f32.partialorder %v3922_v39, 2.0  ;;  %v807_v10 = vadd.f32 %v799_v18, %v795_v58  ;;  %v816_v57 = vadd.f32 %v808_v50, %v804_v34  ;;  %vm848_vm1 = vcmp.eq.f32.partialorder %v3926_v4, 2.0 }
  0xb7   :  { %v817_v52 = vadd.f32 %v809_v1, %v805_v35  ;;  %v818_v21 = vadd.f32 %v810_v17, %v806_v40  ;;  %vm849_vm2 = vcmp.eq.f32.partialorder %v3930_v15, 2.0  ;;  %vm850_vm3 = vcmp.eq.f32.partialorder %v3934_v33, 2.0 }
  0xb8   :  { %vm851_vm4 = vcmp.eq.f32.partialorder %v3936_v8, 2.0  ;;  %v819_v30 = vadd.f32 %v811_v46, %v807_v10  ;;  %v3221_v41 = vsel %vm844_vm13, 1.0, %v3540_v16  ;;  %v4142_v54 = vsel %vm845_vm14, 1.0, %v3540_v16 }
  0xb9   :  { %v824_v60 = vcombine.low %v816_v57, %v817_v52  ;;  %v3223_v28 = vsel %vm846_vm15, 1.0, %v3540_v16  ;;  %v4150_v11 = vsel %vm847_vm0, 1.0, %v3540_v16  ;;  %v3225_v55 = vsel %vm848_vm1, 1.0, %v3540_v16 }
  0xba   :  { %v4158_v42 = vsel %vm849_vm2, 1.0, %v3540_v16  ;;  %v825_v44 = vcombine.low %v818_v21, %v819_v30  ;;  %v3227_v61 = vsel %vm850_vm3, 1.0, %v3540_v16  ;;  %v4167_v56 = vsel %vm851_vm4, 1.0, %v3540_v16 }
  0xbb   :  { %v832_v5 = vrot.slane %v824_v60, %v4949_v62  ;;  %v874_v23 = vrot.slane %v3221_v41, 2  ;;  %v875_v36 = vrot.slane %v3223_v28, 2  ;;  %v876_v7 = vrot.slane %v3225_v55, 2 }
  0xbc   :  { %v877_v45 = vrot.slane %v3227_v61, 2  ;;  %v839_v13 = vrot.slane %v825_v44, %v4949_v62  ;;  %v886_v59 = vrot.slane %v3221_v41, 4  ;;  %v887_v51 = vrot.slane %v3223_v28, 4 }
  0xbd   :  { %v888_v20 = vrot.slane %v3225_v55, 4  ;;  %v882_v27 = vadd.f32 %v3221_v41, %v874_v23  ;;  %v883_v37 = vadd.f32 %v3223_v28, %v875_v36  ;;  %v884_v49 = vadd.f32 %v3225_v55, %v876_v7 }
  0xbe   :  { %v885_v19 = vadd.f32 %v3227_v61, %v877_v45  ;;  %v840_v63 = vcombine.low %v832_v5, %v839_v13  ;;  %v889_v2 = vrot.slane %v3227_v61, 4  ;;  %v898_v29 = vrot.slane %v3221_v41, 6 }
  0xbf   :  { %v899_v24 = vrot.slane %v3223_v28, 6  ;;  %v894_v25 = vadd.f32 %v886_v59, %v882_v27  ;;  %v895_v18 = vadd.f32 %v887_v51, %v883_v37  ;;  %v896_v48 = vadd.f32 %v888_v20, %v884_v49 }
  0xc0   :  { %v900_v26 = vrot.slane %v3225_v55, 6  ;;  %2905 = vadd.xlane.f32.xlu1 %v840_v63  ;;  %v897_v32 = vadd.f32 %v889_v2, %v885_v19  ;;  %v901_v50 = vrot.slane %v3227_v61, 6  ;;  %v918_v43 = vrot.slane %v4142_v54, 2 }
  0xc1   :  { %v919_v1 = vrot.slane %v4150_v11, 2  ;;  %v906_v17 = vadd.f32 %v898_v29, %v894_v25  ;;  %v907_v46 = vadd.f32 %v899_v24, %v895_v18  ;;  %v920_v34 = vrot.slane %v4158_v42, 2 }
  0xc2   :  { %v908_v58 = vadd.f32 %v900_v26, %v896_v48  ;;  %v909_v35 = vadd.f32 %v901_v50, %v897_v32  ;;  %v921_v40 = vrot.slane %v4167_v56, 2  ;;  %v930_v10 = vrot.slane %v4142_v54, 4 }
  0xc3   :  { %v931_v57 = vrot.slane %v4150_v11, 4  ;;  %v910_v52 = vadd.f32 %v4142_v54, %v906_v17  ;;  %v911_v21 = vadd.f32 %v4150_v11, %v907_v46  ;;  %v932_v60 = vrot.slane %v4158_v42, 4 }
  0xc4   :  { %v912_v30 = vadd.f32 %v4158_v42, %v908_v58  ;;  %v913_v41 = vadd.f32 %v4167_v56, %v909_v35  ;;  %v933_v28 = vrot.slane %v4167_v56, 4  ;;  %v942_v55 = vrot.slane %v4142_v54, 6 }
  0xc5   :  { %v943_v44 = vrot.slane %v4150_v11, 6  ;;  %v926_v5 = vadd.f32 %v918_v43, %v910_v52  ;;  %v927_v61 = vadd.f32 %v919_v1, %v911_v21  ;;  %v944_v36 = vrot.slane %v4158_v42, 6 }
  0xc6   :  { %v928_v23 = vadd.f32 %v920_v34, %v912_v30  ;;  %v929_v7 = vadd.f32 %v921_v40, %v913_v41  ;;  %v945_v45 = vrot.slane %v4167_v56, 6  ;;  %v980_v13 = vsel %vm844_vm13, %v3825_v9, 0.0 }
  0xc7   :  { %v4192_v59 = vsel %vm845_vm14, %v3828_v0, 0.0  ;;  %v938_v54 = vadd.f32 %v930_v10, %v926_v5  ;;  %v939_v51 = vadd.f32 %v931_v57, %v927_v61  ;;  %v982_v20 = vsel %vm846_vm15, %v3839_v47, 0.0 }
  0xc8   :  { %v940_v11 = vadd.f32 %v932_v60, %v928_v23  ;;  %v941_v42 = vadd.f32 %v933_v28, %v929_v7  ;;  %v4200_v56 = vsel %vm847_vm0, %v3850_v38, 0.0  ;;  %v984_v27 = vsel %vm848_vm1, %v3861_v14, 0.0 }
  0xc9   :  { %v4208_v37 = vsel %vm849_vm2, %v3872_v3, 0.0  ;;  %v950_v49 = vadd.f32 %v942_v55, %v938_v54  ;;  %v951_v19 = vadd.f32 %v943_v44, %v939_v51  ;;  %v986_v2 = vsel %vm850_vm3, %v3883_v6, 0.0 }
  0xca   :  { %v952_v63 = vadd.f32 %v944_v36, %v940_v11  ;;  %v953_v29 = vadd.f32 %v945_v45, %v941_v42  ;;  %v4216_v24 = vsel %vm851_vm4, %v3894_v22, 0.0  ;;  %v992_v25 = vrot.slane %v980_v13, 2 }
  0xcb   :  { %v993_v18 = vrot.slane %v982_v20, 2  ;;  %v958_v48 = vcombine.low %v950_v49, %v951_v19  ;;  %v994_v26 = vrot.slane %v984_v27, 2  ;;  %v995_v32 = vrot.slane %v986_v2, 2 }
  0xcc   :  { %v1004_v50 = vrot.slane %v980_v13, 4  ;;  %v959_v43 = vcombine.low %v952_v63, %v953_v29  ;;  %v1000_v1 = vadd.f32 %v992_v25, %v980_v13  ;;  %v1005_v46 = vrot.slane %v982_v20, 4 }
  0xcd   :  { %v1001_v17 = vadd.f32 %v993_v18, %v982_v20  ;;  %v966_v58 = vrot.slane %v958_v48, %v4949_v62  ;;  %v1002_v34 = vadd.f32 %v994_v26, %v984_v27  ;;  %v1003_v35 = vadd.f32 %v995_v32, %v986_v2 }
  0xce   :  { %v1006_v40 = vrot.slane %v984_v27, 4  ;;  %v973_v10 = vrot.slane %v959_v43, %v4949_v62  ;;  %v1007_v57 = vrot.slane %v986_v2, 4  ;;  %v1012_v52 = vadd.f32 %v1004_v50, %v1000_v1 }
  0xcf   :  { %v1013_v21 = vadd.f32 %v1005_v46, %v1001_v17  ;;  %v1016_v60 = vrot.slane %v980_v13, 6  ;;  %v1017_v41 = vrot.slane %v982_v20, 6  ;;  %v1018_v28 = vrot.slane %v984_v27, 6 }
  0xd0   :  { %v1014_v30 = vadd.f32 %v1006_v40, %v1002_v34  ;;  %v974_v55 = vcombine.low %v966_v58, %v973_v10  ;;  %v1015_v44 = vadd.f32 %v1007_v57, %v1003_v35  ;;  %v1019_v5 = vrot.slane %v986_v2, 6 }
  0xd1   :  { %v1036_v61 = vrot.slane %v4192_v59, 2  ;;  %v1024_v23 = vadd.f32 %v1016_v60, %v1012_v52  ;;  %v1025_v36 = vadd.f32 %v1017_v41, %v1013_v21  ;;  %v1037_v45 = vrot.slane %v4200_v56, 2 }
  0xd2   :  { %v1026_v7 = vadd.f32 %v1018_v28, %v1014_v30  ;;  %2926 = vadd.xlane.f32.xlu0 %v974_v55  ;;  %v1027_v54 = vadd.f32 %v1019_v5, %v1015_v44  ;;  %v1038_v51 = vrot.slane %v4208_v37, 2  ;;  %v1039_v11 = vrot.slane %v4216_v24, 2 }
  0xd3   :  { %v1048_v13 = vrot.slane %v4192_v59, 4  ;;  %v1028_v20 = vadd.f32 %v1024_v23, %v4192_v59  ;;  %v1029_v42 = vadd.f32 %v1025_v36, %v4200_v56  ;;  %v1049_v49 = vrot.slane %v4200_v56, 4 }
  0xd4   :  { %v1030_v27 = vadd.f32 %v1026_v7, %v4208_v37  ;;  %v1031_v19 = vadd.f32 %v1027_v54, %v4216_v24  ;;  %v1050_v63 = vrot.slane %v4208_v37, 4  ;;  %v1051_v2 = vrot.slane %v4216_v24, 4 }
  0xd5   :  { %v1060_v29 = vrot.slane %v4192_v59, 6  ;;  %v1044_v25 = vadd.f32 %v1036_v61, %v1028_v20  ;;  %v1045_v18 = vadd.f32 %v1037_v45, %v1029_v42  ;;  %v1061_v26 = vrot.slane %v4200_v56, 6 }
  0xd6   :  { %v1046_v48 = vadd.f32 %v1038_v51, %v1030_v27  ;;  %v1047_v32 = vadd.f32 %v1039_v11, %v1031_v19  ;;  %v1062_v50 = vrot.slane %v4208_v37, 6  ;;  %v1063_v43 = vrot.slane %v4216_v24, 6 }
  0xd7   :  { %vm1096_vm5 = vcmp.eq.f32.partialorder %v3910_v31, 3.0  ;;  %v1056_v1 = vadd.f32 %v1048_v13, %v1044_v25  ;;  %v1057_v17 = vadd.f32 %v1049_v49, %v1045_v18  ;;  %vm1097_vm6 = vcmp.eq.f32.partialorder %v3914_v53, 3.0 }
  0xd8   :  { %v1058_v46 = vadd.f32 %v1050_v63, %v1046_v48  ;;  %v1059_v58 = vadd.f32 %v1051_v2, %v1047_v32  ;;  %vm1098_vm7 = vcmp.eq.f32.partialorder %v3918_v12, 3.0  ;;  %vm1099_vm8 = vcmp.eq.f32.partialorder %v3922_v39, 3.0 }
  0xd9   :  { %vm1100_vm9 = vcmp.eq.f32.partialorder %v3926_v4, 3.0  ;;  %v1068_v59 = vadd.f32 %v1060_v29, %v1056_v1  ;;  %v1069_v56 = vadd.f32 %v1061_v26, %v1057_v17  ;;  %vm1101_vm10 = vcmp.eq.f32.partialorder %v3930_v15, 3.0 }
  0xda   :  { %v1070_v34 = vadd.f32 %v1062_v50, %v1058_v46  ;;  %v1071_v37 = vadd.f32 %v1063_v43, %v1059_v58  ;;  %vm1102_vm11 = vcmp.eq.f32.partialorder %v3934_v33, 3.0  ;;  %vm1103_vm12 = vcmp.eq.f32.partialorder %v3936_v8, 3.0 }
  0xdb   :  { %v3229_v24 = vsel %vm1096_vm5, 1.0, %v3540_v16  ;;  %v1076_v35 = vcombine.low %v1068_v59, %v1069_v56  ;;  %v4250_v40 = vsel %vm1097_vm6, 1.0, %v3540_v16  ;;  %v3231_v10 = vsel %vm1098_vm7, 1.0, %v3540_v16 }
  0xdc   :  { %v4258_v57 = vsel %vm1099_vm8, 1.0, %v3540_v16  ;;  %v1077_v52 = vcombine.low %v1070_v34, %v1071_v37  ;;  %v3233_v21 = vsel %vm1100_vm9, 1.0, %v3540_v16  ;;  %v4266_v30 = vsel %vm1101_vm10, 1.0, %v3540_v16 }
  0xdd   :  { %v3235_v60 = vsel %vm1102_vm11, 1.0, %v3540_v16  ;;  %v1084_v41 = vrot.slane %v1076_v35, %v4949_v62  ;;  %v3236_v28 = vsel %vm1103_vm12, 1.0, %v3540_v16  ;;  %v1126_v55 = vrot.slane %v3229_v24, 2 }
  0xde   :  { %v1127_v44 = vrot.slane %v3231_v10, 2  ;;  %v1091_v5 = vrot.slane %v1077_v52, %v4949_v62  ;;  %v1128_v61 = vrot.slane %v3233_v21, 2  ;;  %v1129_v23 = vrot.slane %v3235_v60, 2 }
  0xdf   :  { %v1138_v36 = vrot.slane %v3229_v24, 4  ;;  %v1134_v7 = vadd.f32 %v3229_v24, %v1126_v55  ;;  %v1139_v54 = vrot.slane %v3231_v10, 4  ;;  %v1140_v51 = vrot.slane %v3233_v21, 4 }
  0xe0   :  { %v1135_v45 = vadd.f32 %v3231_v10, %v1127_v44  ;;  %v1092_v11 = vcombine.low %v1084_v41, %v1091_v5  ;;  %v1136_v13 = vadd.f32 %v3233_v21, %v1128_v61  ;;  %v1137_v20 = vadd.f32 %v3235_v60, %v1129_v23 }
  0xe1   :  { %v1141_v42 = vrot.slane %v3235_v60, 4  ;;  %v1146_v27 = vadd.f32 %v1138_v36, %v1134_v7  ;;  %v1150_v19 = vrot.slane %v3229_v24, 6  ;;  %v1151_v63 = vrot.slane %v3231_v10, 6 }
  0xe2   :  { %v1147_v49 = vadd.f32 %v1139_v54, %v1135_v45  ;;  %2936 = vadd.xlane.f32.xlu1 %v1092_v11  ;;  %v1148_v2 = vadd.f32 %v1140_v51, %v1136_v13  ;;  %v1152_v25 = vrot.slane %v3233_v21, 6  ;;  %v1153_v18 = vrot.slane %v3235_v60, 6 }
  0xe3   :  { %v1149_v29 = vadd.f32 %v1141_v42, %v1137_v20  ;;  %v1158_v48 = vadd.f32 %v1150_v19, %v1146_v27  ;;  %v1170_v32 = vrot.slane %v4250_v40, 2  ;;  %v1171_v50 = vrot.slane %v4258_v57, 2 }
  0xe4   :  { %v1159_v26 = vadd.f32 %v1151_v63, %v1147_v49  ;;  %v1160_v43 = vadd.f32 %v1152_v25, %v1148_v2  ;;  %v1172_v17 = vrot.slane %v4266_v30, 2  ;;  %v1173_v46 = vrot.slane %v3236_v28, 2 }
  0xe5   :  { %v1161_v1 = vadd.f32 %v1153_v18, %v1149_v29  ;;  %v1162_v58 = vadd.f32 %v4250_v40, %v1158_v48  ;;  %v1182_v56 = vrot.slane %v4250_v40, 4  ;;  %v1183_v34 = vrot.slane %v4258_v57, 4 }
  0xe6   :  { %v1163_v59 = vadd.f32 %v4258_v57, %v1159_v26  ;;  %v1164_v37 = vadd.f32 %v4266_v30, %v1160_v43  ;;  %v1184_v35 = vrot.slane %v4266_v30, 4  ;;  %v1185_v10 = vrot.slane %v3236_v28, 4 }
  0xe7   :  { %v1165_v24 = vadd.f32 %v3236_v28, %v1161_v1  ;;  %v1178_v52 = vadd.f32 %v1170_v32, %v1162_v58  ;;  %v1194_v60 = vrot.slane %v4250_v40, 6  ;;  %v1195_v41 = vrot.slane %v4258_v57, 6 }
  0xe8   :  { %v1179_v21 = vadd.f32 %v1171_v50, %v1163_v59  ;;  %v1180_v55 = vadd.f32 %v1172_v17, %v1164_v37  ;;  %v1196_v5 = vrot.slane %v4266_v30, 6  ;;  %v1197_v61 = vrot.slane %v3236_v28, 6 }
  0xe9   :  { %v1181_v44 = vadd.f32 %v1173_v46, %v1165_v24  ;;  %v1190_v23 = vadd.f32 %v1182_v56, %v1178_v52  ;;  %v1232_v7 = vsel %vm1096_vm5, %v3825_v9, 0.0  ;;  %v4294_v45 = vsel %vm1097_vm6, %v3828_v0, 0.0 }
  0xea   :  { %v1191_v36 = vadd.f32 %v1183_v34, %v1179_v21  ;;  %v1192_v54 = vadd.f32 %v1184_v35, %v1180_v55  ;;  %v1234_v57 = vsel %vm1098_vm7, %v3839_v47, 0.0  ;;  %v4302_v30 = vsel %vm1099_vm8, %v3850_v38, 0.0 }
  0xeb   :  { %v1193_v40 = vadd.f32 %v1185_v10, %v1181_v44  ;;  %v1202_v28 = vadd.f32 %v1194_v60, %v1190_v23  ;;  %v1236_v11 = vsel %vm1100_vm9, %v3861_v14, 0.0  ;;  %v4310_v13 = vsel %vm1101_vm10, %v3872_v3, 0.0 }
  0xec   :  { %v1203_v51 = vadd.f32 %v1195_v41, %v1191_v36  ;;  %v1204_v20 = vadd.f32 %v1196_v5, %v1192_v54  ;;  %v1238_v27 = vsel %vm1102_vm11, %v3883_v6, 0.0  ;;  %v4318_v49 = vsel %vm1103_vm12, %v3894_v22, 0.0 }
  0xed   :  { %v1205_v42 = vadd.f32 %v1197_v61, %v1193_v40  ;;  %v1244_v63 = vrot.slane %v1232_v7, 2  ;;  %v1245_v2 = vrot.slane %v1234_v57, 2  ;;  %v1246_v29 = vrot.slane %v1236_v11, 2 }
  0xee   :  { %v1210_v19 = vcombine.low %v1202_v28, %v1203_v51  ;;  %v1247_v18 = vrot.slane %v1238_v27, 2  ;;  %v1256_v48 = vrot.slane %v1232_v7, 4  ;;  %v1257_v26 = vrot.slane %v1234_v57, 4 }
  0xef   :  { %v1211_v25 = vcombine.low %v1204_v20, %v1205_v42  ;;  %v1252_v50 = vadd.f32 %v1244_v63, %v1232_v7  ;;  %v1253_v43 = vadd.f32 %v1245_v2, %v1234_v57  ;;  %v1254_v1 = vadd.f32 %v1246_v29, %v1236_v11 }
  0xf0   :  { %v1218_v32 = vrot.slane %v1210_v19, %v4949_v62  ;;  %v1255_v46 = vadd.f32 %v1247_v18, %v1238_v27  ;;  %v1258_v58 = vrot.slane %v1236_v11, 4  ;;  %v1259_v59 = vrot.slane %v1238_v27, 4 }
  0xf1   :  { %v1225_v17 = vrot.slane %v1211_v25, %v4949_v62  ;;  %v1264_v56 = vadd.f32 %v1256_v48, %v1252_v50  ;;  %v1265_v34 = vadd.f32 %v1257_v26, %v1253_v43  ;;  %v1268_v37 = vrot.slane %v1232_v7, 6 }
  0xf2   :  { %v1269_v24 = vrot.slane %v1234_v57, 6  ;;  %v1266_v10 = vadd.f32 %v1258_v58, %v1254_v1  ;;  %v1267_v52 = vadd.f32 %v1259_v59, %v1255_v46  ;;  %v1270_v21 = vrot.slane %v1236_v11, 6 }
  0xf3   :  { %v1226_v35 = vcombine.low %v1218_v32, %v1225_v17  ;;  %v1271_v60 = vrot.slane %v1238_v27, 6  ;;  %v1276_v41 = vadd.f32 %v1268_v37, %v1264_v56  ;;  %v1288_v44 = vrot.slane %v4294_v45, 2 }
  0xf4   :  { %v1277_v55 = vadd.f32 %v1269_v24, %v1265_v34  ;;  %v1278_v5 = vadd.f32 %v1270_v21, %v1266_v10  ;;  %v1289_v61 = vrot.slane %v4302_v30, 2  ;;  %v1290_v23 = vrot.slane %v4310_v13, 2 }
  0xf5   :  { %2957 = vadd.xlane.f32.xlu0 %v1226_v35  ;;  %v1291_v36 = vrot.slane %v4318_v49, 2  ;;  %v1279_v54 = vadd.f32 %v1271_v60, %v1267_v52  ;;  %v1280_v7 = vadd.f32 %v1276_v41, %v4294_v45  ;;  %v1300_v57 = vrot.slane %v4294_v45, 4 }
  0xf6   :  { %v1281_v40 = vadd.f32 %v1277_v55, %v4302_v30  ;;  %v1282_v28 = vadd.f32 %v1278_v5, %v4310_v13  ;;  %v1301_v51 = vrot.slane %v4302_v30, 4  ;;  %v1302_v11 = vrot.slane %v4310_v13, 4 }
  0xf7   :  { %v1303_v20 = vrot.slane %v4318_v49, 4  ;;  %v1283_v42 = vadd.f32 %v1279_v54, %v4318_v49  ;;  %v1296_v27 = vadd.f32 %v1288_v44, %v1280_v7  ;;  %v1312_v63 = vrot.slane %v4294_v45, 6 }
  0xf8   :  { %v1297_v19 = vadd.f32 %v1289_v61, %v1281_v40  ;;  %v1298_v2 = vadd.f32 %v1290_v23, %v1282_v28  ;;  %v1313_v29 = vrot.slane %v4302_v30, 6  ;;  %v1314_v25 = vrot.slane %v4310_v13, 6 }
  0xf9   :  { %v1315_v18 = vrot.slane %v4318_v49, 6  ;;  %v1299_v48 = vadd.f32 %v1291_v36, %v1283_v42  ;;  %v1308_v26 = vadd.f32 %v1300_v57, %v1296_v27  ;;  %vm1348_vm13 = vcmp.eq.f32.partialorder %v3910_v31, 4.0 }
  0xfa   :  { %v1309_v32 = vadd.f32 %v1301_v51, %v1297_v19  ;;  %v1310_v50 = vadd.f32 %v1302_v11, %v1298_v2  ;;  %vm1349_vm14 = vcmp.eq.f32.partialorder %v3914_v53, 4.0  ;;  %vm1350_vm15 = vcmp.eq.f32.partialorder %v3918_v12, 4.0 }
  0xfb   :  { %vm1351_vm0 = vcmp.eq.f32.partialorder %v3922_v39, 4.0  ;;  %v1311_v45 = vadd.f32 %v1303_v20, %v1299_v48  ;;  %v1320_v43 = vadd.f32 %v1312_v63, %v1308_v26  ;;  %vm1352_vm1 = vcmp.eq.f32.partialorder %v3926_v4, 4.0 }
  0xfc   :  { %v1321_v1 = vadd.f32 %v1313_v29, %v1309_v32  ;;  %v1322_v30 = vadd.f32 %v1314_v25, %v1310_v50  ;;  %vm1353_vm2 = vcmp.eq.f32.partialorder %v3930_v15, 4.0  ;;  %vm1354_vm3 = vcmp.eq.f32.partialorder %v3934_v33, 4.0 }
  0xfd   :  { %vm1355_vm4 = vcmp.eq.f32.partialorder %v3936_v8, 4.0  ;;  %v1323_v13 = vadd.f32 %v1315_v18, %v1311_v45  ;;  %v3237_v17 = vsel %vm1348_vm13, 1.0, %v3540_v16  ;;  %v3238_v46 = vsel %vm1349_vm14, 1.0, %v3540_v16 }
  0xfe   :  { %v1328_v49 = vcombine.low %v1320_v43, %v1321_v1  ;;  %v3239_v58 = vsel %vm1350_vm15, 1.0, %v3540_v16  ;;  %v3240_v59 = vsel %vm1351_vm0, 1.0, %v3540_v16  ;;  %v3241_v56 = vsel %vm1352_vm1, 1.0, %v3540_v16 }
  0xff   :  { %v3242_v34 = vsel %vm1353_vm2, 1.0, %v3540_v16  ;;  %v1329_v37 = vcombine.low %v1322_v30, %v1323_v13  ;;  %v3243_v35 = vsel %vm1354_vm3, 1.0, %v3540_v16  ;;  %v3244_v10 = vsel %vm1355_vm4, 1.0, %v3540_v16 }
 0x100   :  { %v1336_v24 = vrot.slane %v1328_v49, %v4949_v62  ;;  %v1378_v52 = vrot.slane %v3237_v17, 2  ;;  %v1379_v21 = vrot.slane %v3239_v58, 2  ;;  %v1380_v60 = vrot.slane %v3241_v56, 2 }
 0x101   :  { %v1381_v41 = vrot.slane %v3243_v35, 2  ;;  %v1343_v55 = vrot.slane %v1329_v37, %v4949_v62  ;;  %v1390_v44 = vrot.slane %v3237_v17, 4  ;;  %v1391_v5 = vrot.slane %v3239_v58, 4 }
 0x102   :  { %v1392_v61 = vrot.slane %v3241_v56, 4  ;;  %v1386_v23 = vadd.f32 %v3237_v17, %v1378_v52  ;;  %v1387_v36 = vadd.f32 %v3239_v58, %v1379_v21  ;;  %v1388_v54 = vadd.f32 %v3241_v56, %v1380_v60 }
 0x103   :  { %v1389_v7 = vadd.f32 %v3243_v35, %v1381_v41  ;;  %v1344_v40 = vcombine.low %v1336_v24, %v1343_v55  ;;  %v1393_v57 = vrot.slane %v3243_v35, 4  ;;  %v1402_v28 = vrot.slane %v3237_v17, 6 }
 0x104   :  { %v1403_v51 = vrot.slane %v3239_v58, 6  ;;  %v1398_v11 = vadd.f32 %v1390_v44, %v1386_v23  ;;  %v1399_v20 = vadd.f32 %v1391_v5, %v1387_v36  ;;  %v1400_v42 = vadd.f32 %v1392_v61, %v1388_v54 }
 0x105   :  { %v1404_v27 = vrot.slane %v3241_v56, 6  ;;  %2967 = vadd.xlane.f32.xlu1 %v1344_v40  ;;  %v1401_v19 = vadd.f32 %v1393_v57, %v1389_v7  ;;  %v1405_v63 = vrot.slane %v3243_v35, 6  ;;  %v1422_v2 = vrot.slane %v3238_v46, 2 }
 0x106   :  { %v1423_v29 = vrot.slane %v3240_v59, 2  ;;  %v1410_v25 = vadd.f32 %v1402_v28, %v1398_v11  ;;  %v1411_v18 = vadd.f32 %v1403_v51, %v1399_v20  ;;  %v1424_v26 = vrot.slane %v3242_v34, 2 }
 0x107   :  { %v1412_v48 = vadd.f32 %v1404_v27, %v1400_v42  ;;  %v1413_v32 = vadd.f32 %v1405_v63, %v1401_v19  ;;  %v1425_v50 = vrot.slane %v3244_v10, 2  ;;  %v1434_v45 = vrot.slane %v3238_v46, 4 }
 0x108   :  { %v1435_v43 = vrot.slane %v3240_v59, 4  ;;  %v1414_v1 = vadd.f32 %v3238_v46, %v1410_v25  ;;  %v1415_v30 = vadd.f32 %v3240_v59, %v1411_v18  ;;  %v1436_v49 = vrot.slane %v3242_v34, 4 }
 0x109   :  { %v1416_v13 = vadd.f32 %v3242_v34, %v1412_v48  ;;  %v1417_v17 = vadd.f32 %v3244_v10, %v1413_v32  ;;  %v1437_v58 = vrot.slane %v3244_v10, 4  ;;  %v1446_v56 = vrot.slane %v3238_v46, 6 }
 0x10a   :  { %v1447_v37 = vrot.slane %v3240_v59, 6  ;;  %v1430_v24 = vadd.f32 %v1422_v2, %v1414_v1  ;;  %v1431_v35 = vadd.f32 %v1423_v29, %v1415_v30  ;;  %v1448_v21 = vrot.slane %v3242_v34, 6 }
 0x10b   :  { %v1432_v52 = vadd.f32 %v1424_v26, %v1416_v13  ;;  %v1433_v60 = vadd.f32 %v1425_v50, %v1417_v17  ;;  %v1449_v41 = vrot.slane %v3244_v10, 6  ;;  %v1484_v19 = vsel %vm1348_vm13, %v3825_v9, 0.0 }
 0x10c   :  { %v1442_v55 = vadd.f32 %v1434_v45, %v1430_v24  ;;  %v1443_v44 = vadd.f32 %v1435_v43, %v1431_v35  ;;  %v1486_v63 = vsel %vm1350_vm15, %v3839_v47, 0.0  ;;  %v1485_v2 = vsel %vm1349_vm14, %v3828_v0, 0.0 }
 0x10d   :  { %v1444_v5 = vadd.f32 %v1436_v49, %v1432_v52  ;;  %v1445_v61 = vadd.f32 %v1437_v58, %v1433_v60  ;;  %v1487_v29 = vsel %vm1351_vm0, %v3850_v38, 0.0  ;;  %v1488_v25 = vsel %vm1352_vm1, %v3861_v14, 0.0 }
 0x10e   :  { %v1454_v23 = vadd.f32 %v1446_v56, %v1442_v55  ;;  %v1455_v36 = vadd.f32 %v1447_v37, %v1443_v44  ;;  %v1490_v18 = vsel %vm1354_vm3, %v3883_v6, 0.0  ;;  %v1496_v48 = vrot.slane %v1484_v19, 2 }
 0x10f   :  { %v1456_v54 = vadd.f32 %v1448_v21, %v1444_v5  ;;  %v1457_v7 = vadd.f32 %v1449_v41, %v1445_v61  ;;  %v1497_v26 = vrot.slane %v1486_v63, 2  ;;  %v1498_v32 = vrot.slane %v1488_v25, 2 }
 0x110   :  { %v1462_v40 = vcombine.low %v1454_v23, %v1455_v36  ;;  %v1499_v50 = vrot.slane %v1490_v18, 2  ;;  %v1489_v45 = vsel %vm1353_vm2, %v3872_v3, 0.0  ;;  %v1508_v43 = vrot.slane %v1484_v19, 4 }
 0x111   :  { %v1463_v57 = vcombine.low %v1456_v54, %v1457_v7  ;;  %v1509_v1 = vrot.slane %v1486_v63, 4  ;;  %v1510_v30 = vrot.slane %v1488_v25, 4  ;;  %v1504_v13 = vadd.f32 %v1496_v48, %v1484_v19 }
 0x112   :  { %v1470_v28 = vrot.slane %v1462_v40, %v4949_v62  ;;  %v1505_v49 = vadd.f32 %v1497_v26, %v1486_v63  ;;  %v1506_v17 = vadd.f32 %v1498_v32, %v1488_v25  ;;  %v1507_v58 = vadd.f32 %v1499_v50, %v1490_v18 }
 0x113   :  { %v1477_v46 = vrot.slane %v1463_v57, %v4949_v62  ;;  %v1491_v56 = vsel %vm1355_vm4, %v3894_v22, 0.0  ;;  %v1511_v37 = vrot.slane %v1490_v18, 4  ;;  %v1520_v24 = vrot.slane %v1484_v19, 6 }
 0x114   :  { %v1521_v35 = vrot.slane %v1486_v63, 6  ;;  %v1516_v52 = vadd.f32 %v1508_v43, %v1504_v13  ;;  %v1517_v21 = vadd.f32 %v1509_v1, %v1505_v49  ;;  %v1518_v60 = vadd.f32 %v1510_v30, %v1506_v17 }
 0x115   :  { %v1478_v59 = vcombine.low %v1470_v28, %v1477_v46  ;;  %v1522_v41 = vrot.slane %v1488_v25, 6  ;;  %v1519_v55 = vadd.f32 %v1511_v37, %v1507_v58  ;;  %v1523_v44 = vrot.slane %v1490_v18, 6 }
 0x116   :  { %v1540_v5 = vrot.slane %v1485_v2, 2  ;;  %v1528_v61 = vadd.f32 %v1520_v24, %v1516_v52  ;;  %v1529_v23 = vadd.f32 %v1521_v35, %v1517_v21  ;;  %v1541_v54 = vrot.slane %v1487_v29, 2 }
 0x117   :  { %2988 = vadd.xlane.f32.xlu0 %v1478_v59  ;;  %v1530_v36 = vadd.f32 %v1522_v41, %v1518_v60  ;;  %v1531_v7 = vadd.f32 %v1523_v44, %v1519_v55  ;;  %v1542_v40 = vrot.slane %v1489_v45, 2  ;;  %v1543_v57 = vrot.slane %v1491_v56, 2 }
 0x118   :  { %v1532_v28 = vadd.f32 %v1528_v61, %v1485_v2  ;;  %v1533_v46 = vadd.f32 %v1529_v23, %v1487_v29  ;;  %v1555_v19 = vrot.slane %v1491_v56, 4  ;;  %v1564_v25 = vrot.slane %v1485_v2, 6 }
 0x119   :  { %v1534_v59 = vadd.f32 %v1530_v36, %v1489_v45  ;;  %v1565_v18 = vrot.slane %v1487_v29, 6  ;;  %v1566_v50 = vrot.slane %v1489_v45, 6  ;;  %v1567_v1 = vrot.slane %v1491_v56, 6 }
 0x11a   :  { %v2865_v51 = vpop.xlane.xlu0 %2864  ;;  %vm1600_vm5 = vcmp.eq.f32.partialorder %v3910_v31, 5.0  ;;  %vm1601_vm6 = vcmp.eq.f32.partialorder %v3914_v53, 5.0  ;;  %vm1602_vm7 = vcmp.eq.f32.partialorder %v3918_v12, 5.0  ;;  %vm1603_vm8 = vcmp.eq.f32.partialorder %v3922_v39, 5.0 }
 0x11b   :  { %v2866_v34 = vrot.slane %v2865_v51, 4  ;;  %vm1604_vm9 = vcmp.eq.f32.partialorder %v3926_v4, 5.0  ;;  %vm1605_vm10 = vcmp.eq.f32.partialorder %v3930_v15, 5.0  ;;  %vm1606_vm11 = vcmp.eq.f32.partialorder %v3934_v33, 5.0 }
 0x11c   :  { %vm1607_vm12 = vcmp.eq.f32.partialorder %v3936_v8, 5.0  ;;  %v4412_v37 = vsel %vm1601_vm6, 1.0, %v3540_v16  ;;  %v3247_v24 = vsel %vm1602_vm7, 1.0, %v3540_v16  ;;  %v4421_v52 = vsel %vm1603_vm8, 1.0, %v3540_v16 }
 0x11d   :  { %v2867_v11 = vadd.f32 %v2866_v34, %v2865_v51  ;;  %v1552_v51 = vrot.slane %v1485_v2, 4  ;;  %v1535_v34 = vadd.f32 %v1531_v7, %v1491_v56  ;;  %v3249_v21 = vsel %vm1604_vm9, 1.0, %v3540_v16 }
 0x11e   :  { %v4429_v60 = vsel %vm1605_vm10, 1.0, %v3540_v16  ;;  %v3251_v44 = vsel %vm1606_vm11, 1.0, %v3540_v16  ;;  %v1631_v23 = vrot.slane %v3247_v24, 2  ;;  %v1632_v36 = vrot.slane %v3249_v21, 2 }
 0x11f   :  { %v2868_v10 = vrot.slane %v2867_v11, 2  ;;  %v1551_v63 = vadd.f32 %v1543_v57, %v1535_v34  ;;  %vm1852_vm13 = vcmp.eq.f32.partialorder %v3910_v31, 6.0  ;;  %vm1854_vm14 = vcmp.eq.f32.partialorder %v3918_v12, 6.0 }
 0x120   :  { %vm1856_vm15 = vcmp.eq.f32.partialorder %v3926_v4, 6.0  ;;  %vm1853_vm0 = vcmp.eq.f32.partialorder %v3914_v53, 6.0  ;;  %vm1858_vm1 = vcmp.eq.f32.partialorder %v3934_v33, 6.0  ;;  %vm1855_vm2 = vcmp.eq.f32.partialorder %v3922_v39, 6.0 }
 0x121   :  { %v2869_v20 = vadd.f32 %v2868_v10, %v2867_v11  ;;  %v1553_v11 = vrot.slane %v1487_v29, 4  ;;  %v1554_v10 = vrot.slane %v1489_v45, 4  ;;  %v1563_v43 = vadd.f32 %v1555_v19, %v1551_v63 }
 0x122   :  { %v3245_v45 = vsel %vm1600_vm5, 1.0, %v3540_v16  ;;  %v1655_v63 = vrot.slane %v3247_v24, 6  ;;  %vm1857_vm3 = vcmp.eq.f32.partialorder %v3930_v15, 6.0  ;;  %vm1859_vm4 = vcmp.eq.f32.partialorder %v3936_v8, 6.0 }
 0x123   :  { %v2870_v42 = vrot.slane %v2869_v20, 1  ;;  %v1575_v17 = vadd.f32 %v1567_v1, %v1563_v43  ;;  %v1630_v61 = vrot.slane %v3245_v45, 2  ;;  %v1642_v57 = vrot.slane %v3245_v45, 4 }
 0x124   :  { %v1674_v1 = vrot.slane %v4412_v37, 2 }
 0x125   :  { %v2871_v27 = vadd.f32 %v2870_v42, %v2869_v20  ;;  %v1548_v20 = vadd.f32 %v1540_v5, %v1532_v28  ;;  %v1549_v42 = vadd.f32 %v1541_v54, %v1533_v46  ;;  %v3252_v5 = vsel %vm1607_vm12, 1.0, %v3540_v16 }
 0x126   :  { %v1633_v54 = vrot.slane %v3251_v44, 2  ;;  %v1643_v28 = vrot.slane %v3247_v24, 4  ;;  %v1638_v46 = vadd.f32 %v3245_v45, %v1630_v61 }
 0x127   :  { %3285 = vpush %v2871_v27  ;;  %v1550_v27 = vadd.f32 %v1542_v40, %v1534_v59  ;;  %v1560_v48 = vadd.f32 %v1552_v51, %v1548_v20  ;;  %v1561_v26 = vadd.f32 %v1553_v11, %v1549_v42  ;;  %v1639_v59 = vadd.f32 %v3247_v24, %v1631_v23 }
 0x128   :  { %v1640_v51 = vadd.f32 %v3249_v21, %v1632_v36  ;;  %v1641_v34 = vadd.f32 %v3251_v44, %v1633_v54  ;;  %v1645_v20 = vrot.slane %v3251_v44, 4  ;;  %v1654_v42 = vrot.slane %v3245_v45, 6 }
 0x129   :  { %v1562_v32 = vadd.f32 %v1554_v10, %v1550_v27  ;;  %v1572_v30 = vadd.f32 %v1564_v25, %v1560_v48  ;;  %v1573_v13 = vadd.f32 %v1565_v18, %v1561_v26  ;;  %v1644_v10 = vrot.slane %v3249_v21, 4 }
 0x12a   :  { %v1650_v27 = vadd.f32 %v1642_v57, %v1638_v46  ;;  %v1651_v19 = vadd.f32 %v1643_v28, %v1639_v59  ;;  %v1656_v25 = vrot.slane %v3249_v21, 6  ;;  %v1653_v26 = vadd.f32 %v1645_v20, %v1641_v34 }
 0x12b   :  { %v1574_v49 = vadd.f32 %v1566_v50, %v1562_v32  ;;  %v1580_v29 = vcombine.low %v1572_v30, %v1573_v13  ;;  %v1652_v48 = vadd.f32 %v1644_v10, %v1640_v51  ;;  %v1657_v32 = vrot.slane %v3251_v44, 6 }
 0x12c   :  { %v1662_v50 = vadd.f32 %v1654_v42, %v1650_v27  ;;  %v1663_v43 = vadd.f32 %v1655_v63, %v1651_v19  ;;  %v1675_v30 = vrot.slane %v4421_v52, 2  ;;  %v2896_v24 = vpop.xlane.xlu1 %2895  ;;  %v1689_v23 = vrot.slane %v3252_v5, 4 }
 0x12d   :  { %v1581_v56 = vcombine.low %v1574_v49, %v1575_v17  ;;  %v1588_v35 = vrot.slane %v1580_v29, %v4949_v62  ;;  %v1664_v49 = vadd.f32 %v1656_v25, %v1652_v48  ;;  %v1665_v17 = vadd.f32 %v1657_v32, %v1653_v26 }
 0x12e   :  { %v1666_v29 = vadd.f32 %v4412_v37, %v1662_v50  ;;  %v1667_v45 = vadd.f32 %v4421_v52, %v1663_v43  ;;  %v1698_v36 = vrot.slane %v4412_v37, 6  ;;  %v1700_v57 = vrot.slane %v4429_v60, 6 }
 0x12f   :  { %v1595_v55 = vrot.slane %v1581_v56, %v4949_v62  ;;  %v1686_v56 = vrot.slane %v4412_v37, 4  ;;  %v1669_v21 = vadd.f32 %v3252_v5, %v1665_v17  ;;  %v1701_v59 = vrot.slane %v3252_v5, 6 }
 0x130   :  { %v1682_v44 = vadd.f32 %v1674_v1, %v1666_v29  ;;  %v1683_v61 = vadd.f32 %v1675_v30, %v1667_v45  ;;  %v2897_v25 = vrot.slane %v2896_v24, 4  ;;  %v1736_v29 = vsel %vm1600_vm5, %v3825_v9, 0.0 }
 0x131   :  { %v1596_v40 = vcombine.low %v1588_v35, %v1595_v55  ;;  %v1668_v35 = vadd.f32 %v4429_v60, %v1664_v49  ;;  %v1688_v55 = vrot.slane %v4429_v60, 4  ;;  %v1738_v45 = vsel %vm1602_vm7, %v3839_v47, 0.0 }
 0x132   :  { %v1694_v28 = vadd.f32 %v1686_v56, %v1682_v44  ;;  %v1739_v56 = vsel %vm1603_vm8, %v3850_v38, 0.0  ;;  %vm2104_vm5 = vcmp.eq.f32.partialorder %v3910_v31, 7.0  ;;  %vm2106_vm7 = vcmp.eq.f32.partialorder %v3918_v12, 7.0 }
 0x133   :  { %2998 = vadd.xlane.f32.xlu1 %v1596_v40  ;;  %v1699_v40 = vrot.slane %v4421_v52, 6  ;;  %vm2107_vm8 = vcmp.eq.f32.partialorder %v3922_v39, 7.0 }
 0x134   :  { %v1706_v10 = vadd.f32 %v1698_v36, %v1694_v28  ;;  %v1761_v36 = vrot.slane %v1738_v45, 4 }
 0x13d   :  { %v2875_v2 = vpop.xlane.xlu0 %2874 }
 0x13e   :  { %v2876_v58 = vrot.slane %v2875_v2, 4 }
 0x140   :  { %v2877_v41 = vadd.f32 %v2876_v58, %v2875_v2  ;;  %v1676_v2 = vrot.slane %v4429_v60, 2  ;;  %v1677_v58 = vrot.slane %v3252_v5, 2  ;;  %v2898_v60 = vadd.f32 %v2897_v25, %v2896_v24 }
 0x141   :  { %v1740_v24 = vsel %vm1604_vm9, %v3861_v14, 0.0  ;;  %vm2108_vm9 = vcmp.eq.f32.partialorder %v3926_v4, 7.0 }
 0x142   :  { %v2878_v7 = vrot.slane %v2877_v41, 2  ;;  %v1684_v54 = vadd.f32 %v1676_v2, %v1668_v35  ;;  %v2899_v32 = vrot.slane %v2898_v60, 2  ;;  %v1742_v35 = vsel %vm1606_vm11, %v3883_v6, 0.0 }
 0x143   :  { %v1751_v44 = vrot.slane %v1742_v35, 2  ;;  %vm2110_vm11 = vcmp.eq.f32.partialorder %v3934_v33, 7.0 }
 0x144   :  { %v2879_v11 = vadd.f32 %v2878_v7, %v2877_v41  ;;  %v1687_v41 = vrot.slane %v4421_v52, 4  ;;  %v1685_v7 = vadd.f32 %v1677_v58, %v1669_v21  ;;  %v1696_v34 = vadd.f32 %v1688_v55, %v1684_v54 }
 0x145   :  { %v2900_v1 = vadd.f32 %v2899_v32, %v2898_v60  ;;  %v1737_v58 = vsel %vm1601_vm6, %v3828_v0, 0.0  ;;  %v1748_v21 = vrot.slane %v1736_v29, 2  ;;  %v1750_v55 = vrot.slane %v1740_v24, 2 }
 0x146   :  { %v2880_v18 = vrot.slane %v2879_v11, 1  ;;  %v1695_v46 = vadd.f32 %v1687_v41, %v1683_v61  ;;  %v1708_v42 = vadd.f32 %v1700_v57, %v1696_v34  ;;  %v1749_v41 = vrot.slane %v1738_v45, 2 }
 0x147   :  { %v1741_v61 = vsel %vm1605_vm10, %v3872_v3, 0.0  ;;  %v1762_v54 = vrot.slane %v1740_v24, 4  ;;  %v1758_v57 = vadd.f32 %v1750_v55, %v1740_v24  ;;  %v1759_v28 = vadd.f32 %v1751_v44, %v1742_v35 }
 0x148   :  { %v2881_v13 = vadd.f32 %v2880_v18, %v2879_v11  ;;  %v1697_v11 = vadd.f32 %v1689_v23, %v1685_v7  ;;  %v1707_v20 = vadd.f32 %v1699_v40, %v1695_v46  ;;  %v1760_v23 = vrot.slane %v1736_v29, 4 }
 0x149   :  { %v1756_v7 = vadd.f32 %v1748_v21, %v1736_v29  ;;  %v1757_v40 = vadd.f32 %v1749_v41, %v1738_v45  ;;  %v1743_v46 = vsel %vm1607_vm12, %v3894_v22, 0.0  ;;  %v1773_v34 = vrot.slane %v1738_v45, 6 }
 0x14a   :  { %3287 = vpush %v2881_v13  ;;  %v1709_v27 = vadd.f32 %v1701_v59, %v1697_v11  ;;  %v1714_v63 = vcombine.low %v1706_v10, %v1707_v20  ;;  %v2901_v13 = vrot.slane %v2900_v1, 1  ;;  %v1763_v59 = vrot.slane %v1742_v35, 4 }
 0x14b   :  { %v1768_v11 = vadd.f32 %v1760_v23, %v1756_v7  ;;  %v1769_v10 = vadd.f32 %v1761_v36, %v1757_v40  ;;  %v1770_v20 = vadd.f32 %v1762_v54, %v1758_v57  ;;  %v1794_v60 = vrot.slane %v1741_v61, 2 }
 0x14c   :  { %v1715_v37 = vcombine.low %v1708_v42, %v1709_v27  ;;  %v1722_v18 = vrot.slane %v1714_v63, %v4949_v62  ;;  %v2902_v2 = vadd.f32 %v2901_v13, %v2900_v1  ;;  %v1774_v42 = vrot.slane %v1740_v24, 6 }
 0x14d   :  { %v2906_v51 = vpop.xlane.xlu1 %2905  ;;  %v1771_v27 = vadd.f32 %v1763_v59, %v1759_v28  ;;  %v1792_v63 = vrot.slane %v1737_v58, 2  ;;  %v1806_v13 = vrot.slane %v1741_v61, 4  ;;  %v1816_v24 = vrot.slane %v1737_v58, 6 }
 0x14e   :  { %v2907_v19 = vrot.slane %v2906_v51, 4  ;;  %v1729_v52 = vrot.slane %v1715_v37, %v4949_v62  ;;  %v1781_v37 = vadd.f32 %v1773_v34, %v1769_v10  ;;  %v1818_v44 = vrot.slane %v1741_v61, 6 }
 0x14f   :  { %v1819_v36 = vrot.slane %v1743_v46, 6  ;;  %v3257_v59 = vsel %vm1856_vm15, 1.0, %v3540_v16  ;;  %vm2105_vm6 = vcmp.eq.f32.partialorder %v3914_v53, 7.0  ;;  %vm2109_vm10 = vcmp.eq.f32.partialorder %v3930_v15, 7.0 }
 0x150   :  { %v2908_v48 = vadd.f32 %v2907_v19, %v2906_v51  ;;  %v1730_v26 = vcombine.low %v1722_v18, %v1729_v52  ;;  %v1772_v51 = vrot.slane %v1736_v29, 6  ;;  %v1775_v19 = vrot.slane %v1742_v35, 6 }
 0x151   :  { %v1782_v18 = vadd.f32 %v1774_v42, %v1770_v20  ;;  %v1793_v52 = vrot.slane %v1739_v56, 2  ;;  %v1785_v32 = vadd.f32 %v1781_v37, %v1739_v56  ;;  %v1807_v29 = vrot.slane %v1743_v46, 4 }
 0x152   :  { %3019 = vadd.xlane.f32.xlu0 %v1730_v26  ;;  %v2909_v5 = vrot.slane %v2908_v48, 2  ;;  %v1780_v25 = vadd.f32 %v1772_v51, %v1768_v11  ;;  %v1795_v26 = vrot.slane %v1743_v46, 2  ;;  %v1817_v35 = vrot.slane %v1739_v56, 6 }
 0x153   :  { %v3259_v51 = vsel %vm1858_vm1, 1.0, %v3540_v16  ;;  %v3254_v11 = vsel %vm1853_vm0, 1.0, %v3540_v16  ;;  %v1884_v42 = vrot.slane %v3257_v59, 2  ;;  %vm2111_vm12 = vcmp.eq.f32.partialorder %v3936_v8, 7.0 }
 0x154   :  { %v2910_v43 = vadd.f32 %v2909_v5, %v2908_v48  ;;  %v1783_v48 = vadd.f32 %v1775_v19, %v1771_v27  ;;  %v1784_v5 = vadd.f32 %v1780_v25, %v1737_v58  ;;  %v1885_v27 = vrot.slane %v3259_v51, 2 }
 0x155   :  { %v3256_v25 = vsel %vm1855_vm2, 1.0, %v3540_v16 }
 0x156   :  { %v2911_v30 = vrot.slane %v2910_v43, 1  ;;  %v1787_v1 = vadd.f32 %v1783_v48, %v1743_v46  ;;  %v1892_v48 = vadd.f32 %v3257_v59, %v1884_v42 }
 0x158   :  { %s4452_s2 = spop %3285  ;;  %v2912_v49 = vadd.f32 %v2911_v30, %v2910_v43  ;;  %v1804_v43 = vrot.slane %v1737_v58, 4  ;;  %v1805_v30 = vrot.slane %v1739_v56, 4  ;;  %v1803_v45 = vadd.f32 %v1795_v26, %v1787_v1 }
 0x159   :  { %s2887_s24 = smax.f32 %s3541_s23, %s4452_s2  ;;  %v3253_v58 = vsel %vm1852_vm13, 1.0, %v3540_v16  ;;  %v1896_v26 = vrot.slane %v3257_v59, 4  ;;  %p2884_p10 = scmp.gt.f32.partialorder %s4452_s2, 0.5 }
 0x15a   :  { %v2888_v50 = vstv %s2887_s24  ;;  %v1815_v23 = vadd.f32 %v1807_v29, %v1803_v45  ;;  %v1882_v10 = vrot.slane %v3253_v58, 2  ;;  %v1894_v19 = vrot.slane %v3253_v58, 4 }
 0x15b   :  { %3411 = vrcp.f32 %v2888_v50  ;;  %v1786_v50 = vadd.f32 %v1782_v18, %v1741_v61  ;;  %v3255_v61 = vsel %vm1854_vm14, 1.0, %v3540_v16  ;;  %v1909_v29 = vrot.slane %v3259_v51, 6 }
 0x15c   :  { %v1827_v57 = vadd.f32 %v1819_v36, %v1815_v23  ;;  %v1883_v20 = vrot.slane %v3255_v61, 2  ;;  %v1890_v37 = vadd.f32 %v3253_v58, %v1882_v10  ;;  %v1895_v18 = vrot.slane %v3255_v61, 4 }
 0x15d   :  { %v1950_v10 = vrot.slane %v3254_v11, 6 }
 0x165   :  { %v3412_v17 = vpop.eup %3411 }
 0x166   :  { %3289 = vpush %v3412_v17  ;;  %v1801_v17 = vadd.f32 %v1793_v52, %v1785_v32  ;;  %v1891_v52 = vadd.f32 %v3255_v61, %v1883_v20  ;;  %v1897_v32 = vrot.slane %v3259_v51, 4  ;;  %v1951_v20 = vrot.slane %v3256_v25, 6 }
 0x167   :  { %3291 = vpush %v2902_v2  ;;  %v1802_v2 = vadd.f32 %v1794_v60, %v1786_v50  ;;  %v1893_v60 = vadd.f32 %v3259_v51, %v1885_v27  ;;  %v1902_v50 = vadd.f32 %v1894_v19, %v1890_v37 }
 0x168   :  { %3293 = vpush %v2912_v49  ;;  %v1800_v49 = vadd.f32 %v1792_v63, %v1784_v5  ;;  %v1813_v41 = vadd.f32 %v1805_v30, %v1801_v17  ;;  %v3258_v5 = vsel %vm1857_vm3, 1.0, %v3540_v16  ;;  %v1903_v1 = vadd.f32 %v1895_v18, %v1891_v52 }
 0x169   :  { %v1814_v55 = vadd.f32 %v1806_v13, %v1802_v2  ;;  %v1904_v30 = vadd.f32 %v1896_v26, %v1892_v48  ;;  %v1907_v13 = vrot.slane %v3255_v61, 6  ;;  %v3260_v17 = vsel %vm1859_vm4, 1.0, %v3540_v16  ;;  %v2927_v48 = vpop.xlane.xlu0 %2926 }
 0x16a   :  { %v1812_v21 = vadd.f32 %v1804_v43, %v1800_v49  ;;  %v1825_v7 = vadd.f32 %v1817_v35, %v1813_v41  ;;  %v1906_v43 = vrot.slane %v3253_v58, 6  ;;  %v1908_v49 = vrot.slane %v3257_v59, 6 }
 0x16b   :  { %v1826_v40 = vadd.f32 %v1818_v44, %v1814_v55  ;;  %v1905_v2 = vadd.f32 %v1897_v32, %v1893_v60  ;;  %v1927_v41 = vrot.slane %v3256_v25, 2  ;;  %v1928_v23 = vrot.slane %v3258_v5, 2 }
 0x16c   :  { %v1824_v54 = vadd.f32 %v1816_v24, %v1812_v21  ;;  %v1914_v45 = vadd.f32 %v1906_v43, %v1902_v50  ;;  %v1915_v24 = vadd.f32 %v1907_v13, %v1903_v1  ;;  %v1916_v35 = vadd.f32 %v1908_v49, %v1904_v30 }
 0x16d   :  { %v1833_v56 = vcombine.low %v1826_v40, %v1827_v57  ;;  %v1926_v21 = vrot.slane %v3254_v11, 2  ;;  %v1917_v55 = vadd.f32 %v1909_v29, %v1905_v2  ;;  %v1938_v40 = vrot.slane %v3254_v11, 4 }
 0x16e   :  { %v1832_v28 = vcombine.low %v1824_v54, %v1825_v7  ;;  %v1918_v44 = vadd.f32 %v3254_v11, %v1914_v45  ;;  %v1919_v36 = vadd.f32 %v3256_v25, %v1915_v24  ;;  %v1920_v54 = vadd.f32 %v3258_v5, %v1916_v35 }
 0x16f   :  { %v1847_v34 = vrot.slane %v1833_v56, %v4949_v62  ;;  %v1929_v7 = vrot.slane %v3260_v17, 2  ;;  %v1921_v57 = vadd.f32 %v3260_v17, %v1917_v55  ;;  %v1939_v58 = vrot.slane %v3256_v25, 4  ;;  %v2937_v37 = vpop.xlane.xlu1 %2936 }
 0x170   :  { %v1840_v46 = vrot.slane %v1832_v28, %v4949_v62  ;;  %v1934_v28 = vadd.f32 %v1926_v21, %v1918_v44  ;;  %v1935_v56 = vadd.f32 %v1927_v41, %v1919_v36  ;;  %v1936_v61 = vadd.f32 %v1928_v23, %v1920_v54 }
 0x171   :  { %v1941_v59 = vrot.slane %v3260_v17, 4  ;;  %v1937_v51 = vadd.f32 %v1929_v7, %v1921_v57  ;;  %v1952_v19 = vrot.slane %v3258_v5, 6  ;;  %v2938_v50 = vrot.slane %v2937_v37, 4 }
 0x172   :  { %v1848_v63 = vcombine.low %v1840_v46, %v1847_v34  ;;  %v1940_v46 = vrot.slane %v3258_v5, 4  ;;  %v1946_v34 = vadd.f32 %v1938_v40, %v1934_v28  ;;  %v1947_v42 = vadd.f32 %v1939_v58, %v1935_v56 }
 0x173   :  { %v1949_v18 = vadd.f32 %v1941_v59, %v1937_v51  ;;  %v2928_v1 = vrot.slane %v2927_v48, 4  ;;  %v2939_v5 = vadd.f32 %v2938_v50, %v2937_v37  ;;  %v1988_v23 = vsel %vm1852_vm13, %v3825_v9, 0.0 }
 0x174   :  { %3029 = vadd.xlane.f32.xlu1 %v1848_v63  ;;  %v1948_v27 = vadd.f32 %v1940_v46, %v1936_v61  ;;  %v1953_v63 = vrot.slane %v3260_v17, 6  ;;  %v1958_v52 = vadd.f32 %v1950_v10, %v1946_v34  ;;  %v1959_v60 = vadd.f32 %v1951_v20, %v1947_v42 }
 0x175   :  { %v2929_v13 = vadd.f32 %v2928_v1, %v2927_v48  ;;  %v2940_v17 = vrot.slane %v2939_v5, 2  ;;  %v4533_v36 = vsel %vm1853_vm0, %v3828_v0, 0.0  ;;  %v1990_v54 = vsel %vm1854_vm14, %v3839_v47, 0.0 }
 0x176   :  { %v1960_v26 = vadd.f32 %v1952_v19, %v1948_v27  ;;  %v1961_v32 = vadd.f32 %v1953_v63, %v1949_v18  ;;  %v1966_v43 = vcombine.low %v1958_v52, %v1959_v60  ;;  %v4541_v7 = vsel %vm1855_vm2, %v3850_v38, 0.0 }
 0x177   :  { %v2930_v2 = vrot.slane %v2929_v13, 2  ;;  %v2941_v45 = vadd.f32 %v2940_v17, %v2939_v5  ;;  %v1992_v40 = vsel %vm1856_vm15, %v3861_v14, 0.0  ;;  %v1993_v57 = vsel %vm1857_vm3, %v3872_v3, 0.0 }
 0x178   :  { %v1967_v30 = vcombine.low %v1960_v26, %v1961_v32  ;;  %v1974_v11 = vrot.slane %v1966_v43, %v4949_v62  ;;  %v1994_v28 = vsel %vm1858_vm1, %v3883_v6, 0.0  ;;  %v1995_v58 = vsel %vm1859_vm4, %v3894_v22, 0.0 }
 0x179   :  { %v2931_v24 = vadd.f32 %v2930_v2, %v2929_v13  ;;  %v2942_v35 = vrot.slane %v2941_v45, 1  ;;  %v2000_v56 = vrot.slane %v1988_v23, 2  ;;  %v2001_v61 = vrot.slane %v1990_v54, 2 }
 0x17a   :  { %v1981_v25 = vrot.slane %v1967_v30, %v4949_v62  ;;  %v2002_v46 = vrot.slane %v1992_v40, 2  ;;  %v2003_v59 = vrot.slane %v1994_v28, 2  ;;  %v2012_v51 = vrot.slane %v1988_v23, 4 }
 0x17b   :  { %s3288_s26 = spop %3287  ;;  %v2932_v21 = vrot.slane %v2931_v24, 1  ;;  %v2943_v41 = vadd.f32 %v2942_v35, %v2941_v45  ;;  %v2013_v34 = vrot.slane %v1990_v54, 4  ;;  %v2014_v10 = vrot.slane %v1992_v40, 4 }
 0x17c   :  { %v1982_v49 = vcombine.low %v1974_v11, %v1981_v25  ;;  %v2015_v20 = vrot.slane %v1994_v28, 4  ;;  %v2008_v42 = vadd.f32 %v2000_v56, %v1988_v23  ;;  %v2009_v27 = vadd.f32 %v2001_v61, %v1990_v54 }
 0x17d   :  { %v2933_v44 = vadd.f32 %v2932_v21, %v2931_v24  ;;  %v2010_v19 = vadd.f32 %v2002_v46, %v1992_v40  ;;  %v2011_v63 = vadd.f32 %v2003_v59, %v1994_v28  ;;  %v2024_v37 = vrot.slane %v1988_v23, 6 }
 0x17e   :  { %3050 = vadd.xlane.f32.xlu0 %v1982_v49  ;;  %v2025_v18 = vrot.slane %v1990_v54, 6  ;;  %v2026_v52 = vrot.slane %v1992_v40, 6  ;;  %v2027_v48 = vrot.slane %v1994_v28, 6  ;;  %v2020_v60 = vadd.f32 %v2012_v51, %v2008_v42 }
 0x17f   :  { %v2021_v26 = vadd.f32 %v2013_v34, %v2009_v27  ;;  %v2022_v32 = vadd.f32 %v2014_v10, %v2010_v19  ;;  %v2023_v50 = vadd.f32 %v2015_v20, %v2011_v63  ;;  %v2044_v43 = vrot.slane %v4533_v36, 2 }
 0x180   :  { %v2045_v1 = vrot.slane %v4541_v7, 2  ;;  %v2046_v30 = vrot.slane %v1993_v57, 2  ;;  %v2047_v11 = vrot.slane %v1995_v58, 2  ;;  %v2032_v25 = vadd.f32 %v2024_v37, %v2020_v60 }
 0x181   :  { %v2033_v5 = vadd.f32 %v2025_v18, %v2021_v26  ;;  %v2034_v13 = vadd.f32 %v2026_v52, %v2022_v32  ;;  %v2035_v49 = vadd.f32 %v2027_v48, %v2023_v50  ;;  %v2056_v17 = vrot.slane %v4533_v36, 4 }
 0x182   :  { %v2057_v2 = vrot.slane %v4541_v7, 4  ;;  %v2059_v45 = vrot.slane %v1995_v58, 4  ;;  %v2036_v24 = vadd.f32 %v2032_v25, %v4533_v36  ;;  %v2070_v23 = vrot.slane %v1993_v57, 6 }
 0x183   :  { %v2037_v35 = vadd.f32 %v2033_v5, %v4541_v7  ;;  %v2038_v21 = vadd.f32 %v2034_v13, %v1993_v57  ;;  %v2071_v54 = vrot.slane %v1995_v58, 6  ;;  %v3261_v10 = vsel %vm2104_vm5, 1.0, %v3540_v16 }
 0x184   :  { %v2052_v40 = vadd.f32 %v2044_v43, %v2036_v24  ;;  %v3262_v20 = vsel %vm2105_vm6, 1.0, %v3540_v16  ;;  %v3263_v42 = vsel %vm2106_vm7, 1.0, %v3540_v16  ;;  %v3264_v27 = vsel %vm2107_vm8, 1.0, %v3540_v16 }
 0x185   :  { %v2053_v28 = vadd.f32 %v2045_v1, %v2037_v35  ;;  %v2054_v56 = vadd.f32 %v2046_v30, %v2038_v21  ;;  %v3265_v37 = vsel %vm2108_vm9, 1.0, %v3540_v16  ;;  %v3266_v18 = vsel %vm2109_vm10, 1.0, %v3540_v16 }
 0x186   :  { %v2064_v46 = vadd.f32 %v2056_v17, %v2052_v40  ;;  %v3267_v52 = vsel %vm2110_vm11, 1.0, %v3540_v16  ;;  %v3268_v48 = vsel %vm2111_vm12, 1.0, %v3540_v16  ;;  %v2134_v60 = vrot.slane %v3261_v10, 2 }
 0x187   :  { %v2065_v59 = vadd.f32 %v2057_v2, %v2053_v28  ;;  %v2135_v26 = vrot.slane %v3263_v42, 2  ;;  %v2136_v43 = vrot.slane %v3265_v37, 2  ;;  %v2137_v1 = vrot.slane %v3267_v52, 2 }
 0x188   :  { %v2142_v30 = vadd.f32 %v3261_v10, %v2134_v60  ;;  %v2146_v25 = vrot.slane %v3261_v10, 4  ;;  %v2147_v5 = vrot.slane %v3263_v42, 4  ;;  %v2148_v2 = vrot.slane %v3265_v37, 4 }
 0x189   :  { %v2145_v17 = vadd.f32 %v3267_v52, %v2137_v1  ;;  %v2158_v35 = vrot.slane %v3261_v10, 6  ;;  %v2178_v40 = vrot.slane %v3262_v20, 2  ;;  %v2192_v10 = vrot.slane %v3266_v18, 4 }
 0x18a   :  { %v2205_v1 = vrot.slane %v3268_v48, 6  ;;  %vm2356_vm13 = vcmp.eq.f32.partialorder %v3910_v31, 8.0  ;;  %vm2357_vm14 = vcmp.eq.f32.partialorder %v3914_v53, 8.0  ;;  %vm2358_vm15 = vcmp.eq.f32.partialorder %v3918_v12, 8.0 }
 0x18b   :  { %vm2359_vm0 = vcmp.eq.f32.partialorder %v3922_v39, 8.0  ;;  %vm2360_vm1 = vcmp.eq.f32.partialorder %v3926_v4, 8.0  ;;  %vm2361_vm2 = vcmp.eq.f32.partialorder %v3930_v15, 8.0  ;;  %vm2362_vm3 = vcmp.eq.f32.partialorder %v3934_v33, 8.0 }
 0x18c   :  { %vm2363_vm4 = vcmp.eq.f32.partialorder %v3936_v8, 8.0 }
 0x197   :  { %s3290_s27 = spop %3289 }
 0x198   :  { %s2891_s28 = smul.f32 %s3290_s27, %s3288_s26  ;;  %s4517_s29 = spop %3291 }
 0x199   :  { %s2914_s30 = sadd.f32 %s4517_s29, %s4452_s2  ;;  %s2918_s4 = smax.f32 %s3541_s23, %s4517_s29 }
 0x19a   :  { %s4951_s28 = smov (!%p2884_p10, %s2891_s28), 0.0  ;;  %v2919_v29 = vstv %s2918_s4  ;;  %s3294_s5 = spop %3293 }
 0x19b   :  { %3413 = vrcp.f32 %v2919_v29  ;;  %v2058_v29 = vrot.slane %v1993_v57, 4  ;;  %p2915_p11 = scmp.gt.f32.partialorder %s4517_s29, 0.5 }
 0x19d   :  { %v2066_v51 = vadd.f32 %v2058_v29, %v2054_v56  ;;  %v2149_v29 = vrot.slane %v3267_v52, 4 }
 0x1a5   :  { %v3414_v55 = vpop.eup %3413 }
 0x1a6   :  { %3295 = vpush %v3414_v55  ;;  %v2068_v55 = vrot.slane %v4533_v36, 6 }
 0x1a7   :  { %3297 = vpush %v2933_v44  ;;  %v2069_v44 = vrot.slane %v4541_v7, 6 }
 0x1a8   :  { %3299 = vpush %v2943_v41  ;;  %v2039_v41 = vadd.f32 %v2035_v49, %v1995_v58  ;;  %v2076_v7 = vadd.f32 %v2068_v55, %v2064_v46  ;;  %v2078_v58 = vadd.f32 %v2070_v23, %v2066_v51  ;;  %v2144_v49 = vadd.f32 %v3265_v37, %v2136_v43 }
 0x1a9   :  { %v2077_v57 = vadd.f32 %v2069_v44, %v2065_v59  ;;  %v2160_v55 = vrot.slane %v3265_v37, 6  ;;  %v2161_v44 = vrot.slane %v3267_v52, 6  ;;  %v2157_v23 = vadd.f32 %v2149_v29, %v2145_v17  ;;  %v2968_v17 = vpop.xlane.xlu1 %2967  ;;  %v2958_v29 = vpop.xlane.xlu0 %2957 }
 0x1aa   :  { %v2055_v61 = vadd.f32 %v2047_v11, %v2039_v41  ;;  %v2143_v11 = vadd.f32 %v3263_v42, %v2135_v26  ;;  %v2156_v21 = vadd.f32 %v2148_v2, %v2144_v49  ;;  %v2159_v41 = vrot.slane %v3263_v42, 6 }
 0x1ab   :  { %v2084_v19 = vcombine.low %v2076_v7, %v2077_v57  ;;  %v2180_v46 = vrot.slane %v3266_v18, 2  ;;  %v2169_v59 = vadd.f32 %v2161_v44, %v2157_v23  ;;  %v2190_v7 = vrot.slane %v3262_v20, 4 }
 0x1ac   :  { %v2067_v36 = vadd.f32 %v2059_v45, %v2055_v61  ;;  %v2154_v45 = vadd.f32 %v2146_v25, %v2142_v30  ;;  %v2155_v24 = vadd.f32 %v2147_v5, %v2143_v11  ;;  %v2168_v56 = vadd.f32 %v2160_v55, %v2156_v21 }
 0x1ad   :  { %v2092_v32 = vrot.slane %v2084_v19, %v4949_v62  ;;  %v2179_v61 = vrot.slane %v3264_v27, 2  ;;  %v2173_v19 = vadd.f32 %v3268_v48, %v2169_v59  ;;  %v2193_v42 = vrot.slane %v3268_v48, 4 }
 0x1ae   :  { %v2079_v34 = vadd.f32 %v2071_v54, %v2067_v36  ;;  %v2166_v54 = vadd.f32 %v2158_v35, %v2154_v45  ;;  %v2167_v28 = vadd.f32 %v2159_v41, %v2155_v24  ;;  %v2181_v36 = vrot.slane %v3268_v48, 2 }
 0x1af   :  { %v2202_v37 = vrot.slane %v3262_v20, 6  ;;  %v2203_v26 = vrot.slane %v3264_v27, 6  ;;  %v2959_v48 = vrot.slane %v2958_v29, 4 }
 0x1b0   :  { %v2085_v63 = vcombine.low %v2078_v58, %v2079_v34  ;;  %v2170_v51 = vadd.f32 %v3262_v20, %v2166_v54  ;;  %v2171_v57 = vadd.f32 %v3264_v27, %v2167_v28  ;;  %v2172_v58 = vadd.f32 %v3266_v18, %v2168_v56 }
 0x1b1   :  { %v2191_v34 = vrot.slane %v3264_v27, 4  ;;  %v2969_v27 = vrot.slane %v2968_v17, 4  ;;  %v2960_v41 = vadd.f32 %v2959_v48, %v2958_v29 }
 0x1b2   :  { %v2099_v50 = vrot.slane %v2085_v63, %v4949_v62  ;;  %v2186_v63 = vadd.f32 %v2178_v40, %v2170_v51  ;;  %v2187_v52 = vadd.f32 %v2179_v61, %v2171_v57  ;;  %v2188_v60 = vadd.f32 %v2180_v46, %v2172_v58 }
 0x1b3   :  { %v2970_v21 = vadd.f32 %v2969_v27, %v2968_v17  ;;  %v2961_v44 = vrot.slane %v2960_v41, 2  ;;  %v2240_v51 = vsel %vm2104_vm5, %v3825_v9, 0.0  ;;  %v4630_v57 = vsel %vm2107_vm8, %v3850_v38, 0.0 }
 0x1b4   :  { %v2100_v13 = vcombine.low %v2092_v32, %v2099_v50  ;;  %v2204_v32 = vrot.slane %v3266_v18, 6  ;;  %v2189_v50 = vadd.f32 %v2181_v36, %v2173_v19  ;;  %v2198_v43 = vadd.f32 %v2190_v7, %v2186_v63 }
 0x1b5   :  { %v2199_v30 = vadd.f32 %v2191_v34, %v2187_v52  ;;  %v2200_v11 = vadd.f32 %v2192_v10, %v2188_v60  ;;  %v2971_v55 = vrot.slane %v2970_v21, 2  ;;  %v2962_v40 = vadd.f32 %v2961_v44, %v2960_v41 }
 0x1b6   :  { %3060 = vadd.xlane.f32.xlu1 %v2100_v13  ;;  %v2201_v25 = vadd.f32 %v2193_v42, %v2189_v50  ;;  %v2210_v5 = vadd.f32 %v2202_v37, %v2198_v43  ;;  %v4622_v36 = vsel %vm2105_vm6, %v3828_v0, 0.0  ;;  %v2242_v7 = vsel %vm2106_vm7, %v3839_v47, 0.0 }
 0x1b7   :  { %v2211_v13 = vadd.f32 %v2203_v26, %v2199_v30  ;;  %v2212_v49 = vadd.f32 %v2204_v32, %v2200_v11  ;;  %v2972_v54 = vadd.f32 %v2971_v55, %v2970_v21  ;;  %v2963_v56 = vrot.slane %v2962_v40, 1 }
 0x1b8   :  { %v2213_v2 = vadd.f32 %v2205_v1, %v2201_v25  ;;  %v2244_v58 = vsel %vm2108_vm9, %v3861_v14, 0.0  ;;  %v2245_v34 = vsel %vm2109_vm10, %v3872_v3, 0.0  ;;  %v2246_v10 = vsel %vm2110_vm11, %v3883_v6, 0.0 }
 0x1b9   :  { %v2218_v20 = vcombine.low %v2210_v5, %v2211_v13  ;;  %v2973_v28 = vrot.slane %v2972_v54, 1  ;;  %v2964_v59 = vadd.f32 %v2963_v56, %v2962_v40  ;;  %v2247_v19 = vsel %vm2111_vm12, %v3894_v22, 0.0 }
 0x1ba   :  { %v2219_v45 = vcombine.low %v2212_v49, %v2213_v2  ;;  %v2252_v63 = vrot.slane %v2240_v51, 2  ;;  %v2253_v42 = vrot.slane %v2242_v7, 2  ;;  %v2254_v37 = vrot.slane %v2244_v58, 2 }
 0x1bb   :  { %v2226_v18 = vrot.slane %v2218_v20, %v4949_v62  ;;  %v2974_v61 = vadd.f32 %v2973_v28, %v2972_v54  ;;  %v2255_v52 = vrot.slane %v2246_v10, 2  ;;  %v2264_v60 = vrot.slane %v2240_v51, 4 }
 0x1bc   :  { %v2233_v24 = vrot.slane %v2219_v45, %v4949_v62  ;;  %v2265_v26 = vrot.slane %v2242_v7, 4  ;;  %v2266_v32 = vrot.slane %v2244_v58, 4  ;;  %v2267_v50 = vrot.slane %v2246_v10, 4 }
 0x1bd   :  { %v2260_v43 = vadd.f32 %v2252_v63, %v2240_v51  ;;  %v2261_v1 = vadd.f32 %v2253_v42, %v2242_v7  ;;  %v2262_v30 = vadd.f32 %v2254_v37, %v2244_v58  ;;  %v2263_v11 = vadd.f32 %v2255_v52, %v2246_v10 }
 0x1be   :  { %v2234_v35 = vcombine.low %v2226_v18, %v2233_v24  ;;  %v2276_v25 = vrot.slane %v2240_v51, 6  ;;  %v2277_v5 = vrot.slane %v2242_v7, 6  ;;  %v2278_v13 = vrot.slane %v2244_v58, 6 }
 0x1bf   :  { %v2279_v49 = vrot.slane %v2246_v10, 6  ;;  %v2272_v17 = vadd.f32 %v2264_v60, %v2260_v43  ;;  %v2273_v2 = vadd.f32 %v2265_v26, %v2261_v1  ;;  %v2274_v29 = vadd.f32 %v2266_v32, %v2262_v30 }
 0x1c0   :  { %3081 = vadd.xlane.f32.xlu0 %v2234_v35  ;;  %v2275_v20 = vadd.f32 %v2267_v50, %v2263_v11  ;;  %v2296_v45 = vrot.slane %v4622_v36, 2  ;;  %v2297_v27 = vrot.slane %v4630_v57, 2  ;;  %v2298_v18 = vrot.slane %v2245_v34, 2 }
 0x1c1   :  { %v2299_v48 = vrot.slane %v2247_v19, 2  ;;  %v2284_v24 = vadd.f32 %v2276_v25, %v2272_v17  ;;  %v2285_v35 = vadd.f32 %v2277_v5, %v2273_v2  ;;  %v2286_v21 = vadd.f32 %v2278_v13, %v2274_v29 }
 0x1c2   :  { %v2287_v41 = vadd.f32 %v2279_v49, %v2275_v20  ;;  %v2308_v55 = vrot.slane %v4622_v36, 4  ;;  %v2309_v44 = vrot.slane %v4630_v57, 4  ;;  %v2311_v54 = vrot.slane %v2247_v19, 4 }
 0x1c3   :  { %v2288_v40 = vadd.f32 %v2284_v24, %v4622_v36  ;;  %v2289_v28 = vadd.f32 %v2285_v35, %v4630_v57  ;;  %v2290_v56 = vadd.f32 %v2286_v21, %v2245_v34  ;;  %v2322_v51 = vrot.slane %v2245_v34, 6 }
 0x1c4   :  { %v2323_v7 = vrot.slane %v2247_v19, 6  ;;  %v3269_v32 = vsel %vm2356_vm13, 1.0, %v3540_v16  ;;  %v3270_v50 = vsel %vm2357_vm14, 1.0, %v3540_v16  ;;  %v3271_v43 = vsel %vm2358_vm15, 1.0, %v3540_v16 }
 0x1c5   :  { %v2304_v58 = vadd.f32 %v2296_v45, %v2288_v40  ;;  %v2305_v10 = vadd.f32 %v2297_v27, %v2289_v28  ;;  %v2306_v63 = vadd.f32 %v2298_v18, %v2290_v56  ;;  %v3272_v1 = vsel %vm2359_vm0, 1.0, %v3540_v16 }
 0x1c6   :  { %v3273_v25 = vsel %vm2360_vm1, 1.0, %v3540_v16  ;;  %v3274_v5 = vsel %vm2361_vm2, 1.0, %v3540_v16  ;;  %v3275_v13 = vsel %vm2362_vm3, 1.0, %v3540_v16  ;;  %v3276_v49 = vsel %vm2363_vm4, 1.0, %v3540_v16 }
 0x1c7   :  { %v2316_v37 = vadd.f32 %v2308_v55, %v2304_v58  ;;  %v2317_v52 = vadd.f32 %v2309_v44, %v2305_v10  ;;  %v2386_v17 = vrot.slane %v3269_v32, 2  ;;  %v2387_v2 = vrot.slane %v3271_v43, 2 }
 0x1c8   :  { %v2388_v45 = vrot.slane %v3273_v25, 2  ;;  %v2389_v27 = vrot.slane %v3275_v13, 2  ;;  %v2398_v24 = vrot.slane %v3269_v32, 4  ;;  %v2399_v35 = vrot.slane %v3271_v43, 4 }
 0x1c9   :  { %v2394_v18 = vadd.f32 %v3269_v32, %v2386_v17  ;;  %v2400_v44 = vrot.slane %v3273_v25, 4  ;;  %v2410_v28 = vrot.slane %v3269_v32, 6  ;;  %v2430_v58 = vrot.slane %v3270_v50, 2 }
 0x1ca   :  { %v2397_v55 = vadd.f32 %v3275_v13, %v2389_v27  ;;  %v2444_v32 = vrot.slane %v3274_v5, 4  ;;  %v2457_v27 = vrot.slane %v3276_v49, 6  ;;  %vm2608_vm5 = vcmp.eq.f32.partialorder %v3910_v31, 9.0 }
 0x1cb   :  { %vm2609_vm6 = vcmp.eq.f32.partialorder %v3914_v53, 9.0  ;;  %vm2610_vm7 = vcmp.eq.f32.partialorder %v3918_v12, 9.0  ;;  %vm2611_vm8 = vcmp.eq.f32.partialorder %v3922_v39, 9.0  ;;  %vm2612_vm9 = vcmp.eq.f32.partialorder %v3926_v4, 9.0 }
 0x1cc   :  { %vm2613_vm10 = vcmp.eq.f32.partialorder %v3930_v15, 9.0  ;;  %vm2614_vm11 = vcmp.eq.f32.partialorder %v3934_v33, 9.0  ;;  %vm2615_vm12 = vcmp.eq.f32.partialorder %v3936_v8, 9.0 }
 0x1d7   :  { %s3296_s6 = spop %3295 }
 0x1d8   :  { %s2922_s7 = smul.f32 %s3296_s6, %s3294_s5  ;;  %s4600_s8 = spop %3297 }
 0x1d9   :  { %s4606_s9 = sadd.f32 %s4600_s8, %s2914_s30  ;;  %s2949_s10 = smax.f32 %s3541_s23, %s4600_s8 }
 0x1da   :  { %s4953_s7 = smov (!%p2915_p11, %s2922_s7), 0.0  ;;  %v2950_v23 = vstv %s2949_s10  ;;  %s3300_s11 = spop %3299 }
 0x1db   :  { %s2924_s0 = sadd.f32 %s4953_s7, %s4951_s28  ;;  %3415 = vrcp.f32 %v2950_v23  ;;  %v2310_v23 = vrot.slane %v2245_v34, 4  ;;  %p2946_p12 = scmp.gt.f32.partialorder %s4600_s8, 0.5 }
 0x1dd   :  { %v2318_v60 = vadd.f32 %v2310_v23, %v2306_v63  ;;  %v2401_v23 = vrot.slane %v3275_v13, 4 }
 0x1e5   :  { %v3416_v46 = vpop.eup %3415 }
 0x1e6   :  { %3301 = vpush %v3416_v46  ;;  %v2320_v46 = vrot.slane %v4622_v36, 6 }
 0x1e7   :  { %3303 = vpush %v2964_v59  ;;  %v2321_v59 = vrot.slane %v4630_v57, 6 }
 0x1e8   :  { %3305 = vpush %v2974_v61  ;;  %v2291_v61 = vadd.f32 %v2287_v41, %v2247_v19  ;;  %v2328_v57 = vadd.f32 %v2320_v46, %v2316_v37  ;;  %v2330_v19 = vadd.f32 %v2322_v51, %v2318_v60  ;;  %v2396_v41 = vadd.f32 %v3273_v25, %v2388_v45 }
 0x1e9   :  { %v2329_v34 = vadd.f32 %v2321_v59, %v2317_v52  ;;  %v2412_v46 = vrot.slane %v3273_v25, 6  ;;  %v2413_v59 = vrot.slane %v3275_v13, 6  ;;  %v2409_v51 = vadd.f32 %v2401_v23, %v2397_v55  ;;  %v2999_v55 = vpop.xlane.xlu1 %2998  ;;  %v2989_v23 = vpop.xlane.xlu0 %2988 }
 0x1ea   :  { %v2307_v42 = vadd.f32 %v2299_v48, %v2291_v61  ;;  %v2395_v48 = vadd.f32 %v3271_v43, %v2387_v2  ;;  %v2408_v56 = vadd.f32 %v2400_v44, %v2396_v41  ;;  %v2411_v61 = vrot.slane %v3271_v43, 6 }
 0x1eb   :  { %v2336_v30 = vcombine.low %v2328_v57, %v2329_v34  ;;  %v2432_v37 = vrot.slane %v3274_v5, 2  ;;  %v2421_v52 = vadd.f32 %v2413_v59, %v2409_v51  ;;  %v2442_v57 = vrot.slane %v3270_v50, 4 }
 0x1ec   :  { %v2319_v36 = vadd.f32 %v2311_v54, %v2307_v42  ;;  %v2406_v54 = vadd.f32 %v2398_v24, %v2394_v18  ;;  %v2407_v40 = vadd.f32 %v2399_v35, %v2395_v48  ;;  %v2420_v63 = vadd.f32 %v2412_v46, %v2408_v56 }
 0x1ed   :  { %v2344_v29 = vrot.slane %v2336_v30, %v4949_v62  ;;  %v2431_v42 = vrot.slane %v3272_v1, 2  ;;  %v2425_v30 = vadd.f32 %v3276_v49, %v2421_v52  ;;  %v2445_v43 = vrot.slane %v3276_v49, 4 }
 0x1ee   :  { %v2331_v26 = vadd.f32 %v2323_v7, %v2319_v36  ;;  %v2418_v7 = vadd.f32 %v2410_v28, %v2406_v54  ;;  %v2419_v10 = vadd.f32 %v2411_v61, %v2407_v40  ;;  %v2433_v36 = vrot.slane %v3276_v49, 2 }
 0x1ef   :  { %v2454_v25 = vrot.slane %v3270_v50, 6  ;;  %v2455_v2 = vrot.slane %v3272_v1, 6  ;;  %v3000_v40 = vrot.slane %v2999_v55, 4 }
 0x1f0   :  { %v2337_v11 = vcombine.low %v2330_v19, %v2331_v26  ;;  %v2422_v60 = vadd.f32 %v3270_v50, %v2418_v7  ;;  %v2423_v34 = vadd.f32 %v3272_v1, %v2419_v10  ;;  %v2424_v19 = vadd.f32 %v3274_v5, %v2420_v63 }
 0x1f1   :  { %v2443_v26 = vrot.slane %v3272_v1, 4  ;;  %v3001_v56 = vadd.f32 %v3000_v40, %v2999_v55 }
 0x1f2   :  { %v2351_v20 = vrot.slane %v2337_v11, %v4949_v62  ;;  %v2438_v11 = vadd.f32 %v2430_v58, %v2422_v60  ;;  %v2439_v13 = vadd.f32 %v2431_v42, %v2423_v34  ;;  %v2440_v17 = vadd.f32 %v2432_v37, %v2424_v19 }
 0x1f3   :  { %v3002_v46 = vrot.slane %v3001_v56, 2  ;;  %v2492_v60 = vsel %vm2356_vm13, %v3825_v9, 0.0  ;;  %v4716_v34 = vsel %vm2359_vm0, %v3850_v38, 0.0  ;;  %v2496_v19 = vsel %vm2360_vm1, %v3861_v14, 0.0 }
 0x1f4   :  { %v2352_v21 = vcombine.low %v2344_v29, %v2351_v20  ;;  %v2456_v29 = vrot.slane %v3274_v5, 6  ;;  %v2441_v20 = vadd.f32 %v2433_v36, %v2425_v30  ;;  %v2450_v45 = vadd.f32 %v2442_v57, %v2438_v11 }
 0x1f5   :  { %v2451_v18 = vadd.f32 %v2443_v26, %v2439_v13  ;;  %v2452_v48 = vadd.f32 %v2444_v32, %v2440_v17  ;;  %v2990_v5 = vrot.slane %v2989_v23, 4  ;;  %v3003_v7 = vadd.f32 %v3002_v46, %v3001_v56 }
 0x1f6   :  { %3091 = vadd.xlane.f32.xlu1 %v2352_v21  ;;  %v2453_v24 = vadd.f32 %v2445_v43, %v2441_v20  ;;  %v2462_v35 = vadd.f32 %v2454_v25, %v2450_v45  ;;  %v4708_v36 = vsel %vm2357_vm14, %v3828_v0, 0.0  ;;  %v2494_v57 = vsel %vm2358_vm15, %v3839_v47, 0.0 }
 0x1f7   :  { %v2463_v21 = vadd.f32 %v2455_v2, %v2451_v18  ;;  %v2464_v41 = vadd.f32 %v2456_v29, %v2452_v48  ;;  %v2991_v61 = vadd.f32 %v2990_v5, %v2989_v23  ;;  %v3004_v10 = vrot.slane %v3003_v7, 1 }
 0x1f8   :  { %v2465_v44 = vadd.f32 %v2457_v27, %v2453_v24  ;;  %v2497_v26 = vsel %vm2361_vm2, %v3872_v3, 0.0  ;;  %v2498_v32 = vsel %vm2362_vm3, %v3883_v6, 0.0  ;;  %v2499_v30 = vsel %vm2363_vm4, %v3894_v22, 0.0 }
 0x1f9   :  { %v2470_v54 = vcombine.low %v2462_v35, %v2463_v21  ;;  %v2992_v59 = vrot.slane %v2991_v61, 2  ;;  %v3005_v42 = vadd.f32 %v3004_v10, %v3003_v7  ;;  %v2504_v11 = vrot.slane %v2492_v60, 2 }
 0x1fa   :  { %v2471_v50 = vcombine.low %v2464_v41, %v2465_v44  ;;  %v2505_v43 = vrot.slane %v2494_v57, 2  ;;  %v2506_v25 = vrot.slane %v2496_v19, 2  ;;  %v2507_v13 = vrot.slane %v2498_v32, 2 }
 0x1fb   :  { %v2478_v1 = vrot.slane %v2470_v54, %v4949_v62  ;;  %v2993_v58 = vadd.f32 %v2992_v59, %v2991_v61  ;;  %v2516_v17 = vrot.slane %v2492_v60, 4  ;;  %v2517_v2 = vrot.slane %v2494_v57, 4 }
 0x1fc   :  { %v2485_v49 = vrot.slane %v2471_v50, %v4949_v62  ;;  %v2518_v29 = vrot.slane %v2496_v19, 4  ;;  %v2519_v20 = vrot.slane %v2498_v32, 4  ;;  %v2512_v45 = vadd.f32 %v2504_v11, %v2492_v60 }
 0x1fd   :  { %v2994_v63 = vrot.slane %v2993_v58, 1  ;;  %v2513_v27 = vadd.f32 %v2505_v43, %v2494_v57  ;;  %v2514_v18 = vadd.f32 %v2506_v25, %v2496_v19  ;;  %v2515_v48 = vadd.f32 %v2507_v13, %v2498_v32 }
 0x1fe   :  { %v2486_v28 = vcombine.low %v2478_v1, %v2485_v49  ;;  %v2528_v24 = vrot.slane %v2492_v60, 6  ;;  %v2529_v35 = vrot.slane %v2494_v57, 6  ;;  %v2530_v21 = vrot.slane %v2496_v19, 6 }
 0x1ff   :  { %v2995_v52 = vadd.f32 %v2994_v63, %v2993_v58  ;;  %v2531_v41 = vrot.slane %v2498_v32, 6  ;;  %v2524_v55 = vadd.f32 %v2516_v17, %v2512_v45  ;;  %v2525_v44 = vadd.f32 %v2517_v2, %v2513_v27 }
 0x200   :  { %3112 = vadd.xlane.f32.xlu0 %v2486_v28  ;;  %v2526_v23 = vadd.f32 %v2518_v29, %v2514_v18  ;;  %v2527_v54 = vadd.f32 %v2519_v20, %v2515_v48  ;;  %v2548_v50 = vrot.slane %v4708_v36, 2  ;;  %v2549_v40 = vrot.slane %v4716_v34, 2 }
 0x201   :  { %v2550_v1 = vrot.slane %v2497_v26, 2  ;;  %v2551_v5 = vrot.slane %v2499_v30, 2  ;;  %v2536_v49 = vadd.f32 %v2528_v24, %v2524_v55  ;;  %v2537_v28 = vadd.f32 %v2529_v35, %v2525_v44 }
 0x202   :  { %v2538_v56 = vadd.f32 %v2530_v21, %v2526_v23  ;;  %v2539_v61 = vadd.f32 %v2531_v41, %v2527_v54  ;;  %v2560_v46 = vrot.slane %v4708_v36, 4  ;;  %v2561_v59 = vrot.slane %v4716_v34, 4 }
 0x203   :  { %v2563_v7 = vrot.slane %v2499_v30, 4  ;;  %v2540_v58 = vadd.f32 %v2536_v49, %v4708_v36  ;;  %v2541_v10 = vadd.f32 %v2537_v28, %v4716_v34  ;;  %v2574_v60 = vrot.slane %v2497_v26, 6 }
 0x204   :  { %v2542_v63 = vadd.f32 %v2538_v56, %v2497_v26  ;;  %v2575_v57 = vrot.slane %v2499_v30, 6  ;;  %v3277_v29 = vsel %vm2608_vm5, 1.0, %v3540_v16  ;;  %v3278_v20 = vsel %vm2609_vm6, 1.0, %v3540_v16 }
 0x205   :  { %v2556_v19 = vadd.f32 %v2548_v50, %v2540_v58  ;;  %v2557_v32 = vadd.f32 %v2549_v40, %v2541_v10  ;;  %v3279_v45 = vsel %vm2610_vm7, 1.0, %v3540_v16  ;;  %v3280_v27 = vsel %vm2611_vm8, 1.0, %v3540_v16 }
 0x206   :  { %v2558_v11 = vadd.f32 %v2550_v1, %v2542_v63  ;;  %v3281_v24 = vsel %vm2612_vm9, 1.0, %v3540_v16  ;;  %v3282_v35 = vsel %vm2613_vm10, 1.0, %v3540_v16  ;;  %v3283_v21 = vsel %vm2614_vm11, 1.0, %v3540_v16 }
 0x207   :  { %v2568_v25 = vadd.f32 %v2560_v46, %v2556_v19  ;;  %v2569_v13 = vadd.f32 %v2561_v59, %v2557_v32  ;;  %v3284_v41 = vsel %vm2615_vm12, 1.0, %v3540_v16  ;;  %v2638_v55 = vrot.slane %v3277_v29, 2 }
 0x208   :  { %v2639_v44 = vrot.slane %v3279_v45, 2  ;;  %v2640_v50 = vrot.slane %v3281_v24, 2  ;;  %v2641_v40 = vrot.slane %v3283_v21, 2  ;;  %v2650_v49 = vrot.slane %v3277_v29, 4 }
 0x209   :  { %v2646_v1 = vadd.f32 %v3277_v29, %v2638_v55  ;;  %v2651_v28 = vrot.slane %v3279_v45, 4  ;;  %v2652_v59 = vrot.slane %v3281_v24, 4  ;;  %v2662_v16 = vrot.slane %v3277_v29, 6 }
 0x20a   :  { %v2649_v46 = vadd.f32 %v3283_v21, %v2641_v40  ;;  %v2663_v63 = vrot.slane %v3279_v45, 6  ;;  %v2707_v55 = vrot.slane %v3280_v27, 6  ;;  %vm3187_vm13 = vcmask 0  }
 0x217   :  { %s3302_s12 = spop %3301 }
 0x218   :  { %s2953_s13 = smul.f32 %s3302_s12, %s3300_s11  ;;  %s4689_s14 = spop %3303 }
 0x219   :  { %s2976_s15 = sadd.f32 %s4689_s14, %s4606_s9  ;;  %s2980_s17 = smax.f32 %s3541_s23, %s4689_s14 }
 0x21a   :  { %s4955_s13 = smov (!%p2946_p12, %s2953_s13), 0.0  ;;  %v2981_v51 = vstv %s2980_s17  ;;  %s3306_s18 = spop %3305 }
 0x21b   :  { %s4698_s16 = sadd.f32 %s4955_s13, %s2924_s0  ;;  %3417 = vrcp.f32 %v2981_v51  ;;  %v2562_v51 = vrot.slane %v2497_v26, 4  ;;  %p2977_p13 = scmp.gt.f32.partialorder %s4689_s14, 0.5 }
 0x21d   :  { %v2570_v17 = vadd.f32 %v2562_v51, %v2558_v11  ;;  %v2653_v51 = vrot.slane %v3283_v21, 4  ;;  %v2683_v11 = vrot.slane %v3280_v27, 2 }
 0x225   :  { %v3418_v37 = vpop.eup %3417 }
 0x226   :  { %3307 = vpush %v3418_v37  ;;  %v2572_v37 = vrot.slane %v4708_v36, 6 }
 0x227   :  { %3309 = vpush %v2995_v52  ;;  %v2573_v52 = vrot.slane %v4716_v34, 6 }
 0x228   :  { %3311 = vpush %v3005_v42  ;;  %v2543_v42 = vadd.f32 %v2539_v61, %v2499_v30  ;;  %v2580_v34 = vadd.f32 %v2572_v37, %v2568_v25  ;;  %v2582_v30 = vadd.f32 %v2574_v60, %v2570_v17  ;;  %v2648_v61 = vadd.f32 %v3281_v24, %v2640_v50 }
 0x229   :  { %v2581_v26 = vadd.f32 %v2573_v52, %v2569_v13  ;;  %v2665_v37 = vrot.slane %v3283_v21, 6  ;;  %v2661_v52 = vadd.f32 %v2653_v51, %v2649_v46  ;;  %v2685_v17 = vrot.slane %v3284_v41, 2 }
 0x22a   :  { %v2559_v43 = vadd.f32 %v2551_v5, %v2543_v42  ;;  %v2647_v5 = vadd.f32 %v3279_v45, %v2639_v44  ;;  %v2660_v10 = vadd.f32 %v2652_v59, %v2648_v61  ;;  %v2664_v42 = vrot.slane %v3281_v24, 6  ;;  %v3030_v61 = vpop.xlane.xlu1 %3029  ;;  %v3020_v59 = vpop.xlane.xlu0 %3019 }
 0x22b   :  { %v2588_v18 = vcombine.low %v2580_v34, %v2581_v26  ;;  %v2673_v25 = vadd.f32 %v2665_v37, %v2661_v52  ;;  %v2697_v45 = vrot.slane %v3284_v41, 4  ;;  %v2708_v44 = vrot.slane %v3282_v35, 6 }
 0x22c   :  { %v2571_v36 = vadd.f32 %v2563_v7, %v2559_v43  ;;  %v2658_v7 = vadd.f32 %v2650_v49, %v2646_v1  ;;  %v2659_v58 = vadd.f32 %v2651_v28, %v2647_v5  ;;  %v2672_v32 = vadd.f32 %v2664_v42, %v2660_v10 }
 0x22d   :  { %v2596_v23 = vrot.slane %v2588_v18, %v4949_v62  ;;  %v2684_v43 = vrot.slane %v3282_v35, 2  ;;  %v2677_v29 = vadd.f32 %v3284_v41, %v2673_v25  ;;  %v2709_v50 = vrot.slane %v3284_v41, 6 }
 0x22e   :  { %v2583_v2 = vadd.f32 %v2575_v57, %v2571_v36  ;;  %v2670_v60 = vadd.f32 %v2662_v16, %v2658_v7  ;;  %v2682_v57 = vrot.slane %v3278_v20, 2  ;;  %v2671_v19 = vadd.f32 %v2663_v63, %v2659_v58 }
 0x22f   :  { %v2694_v36 = vrot.slane %v3278_v20, 4  ;;  %v2676_v26 = vadd.f32 %v3282_v35, %v2672_v32  ;;  %v3021_v41 = vrot.slane %v3020_v59, 4  ;;  %v2744_v25 = vsel %vm2608_vm5, %v3825_v9, 0.0 }
 0x230   :  { %v2589_v48 = vcombine.low %v2582_v30, %v2583_v2  ;;  %v2674_v13 = vadd.f32 %v3278_v20, %v2670_v60  ;;  %v2675_v34 = vadd.f32 %v3280_v27, %v2671_v19  ;;  %v2695_v30 = vrot.slane %v3280_v27, 4 }
 0x231   :  { %v2696_v2 = vrot.slane %v3282_v35, 4  ;;  %v2692_v21 = vadd.f32 %v2684_v43, %v2676_v26  ;;  %v3031_v27 = vrot.slane %v3030_v61, 4  ;;  %v3022_v10 = vadd.f32 %v3021_v41, %v3020_v59 }
 0x232   :  { %v2603_v54 = vrot.slane %v2589_v48, %v4949_v62  ;;  %v2690_v18 = vadd.f32 %v2682_v57, %v2674_v13  ;;  %v2706_v48 = vrot.slane %v3278_v20, 6  ;;  %v2691_v24 = vadd.f32 %v2683_v11, %v2675_v34 }
 0x233   :  { %v2704_v1 = vadd.f32 %v2696_v2, %v2692_v21  ;;  %v3032_v16 = vadd.f32 %v3031_v27, %v3030_v61  ;;  %v3023_v42 = vrot.slane %v3022_v10, 2  ;;  %v2745_v13 = vsel %vm2609_vm6, %v3828_v0, 0.0 }
 0x234   :  { %v2604_v56 = vcombine.low %v2596_v23, %v2603_v54  ;;  %v2693_v23 = vadd.f32 %v2685_v17, %v2677_v29  ;;  %v2702_v54 = vadd.f32 %v2694_v36, %v2690_v18  ;;  %v2703_v40 = vadd.f32 %v2695_v30, %v2691_v24 }
 0x235   :  { %v3033_v63 = vrot.slane %v3032_v16, 2  ;;  %v3024_v60 = vadd.f32 %v3023_v42, %v3022_v10  ;;  %v2746_v17 = vsel %vm2610_vm7, %v3839_v47, 0.0  ;;  %v2747_v36 = vsel %vm2611_vm8, %v3850_v38, 0.0 }
 0x236   :  { %3122 = vadd.xlane.f32.xlu1 %v2604_v56  ;;  %v2705_v5 = vadd.f32 %v2697_v45, %v2693_v23  ;;  %v2714_v49 = vadd.f32 %v2706_v48, %v2702_v54  ;;  %v2715_v28 = vadd.f32 %v2707_v55, %v2703_v40  ;;  %v2716_v56 = vadd.f32 %v2708_v44, %v2704_v1 }
 0x237   :  { %v3034_v52 = vadd.f32 %v3033_v63, %v3032_v16  ;;  %v3025_v19 = vrot.slane %v3024_v60, 1  ;;  %v2748_v34 = vsel %vm2612_vm9, %v3861_v14, 0.0  ;;  %v2749_v9 = vsel %vm2613_vm10, %v3872_v3, 0.0 }
 0x238   :  { %v2717_v46 = vadd.f32 %v2709_v50, %v2705_v5  ;;  %v2722_v20 = vcombine.low %v2714_v49, %v2715_v28  ;;  %v2750_v0 = vsel %vm2614_vm11, %v3883_v6, 0.0  ;;  %v2751_v47 = vsel %vm2615_vm12, %v3894_v22, 0.0 }
 0x239   :  { %v3035_v57 = vrot.slane %v3034_v52, 1  ;;  %v3026_v43 = vadd.f32 %v3025_v19, %v3024_v60  ;;  %v2756_v31 = vrot.slane %v2744_v25, 2  ;;  %v2757_v53 = vrot.slane %v2746_v17, 2 }
 0x23a   :  { %v2723_v51 = vcombine.low %v2716_v56, %v2717_v46  ;;  %v2730_v35 = vrot.slane %v2722_v20, %v4949_v62  ;;  %v2758_v12 = vrot.slane %v2748_v34, 2  ;;  %v2759_v38 = vrot.slane %v2750_v0, 2 }
 0x23b   :  { %v3036_v32 = vadd.f32 %v3035_v57, %v3034_v52  ;;  %v2768_v39 = vrot.slane %v2744_v25, 4  ;;  %v2769_v26 = vrot.slane %v2746_v17, 4  ;;  %v2770_v4 = vrot.slane %v2748_v34, 4 }
 0x23c   :  { %v2737_v7 = vrot.slane %v2723_v51, %v4949_v62  ;;  %v2771_v14 = vrot.slane %v2750_v0, 4  ;;  %v2764_v30 = vadd.f32 %v2756_v31, %v2744_v25  ;;  %v2765_v2 = vadd.f32 %v2757_v53, %v2746_v17 }
 0x23d   :  { %v2766_v15 = vadd.f32 %v2758_v12, %v2748_v34  ;;  %v2767_v3 = vadd.f32 %v2759_v38, %v2750_v0  ;;  %v2780_v29 = vrot.slane %v2744_v25, 6  ;;  %v2781_v18 = vrot.slane %v2746_v17, 6 }
 0x23e   :  { %v2738_v58 = vcombine.low %v2730_v35, %v2737_v7  ;;  %v2782_v33 = vrot.slane %v2748_v34, 6  ;;  %v2783_v6 = vrot.slane %v2750_v0, 6  ;;  %v2776_v45 = vadd.f32 %v2768_v39, %v2764_v30 }
 0x23f   :  { %v2777_v48 = vadd.f32 %v2769_v26, %v2765_v2  ;;  %v2778_v8 = vadd.f32 %v2770_v4, %v2766_v15  ;;  %v2779_v22 = vadd.f32 %v2771_v14, %v2767_v3  ;;  %v2800_v24 = vrot.slane %v2745_v13, 2 }
 0x240   :  { %3143 = vadd.xlane.f32.xlu0 %v2738_v58  ;;  %v2801_v21 = vrot.slane %v2747_v36, 2  ;;  %v2802_v55 = vrot.slane %v2749_v9, 2  ;;  %v2803_v44 = vrot.slane %v2751_v47, 2  ;;  %v2788_v23 = vadd.f32 %v2780_v29, %v2776_v45 }
 0x241   :  { %v2789_v54 = vadd.f32 %v2781_v18, %v2777_v48  ;;  %v2790_v50 = vadd.f32 %v2782_v33, %v2778_v8  ;;  %v2791_v40 = vadd.f32 %v2783_v6, %v2779_v22  ;;  %v2812_v1 = vrot.slane %v2745_v13, 4 }
 0x242   :  { %v2813_v5 = vrot.slane %v2747_v36, 4  ;;  %v2814_v49 = vrot.slane %v2749_v9, 4  ;;  %v2815_v28 = vrot.slane %v2751_v47, 4  ;;  %v2792_v56 = vadd.f32 %v2788_v23, %v2745_v13 }
 0x243   :  { %v2793_v61 = vadd.f32 %v2789_v54, %v2747_v36  ;;  %v2794_v46 = vadd.f32 %v2790_v50, %v2749_v9  ;;  %v2795_v59 = vadd.f32 %v2791_v40, %v2751_v47  ;;  %v2824_v20 = vrot.slane %v2745_v13, 6  ;;  %v3061_v17 = vpop.xlane.xlu1 %3060 }
 0x244   :  { %v2825_v51 = vrot.slane %v2747_v36, 6  ;;  %v2826_v27 = vrot.slane %v2749_v9, 6  ;;  %v2827_v35 = vrot.slane %v2751_v47, 6  ;;  %v2808_v41 = vadd.f32 %v2800_v24, %v2792_v56  ;;  %v3051_v36 = vpop.xlane.xlu0 %3050 }
 0x245   :  { %v2809_v7 = vadd.f32 %v2801_v21, %v2793_v61  ;;  %v2810_v58 = vadd.f32 %v2802_v55, %v2794_v46  ;;  %v2811_v16 = vadd.f32 %v2803_v44, %v2795_v59  ;;  %v3062_v34 = vrot.slane %v3061_v17, 4 }
 0x246   :  { %v2820_v10 = vadd.f32 %v2812_v1, %v2808_v41  ;;  %v3052_v9 = vrot.slane %v3051_v36, 4 }
 0x247   :  { %v2821_v63 = vadd.f32 %v2813_v5, %v2809_v7  ;;  %v2822_v42 = vadd.f32 %v2814_v49, %v2810_v58  ;;  %v3063_v0 = vadd.f32 %v3062_v34, %v3061_v17 }
 0x248   :  { %v2832_v52 = vadd.f32 %v2824_v20, %v2820_v10  ;;  %v3053_v47 = vadd.f32 %v3052_v9, %v3051_v36 }
 0x249   :  { %v2833_v60 = vadd.f32 %v2825_v51, %v2821_v63  ;;  %v2834_v57 = vadd.f32 %v2826_v27, %v2822_v42 }
 0x24a   :  { %v3054_v31 = vrot.slane %v3053_v47, 2 }
 0x24c   :  { %v3055_v38 = vadd.f32 %v3054_v31, %v3053_v47 }
 0x24d   :  { %v3082_v15 = vpop.xlane.xlu0 %3081 }
 0x24e   :  { %v3056_v26 = vrot.slane %v3055_v38, 1  ;;  %v3083_v29 = vrot.slane %v3082_v15, 4 }
 0x250   :  { %v3057_v30 = vadd.f32 %v3056_v26, %v3055_v38  ;;  %v3084_v33 = vadd.f32 %v3083_v29, %v3082_v15 }
 0x252   :  { %v3085_v45 = vrot.slane %v3084_v33, 2 }
 0x254   :  { %v3086_v22 = vadd.f32 %v3085_v45, %v3084_v33 }
 0x256   :  { %v3087_v21 = vrot.slane %v3086_v22, 1 }
 0x257   :  { %s3308_s19 = spop %3307 }
 0x258   :  { %s2984_s20 = smul.f32 %s3308_s19, %s3306_s18  ;;  %s4775_s21 = spop %3309  ;;  %v3088_v23 = vadd.f32 %v3087_v21, %v3086_v22 }
 0x259   :  { %s4781_s1 = sadd.f32 %s4775_s21, %s2976_s15  ;;  %s3011_s25 = smax.f32 %s3541_s23, %s4775_s21 }
 0x25a   :  { %s4957_s20 = smov (!%p2977_p13, %s2984_s20), 0.0  ;;  %v3012_v37 = vstv %s3011_s25  ;;  %s3312_s24 = spop %3311 }
 0x25b   :  { %s2986_s22 = sadd.f32 %s4957_s20, %s4698_s16  ;;  %3419 = vrcp.f32 %v3012_v37  ;;  %v2823_v37 = vadd.f32 %v2815_v28, %v2811_v16  ;;  %p3008_p0 = scmp.gt.f32.partialorder %s4775_s21, 0.5 }
 0x25d   :  { %v2835_v19 = vadd.f32 %v2827_v35, %v2823_v37 }
 0x265   :  { %v3420_v11 = vpop.eup %3419 }
 0x266   :  { %3313 = vpush %v3420_v11  ;;  %v2841_v11 = vcombine.low %v2834_v57, %v2835_v19 }
 0x267   :  { %3315 = vpush %v3026_v43 }
 0x268   :  { %3317 = vpush %v3036_v32  ;;  %v2840_v32 = vcombine.low %v2832_v52, %v2833_v60  ;;  %v2855_v25 = vrot.slane %v2841_v11, %v4949_v62 }
 0x26a   :  { %v2848_v43 = vrot.slane %v2840_v32, %v4949_v62  ;;  %v3064_v62 = vrot.slane %v3063_v0, 2 }
 0x26c   :  { %v2856_v13 = vcombine.low %v2848_v43, %v2855_v25  ;;  %v3065_v12 = vadd.f32 %v3064_v62, %v3063_v0 }
 0x26e   :  { %3153 = vadd.xlane.f32.xlu1 %v2856_v13  ;;  %v3066_v39 = vrot.slane %v3065_v12, 1 }
 0x270   :  { %v3067_v4 = vadd.f32 %v3066_v39, %v3065_v12 }
 0x283   :  { %v3092_v2 = vpop.xlane.xlu1 %3091 }
 0x284   :  { %v3093_v3 = vrot.slane %v3092_v2, 4 }
 0x286   :  { %v3094_v18 = vadd.f32 %v3093_v3, %v3092_v2 }
 0x288   :  { %v3095_v6 = vrot.slane %v3094_v18, 2 }
 0x28a   :  { %v3096_v8 = vadd.f32 %v3095_v6, %v3094_v18 }
 0x28c   :  { %v3097_v24 = vrot.slane %v3096_v8, 1 }
 0x28d   :  { %v3113_v50 = vpop.xlane.xlu0 %3112 }
 0x28e   :  { %v3098_v55 = vadd.f32 %v3097_v24, %v3096_v8  ;;  %v3114_v1 = vrot.slane %v3113_v50, 4 }
 0x290   :  { %v3115_v49 = vadd.f32 %v3114_v1, %v3113_v50 }
 0x292   :  { %v3116_v56 = vrot.slane %v3115_v49, 2 }
 0x294   :  { %v3117_v59 = vadd.f32 %v3116_v56, %v3115_v49 }
 0x296   :  { %v3118_v51 = vrot.slane %v3117_v59, 1 }
 0x297   :  { %s3314_s26 = spop %3313 }
 0x298   :  { %s3015_s27 = smul.f32 %s3314_s26, %s3312_s24  ;;  %s4818_s28 = spop %3315  ;;  %v3119_v41 = vadd.f32 %v3118_v51, %v3117_v59 }
 0x299   :  { %s3038_s30 = sadd.f32 %s4818_s28, %s4781_s1  ;;  %s3042_s5 = smax.f32 %s3541_s23, %s4818_s28 }
 0x29a   :  { %s4959_s27 = smov (!%p3008_p0, %s3015_s27), 0.0  ;;  %v3043_v53 = vstv %s3042_s5  ;;  %s3318_s6 = spop %3317 }
 0x29b   :  { %s4827_s4 = sadd.f32 %s4959_s27, %s2986_s22  ;;  %3421 = vrcp.f32 %v3043_v53  ;;  %p3039_p1 = scmp.gt.f32.partialorder %s4818_s28, 0.5 }
 0x29c   :  { %s2885_s5 = scalar_select %p2884_p10, 1.0, 0.0 }
 0x2a5   :  { %v3422_v14 = vpop.eup %3421 }
 0x2a6   :  { %3319 = vpush %v3422_v14 }
 0x2a7   :  { %3321 = vpush %v3057_v30 }
 0x2a8   :  { %3323 = vpush %v3067_v4 }
 0x2c3   :  { %v3123_v54 = vpop.xlane.xlu1 %3122 }
 0x2c4   :  { %v3124_v40 = vrot.slane %v3123_v54, 4 }
 0x2c6   :  { %v3125_v5 = vadd.f32 %v3124_v40, %v3123_v54 }
 0x2c8   :  { %v3126_v28 = vrot.slane %v3125_v5, 2 }
 0x2ca   :  { %v3127_v46 = vadd.f32 %v3126_v28, %v3125_v5 }
 0x2cc   :  { %v3128_v20 = vrot.slane %v3127_v46, 1 }
 0x2cd   :  { %v3144_v58 = vpop.xlane.xlu0 %3143 }
 0x2ce   :  { %v3129_v27 = vadd.f32 %v3128_v20, %v3127_v46  ;;  %v3145_v10 = vrot.slane %v3144_v58, 4 }
 0x2d0   :  { %v3146_v42 = vadd.f32 %v3145_v10, %v3144_v58 }
 0x2d2   :  { %v3147_v52 = vrot.slane %v3146_v42, 2 }
 0x2d4   :  { %v3148_v19 = vadd.f32 %v3147_v52, %v3146_v42 }
 0x2d6   :  { %v3149_v11 = vrot.slane %v3148_v19, 1 }
 0x2d7   :  { %s3320_s7 = spop %3319 }
 0x2d8   :  { %s3046_s9 = smul.f32 %s3320_s7, %s3318_s6  ;;  %s4832_s0 = spop %3321  ;;  %v3150_v13 = vadd.f32 %v3149_v11, %v3148_v19 }
 0x2d9   :  { %s4838_s10 = sadd.f32 %s4832_s0, %s3038_s30  ;;  %s3073_s12 = smax.f32 %s3541_s23, %s4832_s0 }
 0x2da   :  { %s4961_s9 = smov (!%p3039_p1, %s3046_s9), 0.0  ;;  %v3074_v48 = vstv %s3073_s12  ;;  %s3324_s13 = spop %3323 }
 0x2db   :  { %s3048_s11 = sadd.f32 %s4961_s9, %s4827_s4  ;;  %3423 = vrcp.f32 %v3074_v48  ;;  %p3070_p2 = scmp.gt.f32.partialorder %s4832_s0, 0.5 }
 0x2dc   :  { %s2916_s4 = scalar_select %p2915_p11, 1.0, 0.0 }
 0x2dd   :  { %s2947_s6 = scalar_select %p2946_p12, 1.0, 0.0 }
 0x2de   :  { %s2917_s7 = sadd.f32 %s2916_s4, %s2885_s5 }
 0x2df   :  { %s2978_s9 = scalar_select %p2977_p13, 1.0, 0.0 }
 0x2e5   :  { %v3424_v44 = vpop.eup %3423 }
 0x2e6   :  { %3325 = vpush %v3424_v44 }
 0x2e7   :  { %3327 = vpush %v3088_v23 }
 0x2e8   :  { %3329 = vpush %v3098_v55 }
 0x2fb   :  { %v3154_v7 = vpop.xlane.xlu1 %3153 }
 0x2fc   :  { %v3155_v16 = vrot.slane %v3154_v7, 4 }
 0x2fe   :  { %v3156_v63 = vadd.f32 %v3155_v16, %v3154_v7 }
 0x300   :  { %v3157_v37 = vrot.slane %v3156_v63, 2 }
 0x302   :  { %v3158_v57 = vadd.f32 %v3157_v37, %v3156_v63 }
 0x304   :  { %v3159_v32 = vrot.slane %v3158_v57, 1 }
 0x306   :  { %v3160_v43 = vadd.f32 %v3159_v32, %v3158_v57 }
 0x317   :  { %s3326_s15 = spop %3325 }
 0x318   :  { %s3077_s16 = smul.f32 %s3326_s15, %s3324_s13  ;;  %s4849_s17 = spop %3327 }
 0x319   :  { %s3100_s18 = sadd.f32 %s4849_s17, %s4838_s10  ;;  %s3104_s20 = smax.f32 %s3541_s23, %s4849_s17 }
 0x31a   :  { %s4963_s16 = smov (!%p3070_p2, %s3077_s16), 0.0  ;;  %v3105_v61 = vstv %s3104_s20  ;;  %s3330_s1 = spop %3329 }
 0x31b   :  { %s4858_s19 = sadd.f32 %s4963_s16, %s3048_s11  ;;  %3425 = vrcp.f32 %v3105_v61  ;;  %p3101_p3 = scmp.gt.f32.partialorder %s4849_s17, 0.5 }
 0x31c   :  { %s2948_s10 = sadd.f32 %s2947_s6, %s2917_s7 }
 0x31d   :  { %s3009_s11 = scalar_select %p3008_p0, 1.0, 0.0 }
 0x31e   :  { %s2979_s12 = sadd.f32 %s2978_s9, %s2948_s10  ;;  %s3542_s10 = smov [#allocation10]  }
 0x31f   :  { %s3040_s13 = scalar_select %p3039_p1, 1.0, 0.0 }
 0x320   :  { %s3010_s15 = sadd.f32 %s3009_s11, %s2979_s12  ;;  %s3195_s11 = sshll.u32 %s3542_s10, 4  ;;  %s3196_s11 = int_to_ptr.vmem [resolvable:$true] %s3195_s11 }
 0x321   :  { %s3071_s16 = scalar_select %p3070_p2, 1.0, 0.0 }
 0x322   :  { %s3041_s2 = sadd.f32 %s3040_s13, %s3010_s15  ;;  %s3501_s15 = scalar_lea.vmem %s3196_s11, 16 }
 0x323   :  { %s3102_s29 = scalar_select %p3101_p3, 1.0, 0.0 }
 0x324   :  { %s3072_s8 = sadd.f32 %s3071_s16, %s3041_s2  ;;  %p3502_p7 = scmp.ne.s32.totalorder %s3196_s11, %s3501_s15 }
 0x325   :  { %v3426_v35 = vpop.eup %3425  ;;  %s3505_s16 = scalar_lea.vmem %s3196_s11, 32  ;;  %p3506_p8 = scmp.lt.s32.totalorder %s3196_s11, %s3196_s11 }
 0x326   :  { %3331 = vpush %v3426_v35  ;;  %s3103_s14 = sadd.f32 %s3102_s29, %s3072_s8  ;;  %p3507_p9 = scmp.lt.s32.totalorder %s3505_s16, %s3501_s15 }
 0x327   :  { %3333 = vpush %v3119_v41 }
 0x328   :  { %3335 = vpush %v3129_v27  ;;  %p3508_p10 = por %p3507_p9, %p3506_p8 }
 0x32a   :  { %p3509_p11 = pnand %p3508_p10, %p3502_p7 }
 0x357   :  { %s3332_s22 = spop %3331 }
 0x358   :  { %s3108_s25 = smul.f32 %s3332_s22, %s3330_s1  ;;  %s4863_s24 = spop %3333 }
 0x359   :  { %s4869_s26 = sadd.f32 %s4863_s24, %s3100_s18  ;;  %s3135_s30 = smax.f32 %s3541_s23, %s4863_s24 }
 0x35a   :  { %s4965_s25 = smov (!%p3101_p3, %s3108_s25), 0.0  ;;  %v3136_v60 = vstv %s3135_s30  ;;  %p3132_p4 = scmp.gt.f32.partialorder %s4863_s24, 0.5 }
 0x35b   :  { %s3110_s27 = sadd.f32 %s4965_s25, %s4858_s19  ;;  %3427 = vrcp.f32 %v3136_v60  ;;  %s3336_s20 = spop %3335 }
 0x35c   :  { %s3133_s18 = scalar_select %p3132_p4, 1.0, 0.0 }
 0x35e   :  { %s3134_s1 = sadd.f32 %s3133_s18, %s3103_s14 }
 0x365   :  { %v3428_v25 = vpop.eup %3427 }
 0x366   :  { %3337 = vpush %v3428_v25 }
 0x367   :  { %3339 = vpush %v3150_v13 }
 0x368   :  { %3341 = vpush %v3160_v43 }
 0x397   :  { %s3338_s21 = spop %3337 }
 0x398   :  { %s3139_s22 = smul.f32 %s3338_s21, %s3336_s20  ;;  %s3340_s30 = spop %3339 }
 0x399   :  { %s3162_s4 = sadd.f32 %s3340_s30, %s4869_s26  ;;  %p3163_p5 = scmp.gt.f32.partialorder %s3340_s30, 0.5 }
 0x39a   :  { %s4967_s22 = smov (!%p3132_p4, %s3139_s22), 0.0  ;;  %s3166_s24 = smax.f32 %s3541_s23, %s3340_s30 }
 0x39b   :  { %s3164_s28 = scalar_select %p3163_p5, 1.0, 0.0  ;;  %v3167_v17 = vstv %s3166_s24 }
 0x39c   :  { %s3141_s0 = sadd.f32 %s4967_s22, %s3110_s27  ;;  %s3173_s17 = smax.f32 %s3541_s23, %s3162_s4  ;;  %3429 = vrcp.f32 %v3167_v17 }
 0x39d   :  { %s3165_s5 = sadd.f32 %s3164_s28, %s3134_s1  ;;  %v3182_v36 = vstv %s3173_s17  ;;  %s3342_s19 = spop %3341 }
 0x39f   :  { %s3175_s6 = smax.f32 %s3541_s23, %s3165_s5  ;;  %p3174_p6 = scmp.gt.f32.partialorder %s3165_s5, 0.5 }
 0x3a0   :  { %v3176_v34 = vstv %s3175_s6 }
 0x3a1   :  { %3431 = vrcp.f32 %v3176_v34 }
 0x3a2   :  { %3433 = vrcp.f32 %v3182_v36 }
 0x3a6   :  { %v3430_v9 = vpop.eup %3429 }
 0x3a7   :  { %3343 = vpush %v3430_v9 }
 0x3ab   :  { %v3432_v0 = vpop.eup %3431 }
 0x3ac   :  { %v3434_v47 = vpop.eup %3433  ;;  %3345 = vpush %v3432_v0 }
 0x3ad   :  { %3347 = vpush %v3434_v47 }
 0x3d8   :  { %s3344_s25 = spop %3343 }
 0x3d9   :  { %s3170_s26 = smul.f32 %s3344_s25, %s3342_s19 }
 0x3db   :  { %s4969_s26 = smov (!%p3163_p5, %s3170_s26), 0.0 }
 0x3dc   :  { %s3172_s7 = sadd.f32 %s4969_s26, %s3141_s0 }
 0x3dd   :  { %s3346_s27 = spop %3345 }
 0x3de   :  { %s4971_s27 = smov (!%p3174_p6, %s3346_s27), 0.0  ;;  %s3180_s23 = smul.f32 %s3173_s17, %s3172_s7 }
 0x3df   :  { %s3348_s12 = spop %3347 }
 0x3e0   :  { %s3181_s9 = smul.f32 %s3180_s23, %s4971_s27 }
 0x3e2   :  { %s3185_s13 = smul.f32 %s3348_s12, %s3181_s9 }
 0x3e4   :  { %v3186_v62 = vstv %s3185_s13 }
 0x3e5   :  { %3188 = vst.msk [vmem:[#allocation10] sm:$0x1] %vm3187_vm13, %v3186_v62 }
 0x3e6   :  { %3512 = shalt.err (!%p3509_p11)
}
 0x3e7   :  { %s3513_s8 = scalar_lea.hbm %s4920_s3, 16 }
 0x3e8   :  { %p3514_p12 = scmp.ne.s32.totalorder %s4920_s3, %s3513_s8  ;;  %p3517_p13 = scmp.lt.u32.totalorder %s3513_s8, %s4920_s3 }
 0x3ea   :  { %p3519_p0 = pnand %p3517_p13, %p3514_p12 }
 0x3ec   :  { %3522 = shalt.err (!%p3519_p0)
}
 0x3ed   :  { %3198 = dma.vmem_to_hbm [thread:$0]  %s3196_s11, 16, %s4920_s3, [#allocation6]  }
 0x3ee   :  { %3527 = dma.done.wait [#allocation6], 16  }
 0x3ef   :  { %3528 = vsyncadd [#allocation6], 4294967280 }
 0x3f0   :  { %3202 = vsyncpa [#allocation5], 1 }
 0x3f1   :  { %3203 = vsyncpa [#allocation8], 1 }
 0x3f2   :  { %3204 = vsyncpa [#allocation6], 1 }

</bundles_post_ra>
